<compile_context>
chip_gen: v7x
topology: tpu7x:2x2x1
jax: 0.10.0
libtpu: 0.0.40
codegen_flags: <defaults>
</compile_context>

<pallas_src>
import jax
import jax.numpy as jnp
from jax.experimental import pallas as pl
from jax.experimental.pallas import tpu as pltpu

EPS = 1e-5


def decoder_kernel(
    x_ref,                      # [TM, 1024] f32
    s0_ref, t0_ref,             # bn0 folded scale/shift         [1, 1024] f32
    w1_ref, b1_ref,             # conv0 (+bn1 folded): [1024, 512] bf16, [1, 512] f32
    w2_ref, b2_ref,             # conv1 (+bn2 folded): [512, 256] bf16, [1, 256] f32
    w3_ref, b3_ref,             # conv2 (+bn3 folded): [256, 128] bf16, [1, 128] f32
    w4_ref, b4_ref,             # conv3: [1, 128] f32, [1, 1] f32
    o_ref,                      # [TM, 1] f32
):
    x = x_ref[...]

    # BN0 + ReLU (kept in f32: v5e has no bf16 VALU; exact input affine)
    h = jnp.maximum(x * s0_ref[...] + t0_ref[...], 0.0)

    # Conv1x1 1024 -> 512 (bn1 folded into weights), bf16 MXU, f32 accumulate
    h = jnp.dot(h.astype(jnp.bfloat16), w1_ref[...],
                preferred_element_type=jnp.float32) + b1_ref[...]
    h = jnp.maximum(h, 0.0)

    # Conv1x1 512 -> 256 (bn2 folded)
    h = jnp.dot(h.astype(jnp.bfloat16), w2_ref[...],
                preferred_element_type=jnp.float32) + b2_ref[...]
    h = jnp.maximum(h, 0.0)

    # Conv1x1 256 -> 128 (bn3 folded)
    h = jnp.dot(h.astype(jnp.bfloat16), w3_ref[...],
                preferred_element_type=jnp.float32) + b3_ref[...]
    h = jnp.maximum(h, 0.0)

    # Conv1x1 128 -> 1: N=1 would waste the MXU output width, so ride the
    # VPU/XLU instead: elementwise mul + cross-lane reduction.
    out = jnp.sum(h * w4_ref[...], axis=-1, keepdims=True) + b4_ref[...]

    o_ref[...] = out.astype(o_ref.dtype)


def _bn_scale_shift(gamma, beta, rmean, rvar, eps=EPS):
    scale = gamma / jnp.sqrt(rvar + eps)
    shift = beta - rmean * scale
    return scale, shift


def make_raw_params(key):
    """Deterministic synthetic parameters matching the PyTorch module's shapes."""
    dims = [1024, 512, 256, 128, 1]
    keys = jax.random.split(key, 32)
    ki = iter(range(32))
    raw = {}
    for i in range(4):
        c = dims[i]
        gamma = 1.0 + 0.1 * jax.random.normal(keys[next(ki)], (c,), jnp.float32)
        beta = 0.1 * jax.random.normal(keys[next(ki)], (c,), jnp.float32)
        rmean = 0.05 * jax.random.normal(keys[next(ki)], (c,), jnp.float32)
        rvar = 1.0 + 0.1 * jax.random.uniform(keys[next(ki)], (c,), jnp.float32)
        raw[f"bn{i}"] = (gamma, beta, rmean, rvar)
    for i in range(4):
        c_in, c_out = dims[i], dims[i + 1]
        # PyTorch Conv2d(c_in, c_out, 1) weight [c_out, c_in, 1, 1] -> [c_out, c_in]
        w = (jax.random.normal(keys[next(ki)], (c_out, c_in), jnp.float32)
             * (1.0 / jnp.sqrt(c_in)))
        b = 0.01 * jax.random.normal(keys[next(ki)], (c_out,), jnp.float32)
        raw[f"conv{i}"] = (w, b)
    return raw


def fold_params(raw):
    """Fold Conv_i -> BN_{i+1} (exact) and prepare kernel-ready tensors."""
    # bn0 stays in-kernel (it is applied to the input before the first conv)
    s0, t0 = _bn_scale_shift(*raw["bn0"])
    kp = [s0.reshape(1, -1).astype(jnp.float32),
          t0.reshape(1, -1).astype(jnp.float32)]
    # convs 0..2: fold the following BN into weight/bias, transpose to
    # [c_in, c_out], cast weights to bf16 for the MXU.
    for i in range(3):
        w, b = raw[f"conv{i}"]                       # [c_out, c_in], [c_out]
        s, t = _bn_scale_shift(*raw[f"bn{i + 1}"])   # per c_out
        w_folded = (w * s[:, None]).T                # [c_in, c_out]
        b_folded = b * s + t
        kp += [w_folded.astype(jnp.bfloat16),
               b_folded.reshape(1, -1).astype(jnp.float32)]
    # conv3 (128 -> 1): no following BN; kept in f32 as a row vector.
    w4, b4 = raw["conv3"]                            # [1, 128], [1]
    kp += [w4.reshape(1, -1).astype(jnp.float32),
           b4.reshape(1, 1).astype(jnp.float32)]
    return tuple(kp)


def decoder_forward(x_nchw, kparams, *, tile_m=512):
    """x_nchw: [N, 1024, H, W] float32 -> [N, 1, H, W] float32."""
    N, C, H, W = x_nchw.shape
    assert C == 1024, "Decoder expects 1024 input channels"
    x_rows = jnp.transpose(x_nchw, (0, 2, 3, 1)).reshape(N * H * W, C)
    M = x_rows.shape[0]

    # Row tile: multiple of 8, at most tile_m; pad M up to a multiple of TM.
    TM = int(min(tile_m, M))
    TM = max(8, (TM // 8) * 8)
    M_pad = int(pl.cdiv(M, TM)) * TM
    if M_pad != M:
        x_rows = jnp.pad(x_rows, ((0, M_pad - M), (0, 0)))

    (s0, t0, w1, b1, w2, b2, w3, b3, w4, b4) = kparams
    param_arrays = (s0, t0, w1, b1, w2, b2, w3, b3, w4, b4)

    def full_spec(arr):
        nd = arr.ndim
        return pl.BlockSpec(arr.shape, lambda i, _nd=nd: (0,) * _nd)

    in_specs = [pl.BlockSpec((TM, C), lambda i: (i, 0))]
    in_specs += [full_spec(a) for a in param_arrays]

    flops = 2 * M_pad * (1024 * 512 + 512 * 256 + 256 * 128 + 128)
    bytes_accessed = (M_pad * C * 4 + M_pad * 4
                      + sum(int(a.size) * a.dtype.itemsize for a in param_arrays))

    out = pl.pallas_call(
        decoder_kernel,
        out_shape=jax.ShapeDtypeStruct((M_pad, 1), jnp.float32),
        grid_spec=pltpu.PrefetchScalarGridSpec(
            num_scalar_prefetch=0,
            grid=(M_pad // TM,),
            in_specs=in_specs,
            out_specs=pl.BlockSpec((TM, 1), lambda i: (i, 0)),
        ),
        compiler_params=pltpu.CompilerParams(
            dimension_semantics=("parallel",),
            vmem_limit_bytes=64 << 20,
        ),
        cost_estimate=pl.CostEstimate(
            flops=flops, transcendentals=0, bytes_accessed=bytes_accessed),
    )(x_rows, *param_arrays)

    out = out[:M]
    return jnp.transpose(out.reshape(N, H, W, 1), (0, 3, 1, 2))


def decoder_reference(x_nchw, raw):
    """Pure-JAX f32 reference of the original (unfolded) module."""
    N, C, H, W = x_nchw.shape
    h = jnp.transpose(x_nchw, (0, 2, 3, 1)).reshape(N * H * W, C)
    for i in range(4):
        gamma, beta, rmean, rvar = raw[f"bn{i}"]
        h = (h - rmean) * (gamma / jnp.sqrt(rvar + EPS)) + beta
        h = jnp.maximum(h, 0.0)
        w, b = raw[f"conv{i}"]
        h = h @ w.T + b
    return jnp.transpose(h.reshape(N, H, W, 1), (0, 3, 1, 2))


if __name__ == "__main__":
    key = jax.random.PRNGKey(0)
    k_x, k_p = jax.random.split(key)

    # Channels are architecturally fixed at 1024; keep batch/spatial small.
    N, C, H, W = 2, 1024, 8, 8
    x = jax.random.normal(k_x, (N, C, H, W), jnp.float32)

    raw = make_raw_params(k_p)
    kparams = fold_params(raw)

    out = decoder_forward(x, kparams)
    out = jax.block_until_ready(out)

    ref = decoder_reference(x, raw)
    assert out.shape == (N, 1, H, W), out.shape
    # bf16 matmuls shift results at ~1e-3 relative level; check relative error.
    rel_err = float(jnp.max(jnp.abs(out - ref)) / (jnp.max(jnp.abs(ref)) + 1e-6))
    assert rel_err < 5e-2, f"mismatch vs reference: rel_err={rel_err}"

    print("KERNEL_OK")
</pallas_src>

<mosaic_0001>
module attributes {stable_mosaic.version = 11 : i64} {
  func.func @decoder_kernel(%arg0: i32, %arg1: memref<128x1024xf32, #tpu.memory_space<vmem>>, %arg2: memref<1x1024xf32, #tpu.memory_space<vmem>>, %arg3: memref<1x1024xf32, #tpu.memory_space<vmem>>, %arg4: memref<1024x512xbf16, #tpu.memory_space<vmem>>, %arg5: memref<1x512xf32, #tpu.memory_space<vmem>>, %arg6: memref<512x256xbf16, #tpu.memory_space<vmem>>, %arg7: memref<1x256xf32, #tpu.memory_space<vmem>>, %arg8: memref<256x128xbf16, #tpu.memory_space<vmem>>, %arg9: memref<1x128xf32, #tpu.memory_space<vmem>>, %arg10: memref<1x128xf32, #tpu.memory_space<vmem>>, %arg11: memref<1x1xf32, #tpu.memory_space<vmem>>, %arg12: memref<128x1xf32, #tpu.memory_space<vmem>>) attributes {dimension_semantics = [#tpu.dimension_semantics<parallel>], iteration_bounds = array<i64: 1>, scalar_prefetch = 0 : i64, scratch_operands = 0 : i64, tpu.core_type = #tpu.core_type<tc>, window_params = [{transform_indices = @transform_0, window_bounds = array<i64: 128, 1024>}, {pipeline_mode = #tpu.pipeline_mode<synchronous>, transform_indices = @transform_1, window_bounds = array<i64: 1, 1024>}, {pipeline_mode = #tpu.pipeline_mode<synchronous>, transform_indices = @transform_2, window_bounds = array<i64: 1, 1024>}, {pipeline_mode = #tpu.pipeline_mode<synchronous>, transform_indices = @transform_3, window_bounds = array<i64: 1024, 512>}, {pipeline_mode = #tpu.pipeline_mode<synchronous>, transform_indices = @transform_4, window_bounds = array<i64: 1, 512>}, {pipeline_mode = #tpu.pipeline_mode<synchronous>, transform_indices = @transform_5, window_bounds = array<i64: 512, 256>}, {pipeline_mode = #tpu.pipeline_mode<synchronous>, transform_indices = @transform_6, window_bounds = array<i64: 1, 256>}, {pipeline_mode = #tpu.pipeline_mode<synchronous>, transform_indices = @transform_7, window_bounds = array<i64: 256, 128>}, {pipeline_mode = #tpu.pipeline_mode<synchronous>, transform_indices = @transform_8, window_bounds = array<i64: 1, 128>}, {pipeline_mode = #tpu.pipeline_mode<synchronous>, transform_indices = @transform_9, window_bounds = array<i64: 1, 128>}, {pipeline_mode = #tpu.pipeline_mode<synchronous>, transform_indices = @transform_10, window_bounds = array<i64: 1, 1>}, {transform_indices = @transform_11, window_bounds = array<i64: 128, 1>}]} {
    %c0 = arith.constant 0 : index
    %c0_0 = arith.constant 0 : index
    %0 = vector.load %arg1[%c0, %c0_0] : memref<128x1024xf32, #tpu.memory_space<vmem>>, vector<128x1024xf32>
    %c0_1 = arith.constant 0 : index
    %c0_2 = arith.constant 0 : index
    %1 = vector.load %arg2[%c0_1, %c0_2] : memref<1x1024xf32, #tpu.memory_space<vmem>>, vector<1x1024xf32>
    %2 = vector.broadcast %1 : vector<1x1024xf32> to vector<128x1024xf32>
    %3 = arith.mulf %0, %2 : vector<128x1024xf32>
    %c0_3 = arith.constant 0 : index
    %c0_4 = arith.constant 0 : index
    %4 = vector.load %arg3[%c0_3, %c0_4] : memref<1x1024xf32, #tpu.memory_space<vmem>>, vector<1x1024xf32>
    %5 = vector.broadcast %4 : vector<1x1024xf32> to vector<128x1024xf32>
    %6 = arith.addf %3, %5 : vector<128x1024xf32>
    %cst = arith.constant 0.000000e+00 : f32
    %7 = vector.broadcast %cst : f32 to vector<128x1024xf32>
    %8 = arith.maximumf %6, %7 : vector<128x1024xf32>
    %9 = arith.truncf %8 : vector<128x1024xf32> to vector<128x1024xbf16>
    %c0_5 = arith.constant 0 : index
    %c0_6 = arith.constant 0 : index
    %10 = vector.load %arg4[%c0_5, %c0_6] : memref<1024x512xbf16, #tpu.memory_space<vmem>>, vector<1024x512xbf16>
    %cst_7 = arith.constant dense<0.000000e+00> : vector<128x512xf32>
    %11 = tpu.matmul %9, %10, %cst_7 {dimension_numbers = #tpu.dot_dimension_numbers<[1], [0], [0], [1], [0, 0, 1, 1], [], []>} : vector<128x1024xbf16>, vector<1024x512xbf16>, vector<128x512xf32> -> vector<128x512xf32>
    %c0_8 = arith.constant 0 : index
    %c0_9 = arith.constant 0 : index
    %12 = vector.load %arg5[%c0_8, %c0_9] : memref<1x512xf32, #tpu.memory_space<vmem>>, vector<1x512xf32>
    %13 = vector.broadcast %12 : vector<1x512xf32> to vector<128x512xf32>
    %14 = arith.addf %11, %13 : vector<128x512xf32>
    %cst_10 = arith.constant 0.000000e+00 : f32
    %15 = vector.broadcast %cst_10 : f32 to vector<128x512xf32>
    %16 = arith.maximumf %14, %15 : vector<128x512xf32>
    %17 = arith.truncf %16 : vector<128x512xf32> to vector<128x512xbf16>
    %c0_11 = arith.constant 0 : index
    %c0_12 = arith.constant 0 : index
    %18 = vector.load %arg6[%c0_11, %c0_12] : memref<512x256xbf16, #tpu.memory_space<vmem>>, vector<512x256xbf16>
    %cst_13 = arith.constant dense<0.000000e+00> : vector<128x256xf32>
    %19 = tpu.matmul %17, %18, %cst_13 {dimension_numbers = #tpu.dot_dimension_numbers<[1], [0], [0], [1], [0, 0, 1, 1], [], []>} : vector<128x512xbf16>, vector<512x256xbf16>, vector<128x256xf32> -> vector<128x256xf32>
    %c0_14 = arith.constant 0 : index
    %c0_15 = arith.constant 0 : index
    %20 = vector.load %arg7[%c0_14, %c0_15] : memref<1x256xf32, #tpu.memory_space<vmem>>, vector<1x256xf32>
    %21 = vector.broadcast %20 : vector<1x256xf32> to vector<128x256xf32>
    %22 = arith.addf %19, %21 : vector<128x256xf32>
    %cst_16 = arith.constant 0.000000e+00 : f32
    %23 = vector.broadcast %cst_16 : f32 to vector<128x256xf32>
    %24 = arith.maximumf %22, %23 : vector<128x256xf32>
    %25 = arith.truncf %24 : vector<128x256xf32> to vector<128x256xbf16>
    %c0_17 = arith.constant 0 : index
    %c0_18 = arith.constant 0 : index
    %26 = vector.load %arg8[%c0_17, %c0_18] : memref<256x128xbf16, #tpu.memory_space<vmem>>, vector<256x128xbf16>
    %cst_19 = arith.constant dense<0.000000e+00> : vector<128x128xf32>
    %27 = tpu.matmul %25, %26, %cst_19 {dimension_numbers = #tpu.dot_dimension_numbers<[1], [0], [0], [1], [0, 0, 1, 1], [], []>} : vector<128x256xbf16>, vector<256x128xbf16>, vector<128x128xf32> -> vector<128x128xf32>
    %c0_20 = arith.constant 0 : index
    %c0_21 = arith.constant 0 : index
    %28 = vector.load %arg9[%c0_20, %c0_21] : memref<1x128xf32, #tpu.memory_space<vmem>>, vector<1x128xf32>
    %29 = vector.broadcast %28 : vector<1x128xf32> to vector<128x128xf32>
    %30 = arith.addf %27, %29 : vector<128x128xf32>
    %cst_22 = arith.constant 0.000000e+00 : f32
    %31 = vector.broadcast %cst_22 : f32 to vector<128x128xf32>
    %32 = arith.maximumf %30, %31 : vector<128x128xf32>
    %c0_23 = arith.constant 0 : index
    %c0_24 = arith.constant 0 : index
    %33 = vector.load %arg10[%c0_23, %c0_24] : memref<1x128xf32, #tpu.memory_space<vmem>>, vector<1x128xf32>
    %34 = vector.broadcast %33 : vector<1x128xf32> to vector<128x128xf32>
    %35 = arith.mulf %32, %34 : vector<128x128xf32>
    %cst_25 = arith.constant dense<0.000000e+00> : vector<128xf32>
    %36 = vector.multi_reduction <add>, %35, %cst_25 [1] : vector<128x128xf32> to vector<128xf32>
    %37 = vector.shape_cast %36 : vector<128xf32> to vector<128x1xf32>
    %c0_26 = arith.constant 0 : index
    %c0_27 = arith.constant 0 : index
    %38 = vector.load %arg11[%c0_26, %c0_27] : memref<1x1xf32, #tpu.memory_space<vmem>>, vector<1x1xf32>
    %39 = vector.broadcast %38 : vector<1x1xf32> to vector<128x1xf32>
    %40 = arith.addf %37, %39 : vector<128x1xf32>
    %c0_28 = arith.constant 0 : index
    %c0_29 = arith.constant 0 : index
    %41 = vector.load %arg12[%c0_28, %c0_29] : memref<128x1xf32, #tpu.memory_space<vmem>>, vector<128x1xf32>
    tpu.vector_store %arg12[%c0_28, %c0_29], %40 {strides = array<i32>} : memref<128x1xf32, #tpu.memory_space<vmem>>, vector<128x1xf32>,
    return
  }
  func.func @transform_0(%arg0: i32) -> (i32, i32) {
    %c0_i32 = arith.constant 0 : i32
    %c0_i32_0 = arith.constant 0 : i32
    return %arg0, %c0_i32 : i32, i32
  }
  func.func @transform_1(%arg0: i32) -> (i32, i32) {
    %c0_i32 = arith.constant 0 : i32
    %c0_i32_0 = arith.constant 0 : i32
    %c0_i32_1 = arith.constant 0 : i32
    return %c0_i32, %c0_i32_0 : i32, i32
  }
  func.func @transform_2(%arg0: i32) -> (i32, i32) {
    %c0_i32 = arith.constant 0 : i32
    %c0_i32_0 = arith.constant 0 : i32
    %c0_i32_1 = arith.constant 0 : i32
    return %c0_i32, %c0_i32_0 : i32, i32
  }
  func.func @transform_3(%arg0: i32) -> (i32, i32) {
    %c0_i32 = arith.constant 0 : i32
    %c0_i32_0 = arith.constant 0 : i32
    %c0_i32_1 = arith.constant 0 : i32
    return %c0_i32, %c0_i32_0 : i32, i32
  }
  func.func @transform_4(%arg0: i32) -> (i32, i32) {
    %c0_i32 = arith.constant 0 : i32
    %c0_i32_0 = arith.constant 0 : i32
    %c0_i32_1 = arith.constant 0 : i32
    return %c0_i32, %c0_i32_0 : i32, i32
  }
  func.func @transform_5(%arg0: i32) -> (i32, i32) {
    %c0_i32 = arith.constant 0 : i32
    %c0_i32_0 = arith.constant 0 : i32
    %c0_i32_1 = arith.constant 0 : i32
    return %c0_i32, %c0_i32_0 : i32, i32
  }
  func.func @transform_6(%arg0: i32) -> (i32, i32) {
    %c0_i32 = arith.constant 0 : i32
    %c0_i32_0 = arith.constant 0 : i32
    %c0_i32_1 = arith.constant 0 : i32
    return %c0_i32, %c0_i32_0 : i32, i32
  }
  func.func @transform_7(%arg0: i32) -> (i32, i32) {
    %c0_i32 = arith.constant 0 : i32
    %c0_i32_0 = arith.constant 0 : i32
    %c0_i32_1 = arith.constant 0 : i32
    return %c0_i32, %c0_i32_0 : i32, i32
  }
  func.func @transform_8(%arg0: i32) -> (i32, i32) {
    %c0_i32 = arith.constant 0 : i32
    %c0_i32_0 = arith.constant 0 : i32
    %c0_i32_1 = arith.constant 0 : i32
    return %c0_i32, %c0_i32_0 : i32, i32
  }
  func.func @transform_9(%arg0: i32) -> (i32, i32) {
    %c0_i32 = arith.constant 0 : i32
    %c0_i32_0 = arith.constant 0 : i32
    %c0_i32_1 = arith.constant 0 : i32
    return %c0_i32, %c0_i32_0 : i32, i32
  }
  func.func @transform_10(%arg0: i32) -> (i32, i32) {
    %c0_i32 = arith.constant 0 : i32
    %c0_i32_0 = arith.constant 0 : i32
    %c0_i32_1 = arith.constant 0 : i32
    return %c0_i32, %c0_i32_0 : i32, i32
  }
  func.func @transform_11(%arg0: i32) -> (i32, i32) {
    %c0_i32 = arith.constant 0 : i32
    %c0_i32_0 = arith.constant 0 : i32
    return %arg0, %c0_i32 : i32, i32
  }
}

</mosaic_0001>

<bundles_post_ra>
// kernel: tpu_custom_call.1
= control target key start
LH: loop header
LB: loop body
LE: loop exit
PB: predicated region body
PF: predicated region fallthrough
CT: control target
= control target key end

     0   :  { %s6856_s0 = inlined_call_operand.hbm [shape: f32[128,1024], index: 0, kind: input, shape index: {}]   ;;  %s6857_s1 = inlined_call_operand.hbm [shape: f32[1,1024], index: 1, kind: input, shape index: {}]   ;;  %s6858_s2 = inlined_call_operand.hbm [shape: f32[1,1024], index: 2, kind: input, shape index: {}]   ;;  %s6859_s3 = inlined_call_operand.hbm [shape: bf16[1024,512], index: 3, kind: input, shape index: {}]   ;;  %s6860_s4 = inlined_call_operand.hbm [shape: f32[1,512], index: 4, kind: input, shape index: {}]   ;;  %s6861_s5 = inlined_call_operand.hbm [shape: bf16[512,256], index: 5, kind: input, shape index: {}]   ;;  %s6862_s6 = inlined_call_operand.hbm [shape: f32[1,256], index: 6, kind: input, shape index: {}]   ;;  %s6863_s7 = inlined_call_operand.hbm [shape: bf16[256,128], index: 7, kind: input, shape index: {}]   ;;  %s6864_s8 = inlined_call_operand.hbm [shape: f32[1,128], index: 8, kind: input, shape index: {}]   ;;  %s6865_s9 = inlined_call_operand.hbm [shape: f32[1,128], index: 9, kind: input, shape index: {}]   ;;  %s6866_s10 = inlined_call_operand.<no memory space> [shape: f32[1,1], index: 10, kind: input, shape index: {}]   ;;  %s6867_s11 = inlined_call_operand.hbm [shape: f32[128,1], index: 11, kind: output, shape index: {}]  }
   0x1   :  { %v16_v0 = vstv %s6866_s10 }
   0x2   :  { %17 = vst [vmem:[#allocation2] sm:$0x1] %v16_v0 }
   0x3   :  { %18 = vsyncpa [#allocation4], 0 }
   0x4   :  { %19 = vsyncpa [#allocation7], 0 }
   0x5   :  { %20 = vsyncpa [#allocation10], 0 }
   0x6   :  { %21 = vsyncpa [#allocation13], 0 }
   0x7   :  { %22 = vsyncpa [#allocation16], 0 }
   0x8   :  { %23 = vsyncpa [#allocation19], 0 }
   0x9   :  { %24 = vsyncpa [#allocation5], 0  ;;  %s5946_s19 = smov [#allocation6]   ;;  %s5947_s21 = smov [#allocation9]  }
   0xa   :  { %s43_s20 = sshll.u32 %s5946_s19, 4  ;;  %s62_s22 = sshll.u32 %s5947_s21, 4  ;;  %s44_s20 = int_to_ptr.vmem [resolvable:$true] %s43_s20  ;;  %s6027_s22 = int_to_ptr.vmem [resolvable:$true] %s62_s22 }
   0xb   :  { %s5690_s25 = scalar_lea.hbm %s6857_s1, 128 }
   0xc   :  { %p5691_p0 = scmp.ne.s32.totalorder %s6857_s1, %s5690_s25  ;;  %p5694_p1 = scmp.lt.u32.totalorder %s5690_s25, %s6857_s1 }
   0xe   :  { %p5696_p2 = pnand %p5694_p1, %p5691_p0 }
  0x10   :  { %5699 = shalt.err (!%p5696_p2)
}
  0x11   :  { %s5700_s29 = scalar_lea.vmem %s44_s20, 128  ;;  %p5705_p4 = scmp.lt.s32.totalorder %s44_s20, %s44_s20 }
  0x12   :  { %p5701_p3 = scmp.ne.s32.totalorder %s44_s20, %s5700_s29  ;;  %p5706_p5 = scmp.lt.s32.totalorder %s5700_s29, %s5700_s29 }
  0x14   :  { %p5707_p6 = por %p5706_p5, %p5705_p4 }
  0x16   :  { %p5708_p7 = pnand %p5707_p6, %p5701_p3 }
  0x18   :  { %5711 = shalt.err (!%p5708_p7)
}
  0x19   :  { %46 = dma.hbm_to_vmem [thread:$0]  %s6857_s1, 128, %s44_s20, [#allocation7]  }
  0x1a   :  { %s5712_s15 = scalar_lea.hbm %s6859_s3, 32768 }
  0x1b   :  { %p5713_p8 = scmp.ne.s32.totalorder %s6859_s3, %s5712_s15  ;;  %p5716_p9 = scmp.lt.u32.totalorder %s5712_s15, %s6859_s3 }
  0x1d   :  { %p5718_p10 = pnand %p5716_p9, %p5713_p8 }
  0x1f   :  { %5721 = shalt.err (!%p5718_p10)
}
  0x20   :  { %s5722_s21 = scalar_lea.vmem %s6027_s22, 32768  ;;  %p5727_p12 = scmp.lt.s32.totalorder %s6027_s22, %s6027_s22 }
  0x21   :  { %p5723_p11 = scmp.ne.s32.totalorder %s6027_s22, %s5722_s21  ;;  %p5728_p13 = scmp.lt.s32.totalorder %s5722_s21, %s5722_s21 }
  0x23   :  { %p5729_p0 = por %p5728_p13, %p5727_p12 }
  0x25   :  { %p5730_p1 = pnand %p5729_p0, %p5723_p11 }
  0x27   :  { %5733 = shalt.err (!%p5730_p1)
}
  0x28   :  { %s5948_s1 = smov 256   ;;  %s5949_s20 = smov 16  }
  0x29   :  { %68 = dma.hbm_to_vmem [thread:$0]  %s6859_s3, 32768, %s6027_s22, [#allocation10], %s5948_s1, %s5948_s1, %s5949_s20  }
  0x2a   :  { %s5950_s25 = smov [#allocation12]   ;;  %s5734_s28 = scalar_lea.hbm %s6861_s5, 8192 }
  0x2b   :  { %s84_s10 = sshll.u32 %s5950_s25, 4  ;;  %p5735_p2 = scmp.ne.s32.totalorder %s6861_s5, %s5734_s28  ;;  %s85_s10 = int_to_ptr.vmem [resolvable:$true] %s84_s10 }
  0x2c   :  { %p5738_p3 = scmp.lt.u32.totalorder %s5734_s28, %s6861_s5 }
  0x2e   :  { %p5740_p4 = pnand %p5738_p3, %p5735_p2 }
  0x30   :  { %5743 = shalt.err (!%p5740_p4)
}
  0x31   :  { %s5744_s14 = scalar_lea.vmem %s85_s10, 8192  ;;  %p5749_p6 = scmp.lt.s32.totalorder %s85_s10, %s85_s10 }
  0x32   :  { %p5745_p5 = scmp.ne.s32.totalorder %s85_s10, %s5744_s14  ;;  %p5750_p7 = scmp.lt.s32.totalorder %s5744_s14, %s5744_s14 }
  0x34   :  { %p5751_p8 = por %p5750_p7, %p5749_p6 }
  0x36   :  { %p5752_p9 = pnand %p5751_p8, %p5745_p5 }
  0x38   :  { %5755 = shalt.err (!%p5752_p9)
}
  0x39   :  { %s5951_s3 = smov 128   ;;  %s5952_s22 = smov 8  }
  0x3a   :  { %90 = dma.hbm_to_vmem [thread:$0]  %s6861_s5, 8192, %s85_s10, [#allocation13], %s5951_s3, %s5951_s3, %s5952_s22  }
  0x3b   :  { %s5953_s17 = smov [#allocation15]   ;;  %s5954_s19 = smov [#allocation3]  }
  0x3c   :  { %s106_s18 = sshll.u32 %s5953_s17, 4  ;;  %s30_s21 = sshll.u32 %s5954_s19, 4  ;;  %s107_s18 = int_to_ptr.vmem [resolvable:$true] %s106_s18  ;;  %s31_s21 = int_to_ptr.vmem [resolvable:$true] %s30_s21 }
  0x3d   :  { %s5756_s23 = scalar_lea.hbm %s6863_s7, 2048 }
  0x3e   :  { %p5757_p10 = scmp.ne.s32.totalorder %s6863_s7, %s5756_s23  ;;  %p5760_p11 = scmp.lt.u32.totalorder %s5756_s23, %s6863_s7 }
  0x40   :  { %p5762_p12 = pnand %p5760_p11, %p5757_p10 }
  0x42   :  { %5765 = shalt.err (!%p5762_p12)
}
  0x43   :  { %s5766_s5 = scalar_lea.vmem %s107_s18, 2048  ;;  %p5771_p0 = scmp.lt.s32.totalorder %s107_s18, %s107_s18 }
  0x44   :  { %p5767_p13 = scmp.ne.s32.totalorder %s107_s18, %s5766_s5  ;;  %p5772_p1 = scmp.lt.s32.totalorder %s5766_s5, %s5766_s5 }
  0x46   :  { %p5773_p2 = por %p5772_p1, %p5771_p0 }
  0x48   :  { %p5774_p3 = pnand %p5773_p2, %p5767_p13 }
  0x4a   :  { %5777 = shalt.err (!%p5774_p3)
}
  0x4b   :  { %s5955_s10 = smov 64   ;;  %s5956_s28 = smov 4  }
  0x4c   :  { %112 = dma.hbm_to_vmem [thread:$0]  %s6863_s7, 2048, %s107_s18, [#allocation16], %s5955_s10, %s5955_s10, %s5956_s28  }
  0x4d   :  { %s5778_s14 = scalar_lea.hbm %s6856_s0, 16384 }
  0x4e   :  { %p5779_p4 = scmp.ne.s32.totalorder %s6856_s0, %s5778_s14  ;;  %p5782_p5 = scmp.lt.u32.totalorder %s5778_s14, %s6856_s0 }
  0x50   :  { %p5784_p6 = pnand %p5782_p5, %p5779_p4 }
  0x52   :  { %5787 = shalt.err (!%p5784_p6)
}
  0x53   :  { %s5788_s1 = scalar_lea.vmem %s31_s21, 16384  ;;  %p5793_p8 = scmp.lt.s32.totalorder %s31_s21, %s31_s21 }
  0x54   :  { %p5789_p7 = scmp.ne.s32.totalorder %s31_s21, %s5788_s1  ;;  %p5794_p9 = scmp.lt.s32.totalorder %s5788_s1, %s5788_s1 }
  0x56   :  { %p5795_p10 = por %p5794_p9, %p5793_p8 }
  0x58   :  { %p5796_p11 = pnand %p5795_p10, %p5789_p7 }
  0x5a   :  { %5799 = shalt.err (!%p5796_p11)
}
  0x5b   :  { %s5957_s7 = smov 1024   ;;  %s5958_s23 = smov [#allocation8]  }
  0x5c   :  { %36 = dma.hbm_to_vmem [thread:$0]  %s6856_s0, 16384, %s31_s21, [#allocation4], %s5957_s7, %s5957_s7, %s5955_s10  }
  0x5d   :  { %s53_s24 = sshll.u32 %s5958_s23, 4  ;;  %s5959_s25 = smov [#allocation11]   ;;  %s54_s24 = int_to_ptr.vmem [resolvable:$true] %s53_s24 }
  0x5e   :  { %s75_s26 = sshll.u32 %s5959_s25, 4  ;;  %s5800_s28 = scalar_lea.hbm %s6858_s2, 128  ;;  %s76_s26 = int_to_ptr.vmem [resolvable:$true] %s75_s26 }
  0x5f   :  { %p5801_p12 = scmp.ne.s32.totalorder %s6858_s2, %s5800_s28  ;;  %p5804_p13 = scmp.lt.u32.totalorder %s5800_s28, %s6858_s2 }
  0x61   :  { %p5806_p0 = pnand %p5804_p13, %p5801_p12 }
  0x63   :  { %5809 = shalt.err (!%p5806_p0)
}
  0x64   :  { %s5810_s0 = scalar_lea.vmem %s54_s24, 128  ;;  %p5815_p2 = scmp.lt.s32.totalorder %s54_s24, %s54_s24 }
  0x65   :  { %p5811_p1 = scmp.ne.s32.totalorder %s54_s24, %s5810_s0  ;;  %p5816_p3 = scmp.lt.s32.totalorder %s5810_s0, %s5810_s0 }
  0x67   :  { %p5817_p4 = por %p5816_p3, %p5815_p2 }
  0x69   :  { %p5818_p5 = pnand %p5817_p4, %p5811_p1 }
  0x6b   :  { %5821 = shalt.err (!%p5818_p5)
}
  0x6c   :  { %56 = dma.hbm_to_vmem [thread:$0]  %s6858_s2, 128, %s54_s24, [#allocation7]  }
  0x6d   :  { %s5822_s16 = scalar_lea.hbm %s6860_s4, 64 }
  0x6e   :  { %p5823_p6 = scmp.ne.s32.totalorder %s6860_s4, %s5822_s16  ;;  %p5826_p7 = scmp.lt.u32.totalorder %s5822_s16, %s6860_s4 }
  0x70   :  { %p5828_p8 = pnand %p5826_p7, %p5823_p6 }
  0x72   :  { %5831 = shalt.err (!%p5828_p8)
}
  0x73   :  { %s5832_s18 = scalar_lea.vmem %s76_s26, 64  ;;  %p5837_p10 = scmp.lt.s32.totalorder %s76_s26, %s76_s26 }
  0x74   :  { %p5833_p9 = scmp.ne.s32.totalorder %s76_s26, %s5832_s18  ;;  %p5838_p11 = scmp.lt.s32.totalorder %s5832_s18, %s5832_s18 }
  0x76   :  { %p5839_p12 = por %p5838_p11, %p5837_p10 }
  0x78   :  { %p5840_p13 = pnand %p5839_p12, %p5833_p9 }
  0x7a   :  { %5843 = shalt.err (!%p5840_p13)
}
  0x7b   :  { %78 = dma.hbm_to_vmem [thread:$0]  %s6860_s4, 64, %s76_s26, [#allocation10]  }
  0x7c   :  { %s5960_s23 = smov [#allocation14]   ;;  %s5961_s25 = smov [#allocation17]  }
  0x7d   :  { %s97_s24 = sshll.u32 %s5960_s23, 4  ;;  %s119_s27 = sshll.u32 %s5961_s25, 4  ;;  %s98_s24 = int_to_ptr.vmem [resolvable:$true] %s97_s24  ;;  %s120_s27 = int_to_ptr.vmem [resolvable:$true] %s119_s27 }
  0x7e   :  { %s5844_s29 = scalar_lea.hbm %s6862_s6, 32 }
  0x7f   :  { %p5845_p0 = scmp.ne.s32.totalorder %s6862_s6, %s5844_s29  ;;  %p5848_p1 = scmp.lt.u32.totalorder %s5844_s29, %s6862_s6 }
  0x81   :  { %p5850_p2 = pnand %p5848_p1, %p5845_p0 }
  0x83   :  { %5853 = shalt.err (!%p5850_p2)
}
  0x84   :  { %s5854_s4 = scalar_lea.vmem %s98_s24, 32  ;;  %p5859_p4 = scmp.lt.s32.totalorder %s98_s24, %s98_s24 }
  0x85   :  { %p5855_p3 = scmp.ne.s32.totalorder %s98_s24, %s5854_s4  ;;  %p5860_p5 = scmp.lt.s32.totalorder %s5854_s4, %s5854_s4 }
  0x87   :  { %p5861_p6 = por %p5860_p5, %p5859_p4 }
  0x89   :  { %p5862_p7 = pnand %p5861_p6, %p5855_p3 }
  0x8b   :  { %5865 = shalt.err (!%p5862_p7)
}
  0x8c   :  { %100 = dma.hbm_to_vmem [thread:$0]  %s6862_s6, 32, %s98_s24, [#allocation13]  }
  0x8d   :  { %s5866_s15 = scalar_lea.hbm %s6864_s8, 16 }
  0x8e   :  { %p5867_p8 = scmp.ne.s32.totalorder %s6864_s8, %s5866_s15  ;;  %p5870_p9 = scmp.lt.u32.totalorder %s5866_s15, %s6864_s8 }
  0x90   :  { %p5872_p10 = pnand %p5870_p9, %p5867_p8 }
  0x92   :  { %5875 = shalt.err (!%p5872_p10)
}
  0x93   :  { %s5876_s7 = scalar_lea.vmem %s120_s27, 16  ;;  %s5880_s18 = scalar_lea.vmem %s120_s27, 32 }
  0x94   :  { %p5877_p11 = scmp.ne.s32.totalorder %s120_s27, %s5876_s7  ;;  %p5881_p12 = scmp.lt.s32.totalorder %s120_s27, %s120_s27 }
  0x95   :  { %p5882_p13 = scmp.lt.s32.totalorder %s5880_s18, %s5876_s7 }
  0x97   :  { %p5883_p0 = por %p5882_p13, %p5881_p12 }
  0x99   :  { %p5884_p1 = pnand %p5883_p0, %p5877_p11 }
  0x9b   :  { %5887 = shalt.err (!%p5884_p1)
}
  0x9c   :  { %122 = dma.hbm_to_vmem [thread:$0]  %s6864_s8, 16, %s120_s27, [#allocation16]  }
  0x9d   :  { %s5962_s20 = smov [#allocation18]   ;;  %s5888_s5 = scalar_lea.hbm %s6865_s9, 16 }
  0x9e   :  { %s129_s23 = sshll.u32 %s5962_s20, 4  ;;  %p5889_p2 = scmp.ne.s32.totalorder %s6865_s9, %s5888_s5  ;;  %s130_s23 = int_to_ptr.vmem [resolvable:$true] %s129_s23 }
  0x9f   :  { %p5892_p3 = scmp.lt.u32.totalorder %s5888_s5, %s6865_s9 }
  0xa1   :  { %p5894_p4 = pnand %p5892_p3, %p5889_p2 }
  0xa3   :  { %5897 = shalt.err (!%p5894_p4)
}
  0xa4   :  { %s5898_s13 = scalar_lea.vmem %s130_s23, 16  ;;  %s5902_s8 = scalar_lea.vmem %s130_s23, 32 }
  0xa5   :  { %p5899_p5 = scmp.ne.s32.totalorder %s130_s23, %s5898_s13  ;;  %p5903_p6 = scmp.lt.s32.totalorder %s130_s23, %s130_s23 }
  0xa6   :  { %p5904_p7 = scmp.lt.s32.totalorder %s5902_s8, %s5898_s13 }
  0xa8   :  { %p5905_p8 = por %p5904_p7, %p5903_p6 }
  0xaa   :  { %p5906_p9 = pnand %p5905_p8, %p5899_p5 }
  0xac   :  { %5909 = shalt.err (!%p5906_p9)
}
  0xad   :  { %132 = dma.hbm_to_vmem [thread:$0]  %s6865_s9, 16, %s130_s23, [#allocation19]  }
  0xae   :  { %5932 = dma.done.wait [#allocation4], 16384  }
  0xaf   :  { %5933 = vsyncadd [#allocation4], 4294950912 }
  0xb0   :  { %5934 = dma.done.wait [#allocation7], 256  }
  0xb1   :  { %5935 = vsyncadd [#allocation7], 4294967040 }
  0xb2   :  { %5936 = dma.done.wait [#allocation10], 32832  }
  0xb3   :  { %5937 = vsyncadd [#allocation10], 4294934464 }
  0xb4   :  { %5938 = dma.done.wait [#allocation13], 8224  }
  0xb5   :  { %5939 = vsyncadd [#allocation13], 4294959072 }
  0xb6   :  { %5940 = dma.done.wait [#allocation16], 2064  }
  0xb7   :  { %5941 = vsyncadd [#allocation16], 4294965232 }
  0xb8   :  { %5942 = dma.done.wait [#allocation19], 16  }
  0xb9   :  { %5943 = vsyncadd [#allocation19], 4294967280  ;;  %v5192_v1 = vld [vmem:[#allocation9 + $0x4] ss:$16 sps:$4 sm:$0xff]   ;;  %v5194_v2 = vld [vmem:[#allocation9 + $0xc] ss:$16 sps:$4 sm:$0xff]   ;;  %v296_v38 = vlaneseq }
  0xba   :  { %2384 = vmatprep.subr.bf16.mxu0 %v5192_v1  ;;  %v5196_v3 = vld [vmem:[#allocation9] ss:$16 sps:$4 sm:$0xff]   ;;  %v5197_v4 = vld [vmem:[#allocation9 + $0x8] ss:$16 sps:$4 sm:$0xff]   ;;  %2836 = vmatprep.subr.bf16.mxu1 %v5194_v2  ;;  %v5198_v5 = vld [vmem:[#allocation9 + $0x24] ss:$16 sps:$4 sm:$0xff]  }
  0xbb   :  { %2385 = vmatpush1.bf16.msra.mxu0 %v5196_v3  ;;  %2837 = vmatpush1.bf16.msra.mxu1 %v5197_v4  ;;  %v5200_v6 = vld [vmem:[#allocation9 + $0x2c] ss:$16 sps:$4 sm:$0xff]   ;;  %v5202_v7 = vld [vmem:[#allocation9 + $0x20] ss:$16 sps:$4 sm:$0xff]   ;;  %v5203_v8 = vld [vmem:[#allocation9 + $0x28] ss:$16 sps:$4 sm:$0xff]  }
  0xbc   :  { %2386 = vmatprep.subr.bf16.mxu0 %v5198_v5  ;;  %2838 = vmatprep.subr.bf16.mxu1 %v5200_v6  ;;  %v5204_v9 = vld [vmem:[#allocation9 + $0x44] ss:$16 sps:$4 sm:$0xff]   ;;  %v5206_v10 = vld [vmem:[#allocation9 + $0x4c] ss:$16 sps:$4 sm:$0xff]   ;;  %v5208_v11 = vld [vmem:[#allocation9 + $0x40] ss:$16 sps:$4 sm:$0xff]  }
  0xbd   :  { %v5209_v12 = vld [vmem:[#allocation9 + $0x48] ss:$16 sps:$4 sm:$0xff]   ;;  %v5210_v13 = vld [vmem:[#allocation9 + $0x64] ss:$16 sps:$4 sm:$0xff]   ;;  %v5212_v14 = vld [vmem:[#allocation9 + $0x6c] ss:$16 sps:$4 sm:$0xff]  }
  0xbe   :  { %v5214_v15 = vld [vmem:[#allocation9 + $0x60] ss:$16 sps:$4 sm:$0xff]   ;;  %v5215_v16 = vld [vmem:[#allocation9 + $0x68] ss:$16 sps:$4 sm:$0xff]   ;;  %v5216_v17 = vld [vmem:[#allocation9 + $0x84] ss:$16 sps:$4 sm:$0xff]  }
  0xbf   :  { %2387 = vmatpush1.bf16.msra.mxu0 %v5202_v7  ;;  %2839 = vmatpush1.bf16.msra.mxu1 %v5203_v8  ;;  %v5218_v18 = vld [vmem:[#allocation9 + $0x8c] ss:$16 sps:$4 sm:$0xff]   ;;  %v5220_v19 = vld [vmem:[#allocation9 + $0x80] ss:$16 sps:$4 sm:$0xff]   ;;  %v5221_v20 = vld [vmem:[#allocation9 + $0x88] ss:$16 sps:$4 sm:$0xff]  }
  0xc0   :  { %2388 = vmatprep.subr.bf16.mxu0 %v5204_v9  ;;  %2840 = vmatprep.subr.bf16.mxu1 %v5206_v10  ;;  %v5222_v21 = vld [vmem:[#allocation9 + $0xa4] ss:$16 sps:$4 sm:$0xff]   ;;  %v5224_v22 = vld [vmem:[#allocation9 + $0xac] ss:$16 sps:$4 sm:$0xff]   ;;  %v5226_v23 = vld [vmem:[#allocation9 + $0xa0] ss:$16 sps:$4 sm:$0xff]  }
  0xc1   :  { %v5227_v24 = vld [vmem:[#allocation9 + $0xa8] ss:$16 sps:$4 sm:$0xff]   ;;  %v5228_v25 = vld [vmem:[#allocation9 + $0xc4] ss:$16 sps:$4 sm:$0xff]   ;;  %v5230_v26 = vld [vmem:[#allocation9 + $0xcc] ss:$16 sps:$4 sm:$0xff]  }
  0xc2   :  { %v5232_v27 = vld [vmem:[#allocation9 + $0xc0] ss:$16 sps:$4 sm:$0xff]   ;;  %v5233_v28 = vld [vmem:[#allocation9 + $0xc8] ss:$16 sps:$4 sm:$0xff]   ;;  %v5234_v29 = vld [vmem:[#allocation9 + $0xe4] ss:$16 sps:$4 sm:$0xff]  }
  0xc3   :  { %2389 = vmatpush1.bf16.msra.mxu0 %v5208_v11  ;;  %2841 = vmatpush1.bf16.msra.mxu1 %v5209_v12  ;;  %v5236_v30 = vld [vmem:[#allocation9 + $0xec] ss:$16 sps:$4 sm:$0xff]   ;;  %v5238_v31 = vld [vmem:[#allocation9 + $0xe0] ss:$16 sps:$4 sm:$0xff]   ;;  %v5239_v32 = vld [vmem:[#allocation9 + $0xe8] ss:$16 sps:$4 sm:$0xff]  }
  0xc4   :  { %2390 = vmatprep.subr.bf16.mxu0 %v5210_v13  ;;  %2842 = vmatprep.subr.bf16.mxu1 %v5212_v14  ;;  %v5240_v33 = vld [vmem:[#allocation9 + $0x104] ss:$16 sps:$4 sm:$0xff]   ;;  %v5242_v34 = vld [vmem:[#allocation9 + $0x10c] ss:$16 sps:$4 sm:$0xff]   ;;  %v5244_v35 = vld [vmem:[#allocation9 + $0x100] ss:$16 sps:$4 sm:$0xff]  }
  0xc5   :  { %v5245_v36 = vld [vmem:[#allocation9 + $0x108] ss:$16 sps:$4 sm:$0xff]   ;;  %v5246_v37 = vld [vmem:[#allocation9 + $0x124] ss:$16 sps:$4 sm:$0xff]   ;;  %v5248_v39 = vld [vmem:[#allocation9 + $0x12c] ss:$16 sps:$4 sm:$0xff]  }
  0xc6   :  { %v5250_v40 = vld [vmem:[#allocation9 + $0x120] ss:$16 sps:$4 sm:$0xff]   ;;  %v5251_v41 = vld [vmem:[#allocation9 + $0x128] ss:$16 sps:$4 sm:$0xff]   ;;  %v5252_v42 = vld [vmem:[#allocation9 + $0x144] ss:$16 sps:$4 sm:$0xff]  }
  0xc7   :  { %2391 = vmatpush1.bf16.msra.mxu0 %v5214_v15  ;;  %2843 = vmatpush1.bf16.msra.mxu1 %v5215_v16  ;;  %v6157_v43 = vshrl.u32 %v296_v38, 7  ;;  %v5254_v44 = vld [vmem:[#allocation9 + $0x14c] ss:$16 sps:$4 sm:$0xff]   ;;  %v5256_v45 = vld [vmem:[#allocation9 + $0x140] ss:$16 sps:$4 sm:$0xff]   ;;  %vm4380_vm0 = vcmask 7168  }
  0xc8   :  { %2392 = vmatprep.subr.bf16.mxu0 %v5216_v17  ;;  %2844 = vmatprep.subr.bf16.mxu1 %v5218_v18  ;;  %v5257_v46 = vld [vmem:[#allocation9 + $0x148] ss:$16 sps:$4 sm:$0xff]   ;;  %v5258_v47 = vld [vmem:[#allocation9 + $0x164] ss:$16 sps:$4 sm:$0xff]   ;;  %v5260_v49 = vld [vmem:[#allocation9 + $0x16c] ss:$16 sps:$4 sm:$0xff]  }
  0xc9   :  { %v6160_v48 = vsub.s32 1, %v6157_v43  ;;  %v167_v50 = vld [vmem:[#allocation3 + $0x8] sm:$0xff]  ;;  %v6162_v52 = vld [vmem:[#allocation6] sm:$0xff]  ;;  %v6167_v54 = vsub.s32 0, %v6157_v43  ;;  %s5963_s9 = smov [#allocation20]  }
  0xca   :  { %v175_v51 = vld [vmem:[#allocation3 + $0x48] sm:$0xff]  ;;  %v5262_v55 = vld [vmem:[#allocation9 + $0x160] ss:$16 sps:$4 sm:$0xff]   ;;  %v5264_v59 = vld [vmem:[#allocation9 + $0x184] ss:$16 sps:$4 sm:$0xff]   ;;  %s4402_s4 = sshll.u32 %s5963_s9, 4  ;;  %s4403_s4 = int_to_ptr.vmem [resolvable:$true] %s4402_s4 }
  0xcb   :  { %2393 = vmatpush1.bf16.msra.mxu0 %v5220_v19  ;;  %2845 = vmatpush1.bf16.msra.mxu1 %v5221_v20  ;;  %v6164_v53 = vld [vmem:[#allocation8] sm:$0xff]  ;;  %v6171_v57 = vrot.slane %v6162_v52, %v6160_v48  ;;  %v5268_v61 = vld [vmem:[#allocation9 + $0x180] ss:$16 sps:$4 sm:$0xff]   ;;  %v6181_v1 = vrot.slane %v6162_v52, %v6167_v54  ;;  %v5270_v6 = vld [vmem:[#allocation9 + $0x1a4] ss:$16 sps:$4 sm:$0xff]   ;;  %s5910_s26 = scalar_lea.vmem %s4403_s4, 2048  ;;  %p5915_p11 = scmp.lt.s32.totalorder %s4403_s4, %s4403_s4 }
  0xcc   :  { %2394 = vmatprep.subr.bf16.mxu0 %v5222_v21  ;;  %2846 = vmatprep.subr.bf16.mxu1 %v5224_v22  ;;  %v5263_v56 = vld [vmem:[#allocation9 + $0x168] ss:$16 sps:$4 sm:$0xff]   ;;  %v6175_v58 = vrot.slane %v6164_v53, %v6160_v48  ;;  %v5266_v60 = vld [vmem:[#allocation9 + $0x18c] ss:$16 sps:$4 sm:$0xff]   ;;  %v166_v4 = vld [vmem:[#allocation3] sm:$0xff]  ;;  %v6189_v13 = vrot.slane %v6164_v53, %v6167_v54  ;;  %p5911_p10 = scmp.ne.s32.totalorder %s4403_s4, %s5910_s26  ;;  %p5916_p12 = scmp.lt.s32.totalorder %s5910_s26, %s5910_s26 }
  0xcd   :  { %v337_v62 = vmul.f32 %v6171_v57, %v167_v50  ;;  %v345_v63 = vmul.f32 %v6171_v57, %v175_v51  ;;  %v5269_v0 = vld [vmem:[#allocation9 + $0x188] ss:$16 sps:$4 sm:$0xff]   ;;  %v174_v5 = vld [vmem:[#allocation3 + $0x40] sm:$0xff]  ;;  %v5272_v7 = vld [vmem:[#allocation9 + $0x1ac] ss:$16 sps:$4 sm:$0xff]   ;;  %v336_v11 = vmul.f32 %v6181_v1, %v166_v4 }
  0xce   :  { %v183_v10 = vld [vmem:[#allocation3 + $0x88] sm:$0xff]  ;;  %v344_v12 = vmul.f32 %v6181_v1, %v174_v5  ;;  %v5274_v15 = vld [vmem:[#allocation9 + $0x1a0] ss:$16 sps:$4 sm:$0xff]   ;;  %v5276_v18 = vld [vmem:[#allocation9 + $0x1c4] ss:$16 sps:$4 sm:$0xff]   ;;  %p5917_p13 = por %p5916_p12, %p5915_p11 }
  0xcf   :  { %2395 = vmatpush1.bf16.msra.mxu0 %v5226_v23  ;;  %2847 = vmatpush1.bf16.msra.mxu1 %v5227_v24  ;;  %v507_v2 = vadd.f32 %v6175_v58, %v337_v62  ;;  %v515_v3 = vadd.f32 %v6175_v58, %v345_v63  ;;  %v191_v14 = vld [vmem:[#allocation3 + $0xc8] sm:$0xff]  ;;  %v353_v20 = vmul.f32 %v6171_v57, %v183_v10  ;;  %v5280_v22 = vld [vmem:[#allocation9 + $0x1c0] ss:$16 sps:$4 sm:$0xff]   ;;  %v5302_v10 = vld [vmem:[#allocation9 + $0x244] ss:$16 sps:$4 sm:$0xff]  }
  0xd0   :  { %2396 = vmatprep.subr.bf16.mxu0 %v5228_v25  ;;  %2848 = vmatprep.subr.bf16.mxu1 %v5230_v26  ;;  %v5275_v16 = vld [vmem:[#allocation9 + $0x1a8] ss:$16 sps:$4 sm:$0xff]   ;;  %v5278_v19 = vld [vmem:[#allocation9 + $0x1cc] ss:$16 sps:$4 sm:$0xff]   ;;  %v361_v21 = vmul.f32 %v6171_v57, %v191_v14  ;;  %v506_v23 = vadd.f32 %v6189_v13, %v336_v11  ;;  %v514_v24 = vadd.f32 %v6189_v13, %v344_v12  ;;  %v182_v26 = vld [vmem:[#allocation3 + $0x80] sm:$0xff]  ;;  %p5918_p0 = pnand %p5917_p13, %p5911_p10 }
  0xd1   :  { %v635_v8 = vmax.f32 %v507_v2, 0.0  ;;  %v643_v9 = vmax.f32 %v515_v3, 0.0  ;;  %v5281_v25 = vld [vmem:[#allocation9 + $0x1c8] ss:$16 sps:$4 sm:$0xff]   ;;  %v5294_v62 = vld [vmem:[#allocation9 + $0x220] ss:$16 sps:$4 sm:$0xff]  }
  0xd2   :  { %v207_v38 = vld [vmem:[#allocation3 + $0x148] sm:$0xff] }
  0xd3   :  { %2397 = vmatpush1.bf16.msra.mxu0 %v5232_v27  ;;  %2849 = vmatpush1.bf16.msra.mxu1 %v5233_v28  ;;  %v763_v17 = vpack.c.bf16 %v643_v9, %v635_v8  ;;  %v190_v27 = vld [vmem:[#allocation3 + $0xc0] sm:$0xff]  ;;  %v5291_v50 = vld [vmem:[#allocation9 + $0x208] ss:$16 sps:$4 sm:$0xff]   ;;  %v5305_v11 = vld [vmem:[#allocation9 + $0x24c] ss:$16 sps:$4 sm:$0xff]  }
  0xd4   :  { %2398 = vmatprep.subr.bf16.mxu0 %v5234_v29  ;;  %2850 = vmatprep.subr.bf16.mxu1 %v5236_v30  ;;  %v5282_v28 = vld [vmem:[#allocation9 + $0x1e4] ss:$16 sps:$4 sm:$0xff]   ;;  %v5284_v29 = vld [vmem:[#allocation9 + $0x1ec] ss:$16 sps:$4 sm:$0xff]   ;;  %v5286_v30 = vld [vmem:[#allocation9 + $0x1e0] ss:$16 sps:$4 sm:$0xff]  }
  0xd5   :  { %2416 = vmatprep.mubr.bf16.mxu0 %v763_v17  ;;  %2868 = vmatprep.mubr.bf16.mxu1 %v763_v17  ;;  %v5297_v63 = vld [vmem:[#allocation9 + $0x228] ss:$16 sps:$4 sm:$0xff]  }
  0xd6   :  { %v215_v8 = vld [vmem:[#allocation3 + $0x188] sm:$0xff] }
  0xd7   :  { %2399 = vmatpush1.bf16.msra.mxu0 %v5238_v31  ;;  %2851 = vmatpush1.bf16.msra.mxu1 %v5239_v32  ;;  %v523_v31 = vadd.f32 %v6175_v58, %v353_v20  ;;  %v531_v32 = vadd.f32 %v6175_v58, %v361_v21  ;;  %v223_v9 = vld [vmem:[#allocation3 + $0x1c8] sm:$0xff] }
  0xd8   :  { %2400 = vmatprep.subr.bf16.mxu0 %v5240_v33  ;;  %2852 = vmatprep.subr.bf16.mxu1 %v5242_v34  ;;  %v634_v33 = vmax.f32 %v506_v23, 0.0  ;;  %v642_v34 = vmax.f32 %v514_v24, 0.0  ;;  %v222_v23 = vld [vmem:[#allocation3 + $0x1c0] sm:$0xff] }
  0xd9   :  { %v5308_v24 = vld [vmem:[#allocation9 + $0x264] ss:$16 sps:$4 sm:$0xff]  }
  0xdb   :  { %2401 = vmatpush1.bf16.msra.mxu0 %v5244_v35  ;;  %2853 = vmatpush1.bf16.msra.mxu1 %v5245_v36  ;;  %v352_v35 = vmul.f32 %v6181_v1, %v182_v26  ;;  %v360_v36 = vmul.f32 %v6181_v1, %v190_v27  ;;  %v5306_v26 = vld [vmem:[#allocation9 + $0x260] ss:$16 sps:$4 sm:$0xff]  }
  0xdc   :  { %2402 = vmatprep.subr.bf16.mxu0 %v5246_v37  ;;  %2854 = vmatprep.subr.bf16.mxu1 %v5248_v39  ;;  %v199_v37 = vld [vmem:[#allocation3 + $0x108] sm:$0xff] }
  0xdd   :  { %v5287_v39 = vld [vmem:[#allocation9 + $0x1e8] ss:$16 sps:$4 sm:$0xff]   ;;  %v522_v51 = vadd.f32 %v6189_v13, %v352_v35 }
  0xde   :  { %v239_v35 = vld [vmem:[#allocation3 + $0x248] sm:$0xff] }
  0xdf   :  { %2403 = vmatpush1.bf16.msra.mxu0 %v5250_v40  ;;  %2855 = vmatpush1.bf16.msra.mxu1 %v5251_v41  ;;  %v5290_v40 = vld [vmem:[#allocation9 + $0x204] ss:$16 sps:$4 sm:$0xff]   ;;  %v5293_v41 = vld [vmem:[#allocation9 + $0x20c] ss:$16 sps:$4 sm:$0xff]   ;;  %v650_v4 = vmax.f32 %v522_v51, 0.0 }
  0xe0   :  { %2404 = vmatprep.subr.bf16.mxu0 %v5252_v42  ;;  %2856 = vmatprep.subr.bf16.mxu1 %v5254_v44  ;;  %v651_v42 = vmax.f32 %v523_v31, 0.0  ;;  %v659_v44 = vmax.f32 %v531_v32, 0.0  ;;  %v238_v51 = vld [vmem:[#allocation3 + $0x240] sm:$0xff] }
  0xe3   :  { %2405 = vmatpush1.bf16.msra.mxu0 %v5256_v45  ;;  %2857 = vmatpush1.bf16.msra.mxu1 %v5257_v46  ;;  %v369_v45 = vmul.f32 %v6171_v57, %v199_v37  ;;  %v377_v46 = vmul.f32 %v6171_v57, %v207_v38  ;;  %v5314_v37 = vld [vmem:[#allocation9 + $0x284] ss:$16 sps:$4 sm:$0xff]   ;;  %v5317_v38 = vld [vmem:[#allocation9 + $0x28c] ss:$16 sps:$4 sm:$0xff]  }
  0xe4   :  { %2406 = vmatprep.subr.bf16.mxu0 %v5258_v47  ;;  %2858 = vmatprep.subr.bf16.mxu1 %v5260_v49  ;;  %v762_v47 = vpack.c.bf16 %v642_v34, %v634_v33  ;;  %v5288_v49 = vld [vmem:[#allocation9 + $0x200] ss:$16 sps:$4 sm:$0xff]   ;;  %v392_v34 = vmul.f32 %v6181_v1, %v222_v23 }
  0xe5   :  { %v539_v2 = vadd.f32 %v6175_v58, %v369_v45  ;;  %v547_v3 = vadd.f32 %v6175_v58, %v377_v46  ;;  %v5315_v46 = vld [vmem:[#allocation9 + $0x288] ss:$16 sps:$4 sm:$0xff]  }
  0xe7   :  { %2407 = vmatpush1.bf16.msra.mxu0 %v5262_v55  ;;  %2859 = vmatpush1.bf16.msra.mxu1 %v5263_v56  ;;  %v530_v55 = vadd.f32 %v6189_v13, %v360_v36  ;;  %v5296_v56 = vld [vmem:[#allocation9 + $0x224] ss:$16 sps:$4 sm:$0xff]   ;;  %v667_v12 = vmax.f32 %v539_v2, 0.0  ;;  %v675_v14 = vmax.f32 %v547_v3, 0.0  ;;  %v5309_v36 = vld [vmem:[#allocation9 + $0x268] ss:$16 sps:$4 sm:$0xff]   ;;  %v408_v2 = vmul.f32 %v6181_v1, %v238_v51 }
  0xe8   :  { %2408 = vmatprep.subr.bf16.mxu0 %v5264_v59  ;;  %2860 = vmatprep.subr.bf16.mxu1 %v5266_v60  ;;  %v198_v59 = vld [vmem:[#allocation3 + $0x100] sm:$0xff]  ;;  %v247_v3 = vld [vmem:[#allocation3 + $0x288] sm:$0xff] }
  0xe9   :  { %v206_v60 = vld [vmem:[#allocation3 + $0x140] sm:$0xff]  ;;  %v658_v5 = vmax.f32 %v530_v55, 0.0  ;;  %v779_v27 = vpack.c.bf16 %v675_v14, %v667_v12 }
  0xea   :  { %v5320_v55 = vld [vmem:[#allocation9 + $0x2a4] ss:$16 sps:$4 sm:$0xff]  }
  0xeb   :  { %2409 = vmatpush1.bf16.msra.mxu0 %v5268_v61  ;;  %2861 = vmatpush1.bf16.msra.mxu1 %v5269_v0  ;;  %v5299_v61 = vld [vmem:[#allocation9 + $0x22c] ss:$16 sps:$4 sm:$0xff]   ;;  %v771_v0 = vpack.c.bf16 %v659_v44, %v651_v42  ;;  %v770_v17 = vpack.c.bf16 %v658_v5, %v650_v4  ;;  %v409_v44 = vmul.f32 %v6171_v57, %v239_v35  ;;  %v5318_v5 = vld [vmem:[#allocation9 + $0x2a0] ss:$16 sps:$4 sm:$0xff]  }
  0xec   :  { %2410 = vmatprep.subr.bf16.mxu0 %v5270_v6  ;;  %2862 = vmatprep.subr.bf16.mxu1 %v5272_v7  ;;  %v368_v6 = vmul.f32 %v6181_v1, %v198_v59  ;;  %v376_v7 = vmul.f32 %v6181_v1, %v206_v60  ;;  %v255_v4 = vld [vmem:[#allocation3 + $0x2c8] sm:$0xff]  ;;  %v246_v14 = vld [vmem:[#allocation3 + $0x280] sm:$0xff] }
  0xed   :  { %v425_v12 = vmul.f32 %v6171_v57, %v255_v4  ;;  %v416_v23 = vmul.f32 %v6181_v1, %v246_v14  ;;  %v279_v35 = vld [vmem:[#allocation3 + $0x388] sm:$0xff]  ;;  %v5342_v4 = vld [vmem:[#allocation9 + $0x320] ss:$16 sps:$4 sm:$0xff]  }
  0xee   :  { %v538_v20 = vadd.f32 %v6189_v13, %v368_v6  ;;  %v546_v21 = vadd.f32 %v6189_v13, %v376_v7  ;;  %v5321_v6 = vld [vmem:[#allocation9 + $0x2a8] ss:$16 sps:$4 sm:$0xff]   ;;  %v5326_v7 = vld [vmem:[#allocation9 + $0x2c4] ss:$16 sps:$4 sm:$0xff]  }
  0xef   :  { %2411 = vmatpush1.bf16.msra.mxu0 %v5274_v15  ;;  %2863 = vmatpush1.bf16.msra.mxu1 %v5275_v16  ;;  %v385_v15 = vmul.f32 %v6171_v57, %v215_v8  ;;  %v393_v16 = vmul.f32 %v6171_v57, %v223_v9  ;;  %v5329_v8 = vld [vmem:[#allocation9 + $0x2cc] ss:$16 sps:$4 sm:$0xff]  }
  0xf0   :  { %2412 = vmatprep.subr.bf16.mxu0 %v5276_v18  ;;  %2864 = vmatprep.subr.bf16.mxu1 %v5278_v19  ;;  %v5300_v18 = vld [vmem:[#allocation9 + $0x240] ss:$16 sps:$4 sm:$0xff]   ;;  %v5303_v19 = vld [vmem:[#allocation9 + $0x248] ss:$16 sps:$4 sm:$0xff]   ;;  %v666_v31 = vmax.f32 %v538_v20, 0.0  ;;  %v674_v32 = vmax.f32 %v546_v21, 0.0 }
  0xf1   :  { %v5332_v20 = vld [vmem:[#allocation9 + $0x2e4] ss:$16 sps:$4 sm:$0xff]  }
  0xf2   :  { %v778_v45 = vpack.c.bf16 %v674_v32, %v666_v31  ;;  %v254_v21 = vld [vmem:[#allocation3 + $0x2c0] sm:$0xff]  ;;  %v263_v32 = vld [vmem:[#allocation3 + $0x308] sm:$0xff] }
  0xf3   :  { %2413 = vmatpush1.bf16.msra.mxu0 %v5280_v22  ;;  %2865 = vmatpush1.bf16.msra.mxu1 %v5281_v25  ;;  %v214_v22 = vld [vmem:[#allocation3 + $0x180] sm:$0xff]  ;;  %v5311_v25 = vld [vmem:[#allocation9 + $0x26c] ss:$16 sps:$4 sm:$0xff]   ;;  %v424_v31 = vmul.f32 %v6181_v1, %v254_v21 }
  0xf4   :  { %2414 = vmatprep.subr.bf16.mxu0 %v5282_v28  ;;  %2866 = vmatprep.subr.bf16.mxu1 %v5284_v29  ;;  %v555_v28 = vadd.f32 %v6175_v58, %v385_v15  ;;  %v563_v29 = vadd.f32 %v6175_v58, %v393_v16  ;;  %v384_v33 = vmul.f32 %v6181_v1, %v214_v22  ;;  %v5324_v16 = vld [vmem:[#allocation9 + $0x2c0] ss:$16 sps:$4 sm:$0xff]   ;;  %v5335_v22 = vld [vmem:[#allocation9 + $0x2ec] ss:$16 sps:$4 sm:$0xff]  }
  0xf5   :  { %v594_v51 = vadd.f32 %v6189_v13, %v424_v31  ;;  %v286_v21 = vld [vmem:[#allocation3 + $0x3c0] sm:$0xff] }
  0xf6   :  { %v456_v31 = vmul.f32 %v6181_v1, %v286_v21 }
  0xf7   :  { %2415 = vmatpush1.bf16.msra.mxu0 %v5286_v30  ;;  %2867 = vmatpush1.bf16.msra.mxu1 %v5287_v39  ;;  %v231_v30 = vld [vmem:[#allocation3 + $0x208] sm:$0xff]  ;;  %v5312_v39 = vld [vmem:[#allocation9 + $0x280] ss:$16 sps:$4 sm:$0xff]  }
  0xf8   :  { %2497 = vmatprep.subr.bf16.mxu0 %v5290_v40  ;;  %2949 = vmatprep.subr.bf16.mxu1 %v5293_v41  ;;  %v683_v40 = vmax.f32 %v555_v28, 0.0  ;;  %v691_v41 = vmax.f32 %v563_v29, 0.0  ;;  %v401_v42 = vmul.f32 %v6171_v57, %v231_v30  ;;  %v5333_v28 = vld [vmem:[#allocation9 + $0x2e8] ss:$16 sps:$4 sm:$0xff]  }
  0xfa   :  { %2417 = vmatmul.mubr.bf16.vlgmr.msra.gmra.mrb[0].mxu0 %v762_v47  ;;  %2869 = vmatmul.mubr.bf16.vlgmr.msra.gmra.mrb[0].mxu1 %v762_v47  ;;  %v554_v47 = vadd.f32 %v6189_v13, %v384_v33  ;;  %v787_v59 = vpack.c.bf16 %v691_v41, %v683_v40  ;;  %v571_v60 = vadd.f32 %v6175_v58, %v401_v42  ;;  %v271_v33 = vld [vmem:[#allocation3 + $0x348] sm:$0xff]  ;;  %v5336_v41 = vld [vmem:[#allocation9 + $0x300] ss:$16 sps:$4 sm:$0xff]  }
  0xfb   :  { %2498 = vmatpush1.bf16.msra.mxu0 %v5288_v49  ;;  %2950 = vmatpush1.bf16.msra.mxu1 %v5291_v50  ;;  %v562_v49 = vadd.f32 %v6189_v13, %v392_v34  ;;  %v230_v50 = vld [vmem:[#allocation3 + $0x200] sm:$0xff]  ;;  %v5339_v42 = vld [vmem:[#allocation9 + $0x308] ss:$16 sps:$4 sm:$0xff]  }
  0xfc   :  { %2499 = vmatprep.subr.bf16.mxu0 %v5296_v56  ;;  %2951 = vmatprep.subr.bf16.mxu1 %v5299_v61  ;;  %v5323_v56 = vld [vmem:[#allocation9 + $0x2ac] ss:$16 sps:$4 sm:$0xff]   ;;  %v579_v61 = vadd.f32 %v6175_v58, %v409_v44  ;;  %v699_v9 = vmax.f32 %v571_v60, 0.0  ;;  %v5338_v34 = vld [vmem:[#allocation9 + $0x304] ss:$16 sps:$4 sm:$0xff]  }
  0xfd   :  { %2426 = vmatprep.mubr.bf16.mxu0 %v771_v0  ;;  %2878 = vmatprep.mubr.bf16.mxu1 %v771_v0  ;;  %v400_v0 = vmul.f32 %v6181_v1, %v230_v50  ;;  %v5344_v50 = vld [vmem:[#allocation9 + $0x324] ss:$16 sps:$4 sm:$0xff]  }
  0xfe   :  { %v270_v60 = vld [vmem:[#allocation3 + $0x340] sm:$0xff] }
  0xff   :  { %2500 = vmatpush1.bf16.msra.mxu0 %v5294_v62  ;;  %2952 = vmatpush1.bf16.msra.mxu1 %v5297_v63  ;;  %v682_v62 = vmax.f32 %v554_v47, 0.0  ;;  %v690_v63 = vmax.f32 %v562_v49, 0.0  ;;  %v441_v47 = vmul.f32 %v6171_v57, %v271_v33  ;;  %v5354_v33 = vld [vmem:[#allocation9 + $0x360] ss:$16 sps:$4 sm:$0xff]  }
 0x100   :  { %2501 = vmatprep.subr.bf16.mxu0 %v5302_v10  ;;  %2953 = vmatprep.subr.bf16.mxu1 %v5305_v11  ;;  %v707_v10 = vmax.f32 %v579_v61, 0.0  ;;  %v417_v11 = vmul.f32 %v6171_v57, %v247_v3  ;;  %v5347_v61 = vld [vmem:[#allocation9 + $0x32c] ss:$16 sps:$4 sm:$0xff]  }
 0x101   :  { %v786_v15 = vpack.c.bf16 %v690_v63, %v682_v62  ;;  %v611_v3 = vadd.f32 %v6175_v58, %v441_v47  ;;  %v176_v47 = vld [vmem:[#allocation3 + $0x50] sm:$0xff] }
 0x102   :  { %2427 = vmatmul.mubr.bf16.gmra.mrb[4].mxu0 %v770_v17  ;;  %2879 = vmatmul.mubr.bf16.gmra.mrb[4].mxu1 %v770_v17  ;;  %v5327_v17 = vld [vmem:[#allocation9 + $0x2c8] ss:$16 sps:$4 sm:$0xff]  }
 0x103   :  { %2502 = vmatpush1.bf16.msra.mxu0 %v5300_v18  ;;  %2954 = vmatpush1.bf16.msra.mxu1 %v5303_v19  ;;  %v570_v18 = vadd.f32 %v6189_v13, %v400_v0  ;;  %v578_v19 = vadd.f32 %v6189_v13, %v408_v2 }
 0x104   :  { %2503 = vmatprep.subr.bf16.mxu0 %v5308_v24  ;;  %2955 = vmatprep.subr.bf16.mxu1 %v5311_v25  ;;  %v5330_v24 = vld [vmem:[#allocation9 + $0x2e0] ss:$16 sps:$4 sm:$0xff]   ;;  %v795_v25 = vpack.c.bf16 %v707_v10, %v699_v9  ;;  %v5345_v9 = vld [vmem:[#allocation9 + $0x328] ss:$16 sps:$4 sm:$0xff]   ;;  %v5350_v10 = vld [vmem:[#allocation9 + $0x344] ss:$16 sps:$4 sm:$0xff]  }
 0x105   :  { %2436 = vmatprep.mubr.bf16.mxu0 %v779_v27  ;;  %2888 = vmatprep.mubr.bf16.mxu1 %v779_v27  ;;  %v595_v27 = vadd.f32 %v6175_v58, %v425_v12  ;;  %v698_v29 = vmax.f32 %v570_v18, 0.0  ;;  %v706_v30 = vmax.f32 %v578_v19, 0.0  ;;  %v5351_v12 = vld [vmem:[#allocation9 + $0x348] ss:$16 sps:$4 sm:$0xff]  }
 0x107   :  { %2504 = vmatpush1.bf16.msra.mxu0 %v5306_v26  ;;  %2956 = vmatpush1.bf16.msra.mxu1 %v5309_v36  ;;  %v587_v26 = vadd.f32 %v6175_v58, %v417_v11  ;;  %v287_v36 = vld [vmem:[#allocation3 + $0x3c8] sm:$0xff]  ;;  %v794_v49 = vpack.c.bf16 %v706_v30, %v698_v29 }
 0x108   :  { %2505 = vmatprep.subr.bf16.mxu0 %v5314_v37  ;;  %2957 = vmatprep.subr.bf16.mxu1 %v5317_v38  ;;  %v5341_v37 = vld [vmem:[#allocation9 + $0x30c] ss:$16 sps:$4 sm:$0xff]   ;;  %v586_v38 = vadd.f32 %v6189_v13, %v416_v23  ;;  %v457_v40 = vmul.f32 %v6171_v57, %v287_v36 }
 0x109   :  { %v715_v44 = vmax.f32 %v587_v26, 0.0  ;;  %v5353_v11 = vld [vmem:[#allocation9 + $0x34c] ss:$16 sps:$4 sm:$0xff]  }
 0x10a   :  { %2437 = vmatmul.mubr.bf16.gmra.mrb[8].mxu0 %v778_v45  ;;  %2889 = vmatmul.mubr.bf16.gmra.mrb[8].mxu1 %v778_v45  ;;  %v723_v45 = vmax.f32 %v595_v27, 0.0  ;;  %v714_v2 = vmax.f32 %v586_v38, 0.0  ;;  %v5359_v23 = vld [vmem:[#allocation9 + $0x36c] ss:$16 sps:$4 sm:$0xff]   ;;  %v6255_v27 = vsub.s32 2, %v6157_v43 }
 0x10b   :  { %2506 = vmatpush1.bf16.msra.mxu0 %v5312_v39  ;;  %2958 = vmatpush1.bf16.msra.mxu1 %v5315_v46  ;;  %v449_v39 = vmul.f32 %v6171_v57, %v279_v35  ;;  %v433_v46 = vmul.f32 %v6171_v57, %v263_v32  ;;  %v177_v32 = vld [vmem:[#allocation3 + $0x58] sm:$0xff]  ;;  %v5362_v35 = vld [vmem:[#allocation9 + $0x384] ss:$16 sps:$4 sm:$0xff]  }
 0x10c   :  { %2507 = vmatprep.subr.bf16.mxu0 %v5320_v55  ;;  %2959 = vmatprep.subr.bf16.mxu1 %v5323_v56  ;;  %v262_v55 = vld [vmem:[#allocation3 + $0x300] sm:$0xff]  ;;  %v803_v0 = vpack.c.bf16 %v723_v45, %v715_v44  ;;  %v5365_v36 = vld [vmem:[#allocation9 + $0x38c] ss:$16 sps:$4 sm:$0xff]   ;;  %v6269_v44 = vrot.slane %v6162_v52, %v6255_v27  ;;  %v5363_v45 = vld [vmem:[#allocation9 + $0x388] ss:$16 sps:$4 sm:$0xff]  }
 0x10d   :  { %2446 = vmatprep.mubr.bf16.mxu0 %v787_v59  ;;  %2898 = vmatprep.mubr.bf16.mxu1 %v787_v59  ;;  %v619_v56 = vadd.f32 %v6175_v58, %v449_v39  ;;  %v627_v59 = vadd.f32 %v6175_v58, %v457_v40  ;;  %v603_v57 = vadd.f32 %v6175_v58, %v433_v46  ;;  %v5348_v58 = vld [vmem:[#allocation9 + $0x340] ss:$16 sps:$4 sm:$0xff]  }
 0x10e   :  { %v5360_v40 = vld [vmem:[#allocation9 + $0x380] ss:$16 sps:$4 sm:$0xff]  }
 0x10f   :  { %2508 = vmatpush1.bf16.msra.mxu0 %v5318_v5  ;;  %2960 = vmatpush1.bf16.msra.mxu1 %v5321_v6  ;;  %v747_v62 = vmax.f32 %v619_v56, 0.0  ;;  %v755_v63 = vmax.f32 %v627_v59, 0.0  ;;  %v722_v5 = vmax.f32 %v594_v51, 0.0  ;;  %v432_v6 = vmul.f32 %v6181_v1, %v262_v55  ;;  %v168_v46 = vld [vmem:[#allocation3 + $0x10] sm:$0xff] }
 0x110   :  { %2509 = vmatprep.subr.bf16.mxu0 %v5326_v7  ;;  %2961 = vmatprep.subr.bf16.mxu1 %v5329_v8  ;;  %v440_v7 = vmul.f32 %v6181_v1, %v270_v60  ;;  %v731_v14 = vmax.f32 %v603_v57, 0.0  ;;  %v5366_v51 = vld [vmem:[#allocation9 + $0x3a0] ss:$16 sps:$4 sm:$0xff]   ;;  %v338_v60 = vmul.f32 %v6269_v44, %v168_v46  ;;  %v5377_v57 = vld [vmem:[#allocation9 + $0x3cc] ss:$16 sps:$4 sm:$0xff]  }
 0x111   :  { %v6243_v8 = vpack.c.bf16 %v755_v63, %v747_v62  ;;  %v602_v18 = vadd.f32 %v6189_v13, %v432_v6  ;;  %v185_v62 = vld [vmem:[#allocation3 + $0x98] sm:$0xff]  ;;  %v5390_v46 = vld [vmem:[#allocation9 + $0x420] ss:$16 sps:$4 sm:$0xff]  }
 0x112   :  { %2447 = vmatmul.mubr.bf16.gmra.mrb[12].mxu0 %v786_v15  ;;  %2899 = vmatmul.mubr.bf16.gmra.mrb[12].mxu1 %v786_v15  ;;  %v739_v15 = vmax.f32 %v611_v3, 0.0  ;;  %v610_v19 = vadd.f32 %v6189_v13, %v440_v7  ;;  %v193_v63 = vld [vmem:[#allocation3 + $0xd8] sm:$0xff]  ;;  %v5372_v7 = vld [vmem:[#allocation9 + $0x3c0] ss:$16 sps:$4 sm:$0xff]  }
 0x113   :  { %2510 = vmatpush1.bf16.msra.mxu0 %v5324_v16  ;;  %2962 = vmatpush1.bf16.msra.mxu1 %v5327_v17  ;;  %v6246_v16 = vsub.s32 3, %v6157_v43  ;;  %v802_v17 = vpack.c.bf16 %v722_v5, %v714_v2  ;;  %v5374_v2 = vld [vmem:[#allocation9 + $0x3c4] ss:$16 sps:$4 sm:$0xff]  }
 0x114   :  { %2511 = vmatprep.subr.bf16.mxu0 %v5332_v20  ;;  %2963 = vmatprep.subr.bf16.mxu1 %v5335_v22  ;;  %v278_v20 = vld [vmem:[#allocation3 + $0x380] sm:$0xff]  ;;  %v738_v29 = vmax.f32 %v610_v19, 0.0 }
 0x115   :  { %2456 = vmatprep.mubr.bf16.mxu0 %v795_v25  ;;  %2908 = vmatprep.mubr.bf16.mxu1 %v795_v25  ;;  %v5356_v22 = vld [vmem:[#allocation9 + $0x364] ss:$16 sps:$4 sm:$0xff]   ;;  %v169_v25 = vld [vmem:[#allocation3 + $0x18] sm:$0xff]  ;;  %v6252_v26 = vrot.slane %v6162_v52, %v6246_v16  ;;  %v448_v30 = vmul.f32 %v6181_v1, %v278_v20  ;;  %v6263_v39 = vrot.slane %v6164_v53, %v6246_v16 }
 0x117   :  { %2512 = vmatpush1.bf16.msra.mxu0 %v5330_v24  ;;  %2964 = vmatpush1.bf16.msra.mxu1 %v5333_v28  ;;  %v811_v24 = vpack.c.bf16 %v739_v15, %v731_v14  ;;  %v730_v28 = vmax.f32 %v602_v18, 0.0  ;;  %v347_v38 = vmul.f32 %v6252_v26, %v177_v32  ;;  %v363_v5 = vmul.f32 %v6252_v26, %v193_v63  ;;  %v192_v14 = vld [vmem:[#allocation3 + $0xd0] sm:$0xff]  ;;  %v5401_v63 = vld [vmem:[#allocation9 + $0x44c] ss:$16 sps:$4 sm:$0xff]  }
 0x118   :  { %2513 = vmatprep.subr.bf16.mxu0 %v5338_v34  ;;  %2965 = vmatprep.subr.bf16.mxu1 %v5341_v37  ;;  %v5357_v34 = vld [vmem:[#allocation9 + $0x368] ss:$16 sps:$4 sm:$0xff]   ;;  %v339_v37 = vmul.f32 %v6252_v26, %v169_v25  ;;  %v5378_v15 = vld [vmem:[#allocation9 + $0x3e0] ss:$16 sps:$4 sm:$0xff]  }
 0x119   :  { %v810_v1 = vpack.c.bf16 %v738_v29, %v730_v28  ;;  %v517_v56 = vadd.f32 %v6263_v39, %v347_v38  ;;  %v533_v20 = vadd.f32 %v6263_v39, %v363_v5  ;;  %v201_v25 = vld [vmem:[#allocation3 + $0x118] sm:$0xff]  ;;  %v5386_v29 = vld [vmem:[#allocation9 + $0x404] ss:$16 sps:$4 sm:$0xff]  }
 0x11a   :  { %2457 = vmatmul.mubr.bf16.gmra.mrb[16].mxu0 %v794_v49  ;;  %2909 = vmatmul.mubr.bf16.gmra.mrb[16].mxu1 %v794_v49  ;;  %v5368_v49 = vld [vmem:[#allocation9 + $0x3a4] ss:$16 sps:$4 sm:$0xff]   ;;  %v509_v55 = vadd.f32 %v6263_v39, %v339_v37  ;;  %v209_v28 = vld [vmem:[#allocation3 + $0x158] sm:$0xff] }
 0x11b   :  { %2514 = vmatpush1.bf16.msra.mxu0 %v5336_v41  ;;  %2966 = vmatpush1.bf16.msra.mxu1 %v5339_v42  ;;  %v618_v41 = vadd.f32 %v6189_v13, %v448_v30  ;;  %v626_v42 = vadd.f32 %v6189_v13, %v456_v31  ;;  %v6275_v13 = vrot.slane %v6164_v53, %v6255_v27  ;;  %v645_v3 = vmax.f32 %v517_v56, 0.0  ;;  %v5389_v30 = vld [vmem:[#allocation9 + $0x40c] ss:$16 sps:$4 sm:$0xff]   ;;  %v5387_v37 = vld [vmem:[#allocation9 + $0x408] ss:$16 sps:$4 sm:$0xff]  }
 0x11c   :  { %2515 = vmatprep.subr.bf16.mxu0 %v5344_v50  ;;  %2967 = vmatprep.subr.bf16.mxu1 %v5347_v61  ;;  %v5371_v50 = vld [vmem:[#allocation9 + $0x3ac] ss:$16 sps:$4 sm:$0xff]   ;;  %v346_v61 = vmul.f32 %v6269_v44, %v176_v47  ;;  %v637_v53 = vmax.f32 %v509_v55, 0.0  ;;  %v661_v32 = vmax.f32 %v533_v20, 0.0  ;;  %v5399_v5 = vld [vmem:[#allocation9 + $0x448] ss:$16 sps:$4 sm:$0xff]  }
 0x11d   :  { %2466 = vmatprep.mubr.bf16.mxu0 %v803_v0  ;;  %2918 = vmatprep.mubr.bf16.mxu1 %v803_v0  ;;  %v746_v52 = vmax.f32 %v618_v41, 0.0  ;;  %v754_v59 = vmax.f32 %v626_v42, 0.0  ;;  %v5369_v0 = vld [vmem:[#allocation9 + $0x3a8] ss:$16 sps:$4 sm:$0xff]   ;;  %v208_v41 = vld [vmem:[#allocation3 + $0x150] sm:$0xff] }
 0x11e   :  { %v765_v18 = vpack.c.bf16 %v645_v3, %v637_v53  ;;  %v5392_v42 = vld [vmem:[#allocation9 + $0x424] ss:$16 sps:$4 sm:$0xff]   ;;  %v233_v20 = vld [vmem:[#allocation3 + $0x218] sm:$0xff] }
 0x11f   :  { %2516 = vmatpush1.bf16.msra.mxu0 %v5342_v4  ;;  %2968 = vmatpush1.bf16.msra.mxu1 %v5345_v9  ;;  %v355_v4 = vmul.f32 %v6252_v26, %v185_v62  ;;  %v818_v6 = vpack.c.bf16 %v754_v59, %v746_v52  ;;  %v5375_v9 = vld [vmem:[#allocation9 + $0x3c8] ss:$16 sps:$4 sm:$0xff]   ;;  %v378_v59 = vmul.f32 %v6269_v44, %v208_v41  ;;  %v5398_v62 = vld [vmem:[#allocation9 + $0x444] ss:$16 sps:$4 sm:$0xff]  }
 0x120   :  { %2517 = vmatprep.subr.bf16.mxu0 %v5350_v10  ;;  %2969 = vmatprep.subr.bf16.mxu1 %v5353_v11  ;;  %v508_v10 = vadd.f32 %v6275_v13, %v338_v60  ;;  %v516_v11 = vadd.f32 %v6275_v13, %v346_v61  ;;  %v225_v60 = vld [vmem:[#allocation3 + $0x1d8] sm:$0xff] }
 0x121   :  { %v525_v19 = vadd.f32 %v6263_v39, %v355_v4  ;;  %v5393_v61 = vld [vmem:[#allocation9 + $0x428] ss:$16 sps:$4 sm:$0xff]   ;;  %v395_v3 = vmul.f32 %v6252_v26, %v225_v60  ;;  %v5425_v60 = vld [vmem:[#allocation9 + $0x4cc] ss:$16 sps:$4 sm:$0xff]  }
 0x122   :  { %2467 = vmatmul.mubr.bf16.gmra.mrb[20].mxu0 %v802_v17  ;;  %2919 = vmatmul.mubr.bf16.gmra.mrb[20].mxu1 %v802_v17  ;;  %v5381_v17 = vld [vmem:[#allocation9 + $0x3e8] ss:$16 sps:$4 sm:$0xff]   ;;  %v636_v21 = vmax.f32 %v508_v10, 0.0  ;;  %v224_v10 = vld [vmem:[#allocation3 + $0x1d0] sm:$0xff] }
 0x123   :  { %2518 = vmatpush1.bf16.msra.mxu0 %v5348_v58  ;;  %2970 = vmatpush1.bf16.msra.mxu1 %v5351_v12  ;;  %v5380_v58 = vld [vmem:[#allocation9 + $0x3e4] ss:$16 sps:$4 sm:$0xff]   ;;  %v653_v31 = vmax.f32 %v525_v19, 0.0  ;;  %v394_v19 = vmul.f32 %v6269_v44, %v224_v10 }
 0x124   :  { %2519 = vmatprep.subr.bf16.mxu0 %v5356_v22  ;;  %2971 = vmatprep.subr.bf16.mxu1 %v5359_v23  ;;  %v184_v12 = vld [vmem:[#allocation3 + $0x90] sm:$0xff]  ;;  %v644_v22 = vmax.f32 %v516_v11, 0.0 }
 0x125   :  { %2476 = vmatprep.mubr.bf16.mxu0 %v811_v24  ;;  %2928 = vmatprep.mubr.bf16.mxu1 %v811_v24  ;;  %v354_v23 = vmul.f32 %v6269_v44, %v184_v12  ;;  %v362_v24 = vmul.f32 %v6269_v44, %v192_v14  ;;  %v773_v47 = vpack.c.bf16 %v661_v32, %v653_v31  ;;  %v5404_v11 = vld [vmem:[#allocation9 + $0x464] ss:$16 sps:$4 sm:$0xff]  }
 0x126   :  { %v403_v31 = vmul.f32 %v6252_v26, %v233_v20  ;;  %v5429_v20 = vld [vmem:[#allocation9 + $0x4e8] ss:$16 sps:$4 sm:$0xff]  }
 0x127   :  { %2520 = vmatpush1.bf16.msra.mxu0 %v5354_v33  ;;  %2972 = vmatpush1.bf16.msra.mxu1 %v5357_v34  ;;  %v371_v33 = vmul.f32 %v6252_v26, %v201_v25  ;;  %v379_v34 = vmul.f32 %v6252_v26, %v209_v28  ;;  %v524_v38 = vadd.f32 %v6275_v13, %v354_v23  ;;  %v5405_v23 = vld [vmem:[#allocation9 + $0x468] ss:$16 sps:$4 sm:$0xff]   ;;  %v5413_v25 = vld [vmem:[#allocation9 + $0x48c] ss:$16 sps:$4 sm:$0xff]   ;;  %v5408_v28 = vld [vmem:[#allocation9 + $0x480] ss:$16 sps:$4 sm:$0xff]  }
 0x128   :  { %2521 = vmatprep.subr.bf16.mxu0 %v5362_v35  ;;  %2973 = vmatprep.subr.bf16.mxu1 %v5365_v36  ;;  %v764_v35 = vpack.c.bf16 %v644_v22, %v636_v21  ;;  %v5384_v36 = vld [vmem:[#allocation9 + $0x400] ss:$16 sps:$4 sm:$0xff]   ;;  %v241_v21 = vld [vmem:[#allocation3 + $0x258] sm:$0xff] }
 0x129   :  { %v652_v55 = vmax.f32 %v524_v38, 0.0  ;;  %v5402_v22 = vld [vmem:[#allocation9 + $0x460] ss:$16 sps:$4 sm:$0xff]   ;;  %v411_v32 = vmul.f32 %v6252_v26, %v241_v21  ;;  %v5434_v21 = vld [vmem:[#allocation9 + $0x504] ss:$16 sps:$4 sm:$0xff]  }
 0x12a   :  { %2477 = vmatmul.mubr.bf16.gmra.mrb[24].mxu0 %v810_v1  ;;  %2929 = vmatmul.mubr.bf16.gmra.mrb[24].mxu1 %v810_v1  ;;  %v532_v1 = vadd.f32 %v6275_v13, %v362_v24  ;;  %v5410_v24 = vld [vmem:[#allocation9 + $0x484] ss:$16 sps:$4 sm:$0xff]  }
 0x12b   :  { %2522 = vmatpush1.bf16.msra.mxu0 %v5360_v40  ;;  %2974 = vmatpush1.bf16.msra.mxu1 %v5363_v45  ;;  %v200_v40 = vld [vmem:[#allocation3 + $0x110] sm:$0xff]  ;;  %v5395_v45 = vld [vmem:[#allocation9 + $0x42c] ss:$16 sps:$4 sm:$0xff]  }
 0x12c   :  { %2523 = vmatprep.subr.bf16.mxu0 %v5368_v49  ;;  %2975 = vmatprep.subr.bf16.mxu1 %v5371_v50  ;;  %v541_v49 = vadd.f32 %v6263_v39, %v371_v33  ;;  %v549_v50 = vadd.f32 %v6263_v39, %v379_v34  ;;  %v660_v56 = vmax.f32 %v532_v1, 0.0  ;;  %v370_v52 = vmul.f32 %v6269_v44, %v200_v40  ;;  %v5411_v34 = vld [vmem:[#allocation9 + $0x488] ss:$16 sps:$4 sm:$0xff]   ;;  %v232_v38 = vld [vmem:[#allocation3 + $0x210] sm:$0xff]  ;;  %v5419_v40 = vld [vmem:[#allocation9 + $0x4ac] ss:$16 sps:$4 sm:$0xff]  }
 0x12d   :  { %2486 = vmatprep.mubr.bf16.mxu0 %v6243_v8  ;;  %2938 = vmatprep.mubr.bf16.mxu1 %v6243_v8  ;;  %v5383_v8 = vld [vmem:[#allocation9 + $0x3ec] ss:$16 sps:$4 sm:$0xff]   ;;  %v240_v1 = vld [vmem:[#allocation3 + $0x250] sm:$0xff] }
 0x12e   :  { %v772_v4 = vpack.c.bf16 %v660_v56, %v652_v55  ;;  %v257_v55 = vld [vmem:[#allocation3 + $0x2d8] sm:$0xff]  ;;  %v5414_v56 = vld [vmem:[#allocation9 + $0x4a0] ss:$16 sps:$4 sm:$0xff]  }
 0x12f   :  { %2524 = vmatpush1.bf16.msra.mxu0 %v5366_v51  ;;  %2976 = vmatpush1.bf16.msra.mxu1 %v5369_v0  ;;  %v217_v51 = vld [vmem:[#allocation3 + $0x198] sm:$0xff]  ;;  %v5396_v0 = vld [vmem:[#allocation9 + $0x440] ss:$16 sps:$4 sm:$0xff]  }
 0x130   :  { %2525 = vmatprep.subr.bf16.mxu0 %v5374_v2  ;;  %2977 = vmatprep.subr.bf16.mxu1 %v5377_v57  ;;  %v669_v2 = vmax.f32 %v541_v49, 0.0  ;;  %v677_v57 = vmax.f32 %v549_v50, 0.0  ;;  %v387_v53 = vmul.f32 %v6252_v26, %v217_v51  ;;  %v402_v49 = vmul.f32 %v6269_v44, %v232_v38  ;;  %v249_v51 = vld [vmem:[#allocation3 + $0x298] sm:$0xff] }
 0x131   :  { %v410_v50 = vmul.f32 %v6269_v44, %v240_v1 }
 0x132   :  { %2487 = vmatmul.mubr.bf16.gmra.mrb[28].mxu0 %v818_v6  ;;  %2939 = vmatmul.mubr.bf16.gmra.mrb[28].mxu1 %v818_v6  ;;  %v540_v6 = vadd.f32 %v6275_v13, %v370_v52  ;;  %v781_v12 = vpack.c.bf16 %v677_v57, %v669_v2  ;;  %v557_v14 = vadd.f32 %v6263_v39, %v387_v53  ;;  %v5417_v52 = vld [vmem:[#allocation9 + $0x4a8] ss:$16 sps:$4 sm:$0xff]  }
 0x133   :  { %2526 = vmatpush1.bf16.msra.mxu0 %v5372_v7  ;;  %2978 = vmatpush1.bf16.msra.mxu1 %v5375_v9  ;;  %v548_v7 = vadd.f32 %v6275_v13, %v378_v59  ;;  %v216_v9 = vld [vmem:[#allocation3 + $0x190] sm:$0xff]  ;;  %v419_v2 = vmul.f32 %v6252_v26, %v249_v51  ;;  %v427_v57 = vmul.f32 %v6252_v26, %v257_v55  ;;  %v5441_v51 = vld [vmem:[#allocation9 + $0x528] ss:$16 sps:$4 sm:$0xff]  }
 0x134   :  { %2527 = vmatprep.subr.bf16.mxu0 %v5380_v58  ;;  %2979 = vmatprep.subr.bf16.mxu1 %v5383_v8  ;;  %v5407_v58 = vld [vmem:[#allocation9 + $0x46c] ss:$16 sps:$4 sm:$0xff]   ;;  %v565_v8 = vadd.f32 %v6263_v39, %v395_v3  ;;  %v5422_v59 = vld [vmem:[#allocation9 + $0x4c4] ss:$16 sps:$4 sm:$0xff]  }
 0x135   :  { %2529 = vmatprep.mubr.bf16.mxu0 %v765_v18  ;;  %2981 = vmatprep.mubr.bf16.mxu1 %v765_v18  ;;  %v386_v18 = vmul.f32 %v6269_v44, %v216_v9  ;;  %v5428_v3 = vld [vmem:[#allocation9 + $0x4e4] ss:$16 sps:$4 sm:$0xff]   ;;  %v5431_v9 = vld [vmem:[#allocation9 + $0x4ec] ss:$16 sps:$4 sm:$0xff]  }
 0x136   :  { %v5446_v55 = vld [vmem:[#allocation9 + $0x544] ss:$16 sps:$4 sm:$0xff]  }
 0x137   :  { %2528 = vmatpush1.bf16.msra.mxu0 %v5378_v15  ;;  %2980 = vmatpush1.bf16.msra.mxu1 %v5381_v17  ;;  %v668_v15 = vmax.f32 %v540_v6, 0.0  ;;  %v676_v17 = vmax.f32 %v548_v7, 0.0  ;;  %v248_v6 = vld [vmem:[#allocation3 + $0x290] sm:$0xff] }
 0x138   :  { %2610 = vmatprep.subr.bf16.mxu0 %v5386_v29  ;;  %3062 = vmatprep.subr.bf16.mxu1 %v5389_v30  ;;  %v685_v29 = vmax.f32 %v557_v14, 0.0  ;;  %v693_v30 = vmax.f32 %v565_v8, 0.0  ;;  %v256_v7 = vld [vmem:[#allocation3 + $0x2d0] sm:$0xff] }
 0x139   :  { %v780_v33 = vpack.c.bf16 %v676_v17, %v668_v15  ;;  %v418_v15 = vmul.f32 %v6269_v44, %v248_v6  ;;  %v426_v17 = vmul.f32 %v6269_v44, %v256_v7  ;;  %v5455_v6 = vld [vmem:[#allocation9 + $0x56c] ss:$16 sps:$4 sm:$0xff]   ;;  %v6334_v7 = vld [vmem:[#allocation6] sm:$0xff] }
 0x13a   :  { %2530 = vmatmul.mubr.bf16.vlgmr.msra.gmra.mrb[0].mxu0 %v764_v35  ;;  %2982 = vmatmul.mubr.bf16.vlgmr.msra.gmra.mrb[0].mxu1 %v764_v35  ;;  %v5416_v35 = vld [vmem:[#allocation9 + $0x4a4] ss:$16 sps:$4 sm:$0xff]   ;;  %v789_v41 = vpack.c.bf16 %v693_v30, %v685_v29 }
 0x13b   :  { %2611 = vmatpush1.bf16.msra.mxu0 %v5384_v36  ;;  %3063 = vmatpush1.bf16.msra.mxu1 %v5387_v37  ;;  %v556_v36 = vadd.f32 %v6275_v13, %v386_v18  ;;  %v564_v37 = vadd.f32 %v6275_v13, %v394_v19  ;;  %v265_v18 = vld [vmem:[#allocation3 + $0x318] sm:$0xff] }
 0x13c   :  { %2612 = vmatprep.subr.bf16.mxu0 %v5392_v42  ;;  %3064 = vmatprep.subr.bf16.mxu1 %v5395_v45  ;;  %v573_v42 = vadd.f32 %v6263_v39, %v403_v31  ;;  %v581_v45 = vadd.f32 %v6263_v39, %v411_v32  ;;  %v273_v19 = vld [vmem:[#allocation3 + $0x358] sm:$0xff]  ;;  %v435_v29 = vmul.f32 %v6252_v26, %v265_v18  ;;  %v171_v18 = vld [vmem:[#allocation3 + $0x28] sm:$0xff] }
 0x13d   :  { %2539 = vmatprep.mubr.bf16.mxu0 %v773_v47  ;;  %2991 = vmatprep.mubr.bf16.mxu1 %v773_v47  ;;  %v692_v47 = vmax.f32 %v564_v37, 0.0  ;;  %v443_v30 = vmul.f32 %v6252_v26, %v273_v19  ;;  %v588_v32 = vadd.f32 %v6275_v13, %v418_v15  ;;  %v5443_v37 = vld [vmem:[#allocation9 + $0x52c] ss:$16 sps:$4 sm:$0xff]  }
 0x13e   :  { %v605_v1 = vadd.f32 %v6263_v39, %v435_v29  ;;  %v179_v19 = vld [vmem:[#allocation3 + $0x68] sm:$0xff] }
 0x13f   :  { %2613 = vmatpush1.bf16.msra.mxu0 %v5390_v46  ;;  %3065 = vmatpush1.bf16.msra.mxu1 %v5393_v61  ;;  %v684_v46 = vmax.f32 %v556_v36, 0.0  ;;  %v5420_v61 = vld [vmem:[#allocation9 + $0x4c0] ss:$16 sps:$4 sm:$0xff]   ;;  %v5440_v36 = vld [vmem:[#allocation9 + $0x524] ss:$16 sps:$4 sm:$0xff]  }
 0x140   :  { %2614 = vmatprep.subr.bf16.mxu0 %v5398_v62  ;;  %3066 = vmatprep.subr.bf16.mxu1 %v5401_v63  ;;  %v5423_v62 = vld [vmem:[#allocation9 + $0x4c8] ss:$16 sps:$4 sm:$0xff]   ;;  %v701_v63 = vmax.f32 %v573_v42, 0.0  ;;  %v716_v42 = vmax.f32 %v588_v32, 0.0 }
 0x141   :  { %v788_v53 = vpack.c.bf16 %v692_v47, %v684_v46 }
 0x142   :  { %2540 = vmatmul.mubr.bf16.gmra.mrb[4].mxu0 %v772_v4  ;;  %2992 = vmatmul.mubr.bf16.gmra.mrb[4].mxu1 %v772_v4  ;;  %v572_v4 = vadd.f32 %v6275_v13, %v402_v49  ;;  %v289_v49 = vld [vmem:[#allocation3 + $0x3d8] sm:$0xff] }
 0x143   :  { %2615 = vmatpush1.bf16.msra.mxu0 %v5396_v0  ;;  %3067 = vmatpush1.bf16.msra.mxu1 %v5399_v5  ;;  %v709_v0 = vmax.f32 %v581_v45, 0.0  ;;  %v580_v5 = vadd.f32 %v6275_v13, %v410_v50  ;;  %v5438_v50 = vld [vmem:[#allocation9 + $0x520] ss:$16 sps:$4 sm:$0xff]  }
 0x144   :  { %2616 = vmatprep.subr.bf16.mxu0 %v5404_v11  ;;  %3068 = vmatprep.subr.bf16.mxu1 %v5407_v58  ;;  %v589_v11 = vadd.f32 %v6263_v39, %v419_v2  ;;  %v597_v58 = vadd.f32 %v6263_v39, %v427_v57  ;;  %v700_v14 = vmax.f32 %v572_v4, 0.0  ;;  %v288_v4 = vld [vmem:[#allocation3 + $0x3d0] sm:$0xff] }
 0x145   :  { %2549 = vmatprep.mubr.bf16.mxu0 %v781_v12  ;;  %3001 = vmatprep.mubr.bf16.mxu1 %v781_v12  ;;  %v797_v10 = vpack.c.bf16 %v709_v0, %v701_v63  ;;  %v5426_v12 = vld [vmem:[#allocation9 + $0x4e0] ss:$16 sps:$4 sm:$0xff]   ;;  %v708_v8 = vmax.f32 %v580_v5, 0.0  ;;  %v5452_v5 = vld [vmem:[#allocation9 + $0x564] ss:$16 sps:$4 sm:$0xff]  }
 0x146   :  { %v5444_v0 = vld [vmem:[#allocation9 + $0x540] ss:$16 sps:$4 sm:$0xff]  }
 0x147   :  { %2617 = vmatpush1.bf16.msra.mxu0 %v5402_v22  ;;  %3069 = vmatpush1.bf16.msra.mxu1 %v5405_v23  ;;  %v5437_v22 = vld [vmem:[#allocation9 + $0x50c] ss:$16 sps:$4 sm:$0xff]   ;;  %v5432_v23 = vld [vmem:[#allocation9 + $0x500] ss:$16 sps:$4 sm:$0xff]   ;;  %v796_v31 = vpack.c.bf16 %v708_v8, %v700_v14 }
 0x148   :  { %2618 = vmatprep.subr.bf16.mxu0 %v5410_v24  ;;  %3070 = vmatprep.subr.bf16.mxu1 %v5413_v25  ;;  %v5435_v24 = vld [vmem:[#allocation9 + $0x508] ss:$16 sps:$4 sm:$0xff]   ;;  %v717_v25 = vmax.f32 %v589_v11, 0.0 }
 0x14a   :  { %2550 = vmatmul.mubr.bf16.gmra.mrb[8].mxu0 %v780_v33  ;;  %3002 = vmatmul.mubr.bf16.gmra.mrb[8].mxu1 %v780_v33  ;;  %v596_v33 = vadd.f32 %v6275_v13, %v426_v17  ;;  %v458_v17 = vmul.f32 %v6269_v44, %v288_v4  ;;  %v194_v4 = vld [vmem:[#allocation3 + $0xe0] sm:$0xff] }
 0x14b   :  { %2619 = vmatpush1.bf16.msra.mxu0 %v5408_v28  ;;  %3071 = vmatpush1.bf16.msra.mxu1 %v5411_v34  ;;  %v725_v28 = vmax.f32 %v597_v58, 0.0  ;;  %v264_v34 = vld [vmem:[#allocation3 + $0x310] sm:$0xff] }
 0x14c   :  { %2620 = vmatprep.subr.bf16.mxu0 %v5416_v35  ;;  %3072 = vmatprep.subr.bf16.mxu1 %v5419_v40  ;;  %v272_v35 = vld [vmem:[#allocation3 + $0x350] sm:$0xff]  ;;  %v613_v40 = vadd.f32 %v6263_v39, %v443_v30  ;;  %v724_v45 = vmax.f32 %v596_v33, 0.0  ;;  %v434_v46 = vmul.f32 %v6269_v44, %v264_v34  ;;  %v628_v33 = vadd.f32 %v6275_v13, %v458_v17 }
 0x14d   :  { %2559 = vmatprep.mubr.bf16.mxu0 %v789_v41  ;;  %3011 = vmatprep.mubr.bf16.mxu1 %v789_v41  ;;  %v805_v38 = vpack.c.bf16 %v725_v28, %v717_v25  ;;  %v281_v41 = vld [vmem:[#allocation3 + $0x398] sm:$0xff]  ;;  %v442_v47 = vmul.f32 %v6269_v44, %v272_v35  ;;  %v5456_v30 = vld [vmem:[#allocation9 + $0x580] ss:$16 sps:$4 sm:$0xff]   ;;  %v5464_v35 = vld [vmem:[#allocation9 + $0x5a4] ss:$16 sps:$4 sm:$0xff]  }
 0x14e   :  { %v804_v63 = vpack.c.bf16 %v724_v45, %v716_v42  ;;  %v604_v2 = vadd.f32 %v6275_v13, %v434_v46 }
 0x14f   :  { %2621 = vmatpush1.bf16.msra.mxu0 %v5414_v56  ;;  %3073 = vmatpush1.bf16.msra.mxu1 %v5417_v52  ;;  %v5449_v56 = vld [vmem:[#allocation9 + $0x54c] ss:$16 sps:$4 sm:$0xff]   ;;  %v318_v52 = vsub.s32 5, %v6157_v43  ;;  %v612_v57 = vadd.f32 %v6275_v13, %v442_v47  ;;  %v756_v47 = vmax.f32 %v628_v33, 0.0  ;;  %v202_v33 = vld [vmem:[#allocation3 + $0x120] sm:$0xff] }
 0x150   :  { %2622 = vmatprep.subr.bf16.mxu0 %v5422_v59  ;;  %3074 = vmatprep.subr.bf16.mxu1 %v5425_v60  ;;  %v733_v59 = vmax.f32 %v605_v1, 0.0  ;;  %v741_v60 = vmax.f32 %v613_v40, 0.0  ;;  %v732_v14 = vmax.f32 %v604_v2, 0.0  ;;  %v5462_v1 = vld [vmem:[#allocation9 + $0x5a0] ss:$16 sps:$4 sm:$0xff]  }
 0x151   :  { %v740_v8 = vmax.f32 %v612_v57, 0.0  ;;  %v5465_v40 = vld [vmem:[#allocation9 + $0x5a8] ss:$16 sps:$4 sm:$0xff]  }
 0x152   :  { %2560 = vmatmul.mubr.bf16.gmra.mrb[12].mxu0 %v788_v53  ;;  %3012 = vmatmul.mubr.bf16.gmra.mrb[12].mxu1 %v788_v53  ;;  %v5447_v53 = vld [vmem:[#allocation9 + $0x548] ss:$16 sps:$4 sm:$0xff]  }
 0x153   :  { %2623 = vmatpush1.bf16.msra.mxu0 %v5420_v61  ;;  %3075 = vmatpush1.bf16.msra.mxu1 %v5423_v62  ;;  %v451_v61 = vmul.f32 %v6252_v26, %v281_v41  ;;  %v459_v62 = vmul.f32 %v6252_v26, %v289_v49  ;;  %v5450_v26 = vld [vmem:[#allocation9 + $0x560] ss:$16 sps:$4 sm:$0xff]   ;;  %v812_v29 = vpack.c.bf16 %v740_v8, %v732_v14  ;;  %v5471_v2 = vld [vmem:[#allocation9 + $0x5c8] ss:$16 sps:$4 sm:$0xff]  }
 0x154   :  { %2624 = vmatprep.subr.bf16.mxu0 %v5428_v3  ;;  %3076 = vmatprep.subr.bf16.mxu1 %v5431_v9  ;;  %v280_v3 = vld [vmem:[#allocation3 + $0x390] sm:$0xff]  ;;  %v6337_v9 = vrot.slane %v6334_v7, %v318_v52 }
 0x155   :  { %2569 = vmatprep.mubr.bf16.mxu0 %v797_v10  ;;  %3021 = vmatprep.mubr.bf16.mxu1 %v797_v10  ;;  %v813_v10 = vpack.c.bf16 %v741_v60, %v733_v59  ;;  %v621_v11 = vadd.f32 %v6263_v39, %v451_v61  ;;  %v629_v58 = vadd.f32 %v6263_v39, %v459_v62  ;;  %v6344_v39 = vld [vmem:[#allocation8] sm:$0xff] }
 0x156   :  { %v450_v15 = vmul.f32 %v6269_v44, %v280_v3  ;;  %v341_v44 = vmul.f32 %v6337_v9, %v171_v18  ;;  %v349_v28 = vmul.f32 %v6337_v9, %v179_v19  ;;  %v186_v3 = vld [vmem:[#allocation3 + $0xa0] sm:$0xff]  ;;  %v211_v18 = vld [vmem:[#allocation3 + $0x168] sm:$0xff] }
 0x157   :  { %2625 = vmatpush1.bf16.msra.mxu0 %v5426_v12  ;;  %3077 = vmatpush1.bf16.msra.mxu1 %v5429_v20  ;;  %v314_v12 = vsub.s32 4, %v6157_v43  ;;  %v5453_v20 = vld [vmem:[#allocation9 + $0x568] ss:$16 sps:$4 sm:$0xff]   ;;  %v757_v25 = vmax.f32 %v629_v58, 0.0 }
 0x158   :  { %2626 = vmatprep.subr.bf16.mxu0 %v5434_v21  ;;  %3078 = vmatprep.subr.bf16.mxu1 %v5437_v22  ;;  %v5458_v21 = vld [vmem:[#allocation9 + $0x584] ss:$16 sps:$4 sm:$0xff]   ;;  %v5461_v22 = vld [vmem:[#allocation9 + $0x58c] ss:$16 sps:$4 sm:$0xff]   ;;  %v620_v32 = vadd.f32 %v6275_v13, %v450_v15  ;;  %v5477_v19 = vld [vmem:[#allocation9 + $0x5e8] ss:$16 sps:$4 sm:$0xff]  }
 0x159   :  { %v6354_v34 = vrot.slane %v6334_v7, %v314_v12  ;;  %v6359_v13 = vrot.slane %v6344_v39, %v314_v12  ;;  %v203_v12 = vld [vmem:[#allocation3 + $0x128] sm:$0xff] }
 0x15a   :  { %2570 = vmatmul.mubr.bf16.gmra.mrb[16].mxu0 %v796_v31  ;;  %3022 = vmatmul.mubr.bf16.gmra.mrb[16].mxu1 %v796_v31  ;;  %v5459_v31 = vld [vmem:[#allocation9 + $0x588] ss:$16 sps:$4 sm:$0xff]   ;;  %v748_v46 = vmax.f32 %v620_v32, 0.0 }
 0x15b   :  { %2627 = vmatpush1.bf16.msra.mxu0 %v5432_v23  ;;  %3079 = vmatpush1.bf16.msra.mxu1 %v5435_v24  ;;  %v6347_v23 = vrot.slane %v6344_v39, %v318_v52  ;;  %v749_v24 = vmax.f32 %v621_v11, 0.0  ;;  %v5473_v52 = vld [vmem:[#allocation9 + $0x5cc] ss:$16 sps:$4 sm:$0xff]   ;;  %v356_v15 = vmul.f32 %v6354_v34, %v186_v3  ;;  %v364_v17 = vmul.f32 %v6354_v34, %v194_v4  ;;  %v218_v3 = vld [vmem:[#allocation3 + $0x1a0] sm:$0xff] }
 0x15c   :  { %2628 = vmatprep.subr.bf16.mxu0 %v5440_v36  ;;  %3080 = vmatprep.subr.bf16.mxu1 %v5443_v37  ;;  %v170_v36 = vld [vmem:[#allocation3 + $0x20] sm:$0xff] }
 0x15d   :  { %2579 = vmatprep.mubr.bf16.mxu0 %v805_v38  ;;  %3031 = vmatprep.mubr.bf16.mxu1 %v805_v38  ;;  %v178_v37 = vld [vmem:[#allocation3 + $0x60] sm:$0xff]  ;;  %v5467_v38 = vld [vmem:[#allocation9 + $0x5ac] ss:$16 sps:$4 sm:$0xff]   ;;  %v821_v41 = vpack.c.bf16 %v757_v25, %v749_v24  ;;  %v511_v42 = vadd.f32 %v6347_v23, %v341_v44  ;;  %v519_v45 = vadd.f32 %v6347_v23, %v349_v28 }
 0x15e   :  { %v340_v49 = vmul.f32 %v6354_v34, %v170_v36  ;;  %v373_v44 = vmul.f32 %v6337_v9, %v203_v12  ;;  %v381_v28 = vmul.f32 %v6337_v9, %v211_v18  ;;  %v534_v32 = vadd.f32 %v6359_v13, %v364_v17  ;;  %v5488_v36 = vld [vmem:[#allocation9 + $0x624] ss:$16 sps:$4 sm:$0xff]   ;;  %v5498_v17 = vld [vmem:[#allocation9 + $0x660] ss:$16 sps:$4 sm:$0xff]   ;;  %v5501_v18 = vld [vmem:[#allocation9 + $0x668] ss:$16 sps:$4 sm:$0xff]  }
 0x15f   :  { %2629 = vmatpush1.bf16.msra.mxu0 %v5438_v50  ;;  %3081 = vmatpush1.bf16.msra.mxu1 %v5441_v51  ;;  %v348_v50 = vmul.f32 %v6354_v34, %v178_v37  ;;  %v187_v51 = vld [vmem:[#allocation3 + $0xa8] sm:$0xff]  ;;  %v639_v59 = vmax.f32 %v511_v42, 0.0  ;;  %v647_v60 = vmax.f32 %v519_v45, 0.0  ;;  %v372_v45 = vmul.f32 %v6354_v34, %v202_v33  ;;  %v226_v4 = vld [vmem:[#allocation3 + $0x1e0] sm:$0xff] }
 0x160   :  { %2630 = vmatprep.subr.bf16.mxu0 %v5446_v55  ;;  %3082 = vmatprep.subr.bf16.mxu1 %v5449_v56  ;;  %v195_v55 = vld [vmem:[#allocation3 + $0xe8] sm:$0xff]  ;;  %v5470_v56 = vld [vmem:[#allocation9 + $0x5c4] ss:$16 sps:$4 sm:$0xff]   ;;  %v357_v61 = vmul.f32 %v6337_v9, %v187_v51  ;;  %v510_v57 = vadd.f32 %v6359_v13, %v340_v49  ;;  %v662_v42 = vmax.f32 %v534_v32, 0.0  ;;  %v388_v12 = vmul.f32 %v6354_v34, %v218_v3 }
 0x161   :  { %v365_v62 = vmul.f32 %v6337_v9, %v195_v55  ;;  %v5491_v37 = vld [vmem:[#allocation9 + $0x62c] ss:$16 sps:$4 sm:$0xff]   ;;  %v5489_v51 = vld [vmem:[#allocation9 + $0x628] ss:$16 sps:$4 sm:$0xff]   ;;  %v5494_v55 = vld [vmem:[#allocation9 + $0x644] ss:$16 sps:$4 sm:$0xff]  }
 0x162   :  { %2580 = vmatmul.mubr.bf16.gmra.mrb[20].mxu0 %v804_v63  ;;  %3032 = vmatmul.mubr.bf16.gmra.mrb[20].mxu1 %v804_v63  ;;  %v820_v63 = vpack.c.bf16 %v756_v47, %v748_v46  ;;  %v527_v11 = vadd.f32 %v6347_v23, %v357_v61  ;;  %v638_v14 = vmax.f32 %v510_v57, 0.0  ;;  %v219_v47 = vld [vmem:[#allocation3 + $0x1a8] sm:$0xff]  ;;  %v542_v57 = vadd.f32 %v6359_v13, %v372_v45  ;;  %v234_v33 = vld [vmem:[#allocation3 + $0x220] sm:$0xff] }
 0x163   :  { %2631 = vmatpush1.bf16.msra.mxu0 %v5444_v0  ;;  %3083 = vmatpush1.bf16.msra.mxu1 %v5447_v53  ;;  %v5468_v0 = vld [vmem:[#allocation9 + $0x5c0] ss:$16 sps:$4 sm:$0xff]   ;;  %v518_v53 = vadd.f32 %v6359_v13, %v348_v50  ;;  %v535_v58 = vadd.f32 %v6347_v23, %v365_v62  ;;  %v227_v49 = vld [vmem:[#allocation3 + $0x1e8] sm:$0xff]  ;;  %v389_v61 = vmul.f32 %v6337_v9, %v219_v47  ;;  %v5524_v3 = vld [vmem:[#allocation9 + $0x6e4] ss:$16 sps:$4 sm:$0xff]  }
 0x164   :  { %2632 = vmatprep.subr.bf16.mxu0 %v5452_v5  ;;  %3084 = vmatprep.subr.bf16.mxu1 %v5455_v6  ;;  %v5476_v5 = vld [vmem:[#allocation9 + $0x5e4] ss:$16 sps:$4 sm:$0xff]   ;;  %v5479_v6 = vld [vmem:[#allocation9 + $0x5ec] ss:$16 sps:$4 sm:$0xff]   ;;  %v655_v24 = vmax.f32 %v527_v11, 0.0  ;;  %v397_v62 = vmul.f32 %v6337_v9, %v227_v49  ;;  %v670_v11 = vmax.f32 %v542_v57, 0.0 }
 0x165   :  { %2589 = vmatprep.mubr.bf16.mxu0 %v813_v10  ;;  %3041 = vmatprep.mubr.bf16.mxu1 %v813_v10  ;;  %v767_v10 = vpack.c.bf16 %v647_v60, %v639_v59  ;;  %v646_v8 = vmax.f32 %v518_v53, 0.0  ;;  %v663_v25 = vmax.f32 %v535_v58, 0.0  ;;  %v5486_v50 = vld [vmem:[#allocation9 + $0x620] ss:$16 sps:$4 sm:$0xff]   ;;  %v259_v47 = vld [vmem:[#allocation3 + $0x2e8] sm:$0xff] }
 0x166   :  { %v5510_v49 = vld [vmem:[#allocation9 + $0x6a0] ss:$16 sps:$4 sm:$0xff]  }
 0x167   :  { %2633 = vmatpush1.bf16.msra.mxu0 %v5450_v26  ;;  %3085 = vmatpush1.bf16.msra.mxu1 %v5453_v20  ;;  %v5474_v26 = vld [vmem:[#allocation9 + $0x5e0] ss:$16 sps:$4 sm:$0xff]   ;;  %v5482_v20 = vld [vmem:[#allocation9 + $0x604] ss:$16 sps:$4 sm:$0xff]  }
 0x168   :  { %2634 = vmatprep.subr.bf16.mxu0 %v5458_v21  ;;  %3086 = vmatprep.subr.bf16.mxu1 %v5461_v22  ;;  %v5485_v21 = vld [vmem:[#allocation9 + $0x60c] ss:$16 sps:$4 sm:$0xff]   ;;  %v5480_v22 = vld [vmem:[#allocation9 + $0x600] ss:$16 sps:$4 sm:$0xff]  }
 0x169   :  { %v250_v57 = vld [vmem:[#allocation3 + $0x2a0] sm:$0xff] }
 0x16a   :  { %2590 = vmatmul.mubr.bf16.gmra.mrb[24].mxu0 %v812_v29  ;;  %3042 = vmatmul.mubr.bf16.gmra.mrb[24].mxu1 %v812_v29  ;;  %v766_v29 = vpack.c.bf16 %v646_v8, %v638_v14  ;;  %v396_v14 = vmul.f32 %v6354_v34, %v226_v4  ;;  %v235_v8 = vld [vmem:[#allocation3 + $0x228] sm:$0xff] }
 0x16b   :  { %2635 = vmatpush1.bf16.msra.mxu0 %v5456_v30  ;;  %3087 = vmatpush1.bf16.msra.mxu1 %v5459_v31  ;;  %v5483_v30 = vld [vmem:[#allocation9 + $0x608] ss:$16 sps:$4 sm:$0xff]   ;;  %v526_v31 = vadd.f32 %v6359_v13, %v356_v15  ;;  %v5527_v4 = vld [vmem:[#allocation9 + $0x6ec] ss:$16 sps:$4 sm:$0xff]  }
 0x16c   :  { %2636 = vmatprep.subr.bf16.mxu0 %v5464_v35  ;;  %3088 = vmatprep.subr.bf16.mxu1 %v5467_v38  ;;  %v210_v35 = vld [vmem:[#allocation3 + $0x160] sm:$0xff]  ;;  %v775_v38 = vpack.c.bf16 %v663_v25, %v655_v24  ;;  %v243_v15 = vld [vmem:[#allocation3 + $0x268] sm:$0xff]  ;;  %v566_v32 = vadd.f32 %v6359_v13, %v396_v14 }
 0x16d   :  { %2599 = vmatprep.mubr.bf16.mxu0 %v821_v41  ;;  %3051 = vmatprep.mubr.bf16.mxu1 %v821_v41  ;;  %v654_v41 = vmax.f32 %v526_v31, 0.0  ;;  %v380_v46 = vmul.f32 %v6354_v34, %v210_v35  ;;  %v558_v31 = vadd.f32 %v6359_v13, %v388_v12  ;;  %v242_v35 = vld [vmem:[#allocation3 + $0x260] sm:$0xff]  ;;  %v267_v14 = vld [vmem:[#allocation3 + $0x328] sm:$0xff] }
 0x16e   :  { %v412_v45 = vmul.f32 %v6354_v34, %v242_v35  ;;  %v5539_v35 = vld [vmem:[#allocation9 + $0x72c] ss:$16 sps:$4 sm:$0xff]  }
 0x16f   :  { %2637 = vmatpush1.bf16.msra.mxu0 %v5462_v1  ;;  %3089 = vmatpush1.bf16.msra.mxu1 %v5465_v40  ;;  %v543_v1 = vadd.f32 %v6347_v23, %v373_v44  ;;  %v551_v40 = vadd.f32 %v6347_v23, %v381_v28  ;;  %v550_v53 = vadd.f32 %v6359_v13, %v380_v46  ;;  %v251_v46 = vld [vmem:[#allocation3 + $0x2a8] sm:$0xff] }
 0x170   :  { %2638 = vmatprep.subr.bf16.mxu0 %v5470_v56  ;;  %3090 = vmatprep.subr.bf16.mxu1 %v5473_v52  ;;  %v5497_v56 = vld [vmem:[#allocation9 + $0x64c] ss:$16 sps:$4 sm:$0xff]   ;;  %v5492_v52 = vld [vmem:[#allocation9 + $0x640] ss:$16 sps:$4 sm:$0xff]   ;;  %v405_v44 = vmul.f32 %v6337_v9, %v235_v8  ;;  %v413_v28 = vmul.f32 %v6337_v9, %v243_v15 }
 0x171   :  { %v671_v59 = vmax.f32 %v543_v1, 0.0  ;;  %v679_v60 = vmax.f32 %v551_v40, 0.0  ;;  %v678_v58 = vmax.f32 %v550_v53, 0.0  ;;  %v686_v40 = vmax.f32 %v558_v31, 0.0  ;;  %v258_v53 = vld [vmem:[#allocation3 + $0x2e0] sm:$0xff]  ;;  %v275_v8 = vld [vmem:[#allocation3 + $0x368] sm:$0xff] }
 0x172   :  { %2600 = vmatmul.mubr.bf16.gmra.mrb[28].mxu0 %v820_v63  ;;  %3052 = vmatmul.mubr.bf16.gmra.mrb[28].mxu1 %v820_v63  ;;  %v774_v63 = vpack.c.bf16 %v662_v42, %v654_v41  ;;  %v583_v1 = vadd.f32 %v6347_v23, %v413_v28  ;;  %v694_v41 = vmax.f32 %v566_v32, 0.0  ;;  %v404_v42 = vmul.f32 %v6354_v34, %v234_v33  ;;  %v5522_v15 = vld [vmem:[#allocation9 + $0x6e0] ss:$16 sps:$4 sm:$0xff]   ;;  %v5536_v33 = vld [vmem:[#allocation9 + $0x724] ss:$16 sps:$4 sm:$0xff]  }
 0x173   :  { %2639 = vmatpush1.bf16.msra.mxu0 %v5468_v0  ;;  %3091 = vmatpush1.bf16.msra.mxu1 %v5471_v2  ;;  %v5495_v0 = vld [vmem:[#allocation9 + $0x648] ss:$16 sps:$4 sm:$0xff]   ;;  %v5500_v2 = vld [vmem:[#allocation9 + $0x664] ss:$16 sps:$4 sm:$0xff]   ;;  %v428_v12 = vmul.f32 %v6354_v34, %v258_v53 }
 0x174   :  { %2640 = vmatprep.subr.bf16.mxu0 %v5476_v5  ;;  %3092 = vmatprep.subr.bf16.mxu1 %v5479_v6  ;;  %v5503_v5 = vld [vmem:[#allocation9 + $0x66c] ss:$16 sps:$4 sm:$0xff]   ;;  %v783_v6 = vpack.c.bf16 %v679_v60, %v671_v59  ;;  %v421_v59 = vmul.f32 %v6337_v9, %v251_v46  ;;  %v429_v60 = vmul.f32 %v6337_v9, %v259_v47  ;;  %v266_v31 = vld [vmem:[#allocation3 + $0x320] sm:$0xff]  ;;  %v5543_v53 = vld [vmem:[#allocation9 + $0x748] ss:$16 sps:$4 sm:$0xff]  }
 0x175   :  { %2642 = vmatprep.mubr.bf16.mxu0 %v767_v10  ;;  %3094 = vmatprep.mubr.bf16.mxu1 %v767_v10  ;;  %v567_v10 = vadd.f32 %v6347_v23, %v397_v62  ;;  %v5516_v62 = vld [vmem:[#allocation9 + $0x6c0] ss:$16 sps:$4 sm:$0xff]   ;;  %v291_v47 = vld [vmem:[#allocation3 + $0x3e8] sm:$0xff] }
 0x176   :  { %v274_v32 = vld [vmem:[#allocation3 + $0x360] sm:$0xff] }
 0x177   :  { %2641 = vmatpush1.bf16.msra.mxu0 %v5474_v26  ;;  %3093 = vmatpush1.bf16.msra.mxu1 %v5477_v19  ;;  %v559_v26 = vadd.f32 %v6347_v23, %v389_v61  ;;  %v5506_v19 = vld [vmem:[#allocation9 + $0x684] ss:$16 sps:$4 sm:$0xff]   ;;  %v695_v25 = vmax.f32 %v567_v10, 0.0  ;;  %v790_v61 = vpack.c.bf16 %v694_v41, %v686_v40  ;;  %v283_v40 = vld [vmem:[#allocation3 + $0x3a8] sm:$0xff]  ;;  %v444_v46 = vmul.f32 %v6354_v34, %v274_v32 }
 0x178   :  { %2723 = vmatprep.subr.bf16.mxu0 %v5482_v20  ;;  %3175 = vmatprep.subr.bf16.mxu1 %v5485_v21  ;;  %v5509_v20 = vld [vmem:[#allocation9 + $0x68c] ss:$16 sps:$4 sm:$0xff]   ;;  %v5504_v21 = vld [vmem:[#allocation9 + $0x680] ss:$16 sps:$4 sm:$0xff]   ;;  %v5560_v32 = vld [vmem:[#allocation9 + $0x7a4] ss:$16 sps:$4 sm:$0xff]  }
 0x179   :  { %v687_v24 = vmax.f32 %v559_v26, 0.0  ;;  %v599_v26 = vadd.f32 %v6347_v23, %v429_v60  ;;  %v461_v60 = vmul.f32 %v6337_v9, %v291_v47  ;;  %v5566_v47 = vld [vmem:[#allocation9 + $0x7c4] ss:$16 sps:$4 sm:$0xff]  }
 0x17a   :  { %2643 = vmatmul.mubr.bf16.vlgmr.msra.gmra.mrb[0].mxu0 %v766_v29  ;;  %3095 = vmatmul.mubr.bf16.vlgmr.msra.gmra.mrb[0].mxu1 %v766_v29  ;;  %v782_v29 = vpack.c.bf16 %v678_v58, %v670_v11  ;;  %v420_v58 = vmul.f32 %v6354_v34, %v250_v57  ;;  %v614_v57 = vadd.f32 %v6359_v13, %v444_v46 }
 0x17b   :  { %2724 = vmatpush1.bf16.msra.mxu0 %v5480_v22  ;;  %3176 = vmatpush1.bf16.msra.mxu1 %v5483_v30  ;;  %v5507_v22 = vld [vmem:[#allocation9 + $0x688] ss:$16 sps:$4 sm:$0xff]   ;;  %v5512_v30 = vld [vmem:[#allocation9 + $0x6a4] ss:$16 sps:$4 sm:$0xff]  }
 0x17c   :  { %2725 = vmatprep.subr.bf16.mxu0 %v5488_v36  ;;  %3177 = vmatprep.subr.bf16.mxu1 %v5491_v37  ;;  %v5515_v36 = vld [vmem:[#allocation9 + $0x6ac] ss:$16 sps:$4 sm:$0xff]   ;;  %v791_v37 = vpack.c.bf16 %v695_v25, %v687_v24  ;;  %v727_v24 = vmax.f32 %v599_v26, 0.0  ;;  %v437_v25 = vmul.f32 %v6337_v9, %v267_v14  ;;  %v5546_v26 = vld [vmem:[#allocation9 + $0x760] ss:$16 sps:$4 sm:$0xff]  }
 0x17d   :  { %2652 = vmatprep.mubr.bf16.mxu0 %v775_v38  ;;  %3104 = vmatprep.mubr.bf16.mxu1 %v775_v38  ;;  %v575_v38 = vadd.f32 %v6347_v23, %v405_v44  ;;  %v445_v44 = vmul.f32 %v6337_v9, %v275_v8 }
 0x17f   :  { %2726 = vmatpush1.bf16.msra.mxu0 %v5486_v50  ;;  %3178 = vmatpush1.bf16.msra.mxu1 %v5489_v51  ;;  %v5513_v50 = vld [vmem:[#allocation9 + $0x6a8] ss:$16 sps:$4 sm:$0xff]   ;;  %v5518_v51 = vld [vmem:[#allocation9 + $0x6c4] ss:$16 sps:$4 sm:$0xff]  }
 0x180   :  { %2727 = vmatprep.subr.bf16.mxu0 %v5494_v55  ;;  %3179 = vmatprep.subr.bf16.mxu1 %v5497_v56  ;;  %v5521_v55 = vld [vmem:[#allocation9 + $0x6cc] ss:$16 sps:$4 sm:$0xff]   ;;  %v703_v56 = vmax.f32 %v575_v38, 0.0  ;;  %v607_v38 = vadd.f32 %v6347_v23, %v437_v25 }
 0x182   :  { %2653 = vmatmul.mubr.bf16.gmra.mrb[4].mxu0 %v774_v63  ;;  %3105 = vmatmul.mubr.bf16.gmra.mrb[4].mxu1 %v774_v63  ;;  %v574_v63 = vadd.f32 %v6359_v13, %v404_v42 }
 0x183   :  { %2728 = vmatpush1.bf16.msra.mxu0 %v5492_v52  ;;  %3180 = vmatpush1.bf16.msra.mxu1 %v5495_v0  ;;  %v711_v52 = vmax.f32 %v583_v1, 0.0  ;;  %v582_v0 = vadd.f32 %v6359_v13, %v412_v45  ;;  %v615_v1 = vadd.f32 %v6347_v23, %v445_v44  ;;  %v436_v45 = vmul.f32 %v6354_v34, %v266_v31 }
 0x184   :  { %2729 = vmatprep.subr.bf16.mxu0 %v5500_v2  ;;  %3181 = vmatprep.subr.bf16.mxu1 %v5503_v5  ;;  %v5519_v2 = vld [vmem:[#allocation9 + $0x6c8] ss:$16 sps:$4 sm:$0xff]   ;;  %v702_v10 = vmax.f32 %v574_v63, 0.0 }
 0x185   :  { %2662 = vmatprep.mubr.bf16.mxu0 %v783_v6  ;;  %3114 = vmatprep.mubr.bf16.mxu1 %v783_v6  ;;  %v799_v5 = vpack.c.bf16 %v711_v52, %v703_v56  ;;  %v591_v6 = vadd.f32 %v6347_v23, %v421_v59  ;;  %v710_v11 = vmax.f32 %v582_v0, 0.0  ;;  %v735_v56 = vmax.f32 %v607_v38, 0.0  ;;  %v5540_v0 = vld [vmem:[#allocation9 + $0x740] ss:$16 sps:$4 sm:$0xff]  }
 0x186   :  { %v743_v52 = vmax.f32 %v615_v1, 0.0  ;;  %v453_v59 = vmul.f32 %v6337_v9, %v283_v40  ;;  %v322_v9 = vsub.s32 6, %v6157_v43  ;;  %v5558_v1 = vld [vmem:[#allocation9 + $0x7a0] ss:$16 sps:$4 sm:$0xff]   ;;  %v5561_v40 = vld [vmem:[#allocation9 + $0x7a8] ss:$16 sps:$4 sm:$0xff]  }
 0x187   :  { %2730 = vmatpush1.bf16.msra.mxu0 %v5498_v17  ;;  %3182 = vmatpush1.bf16.msra.mxu1 %v5501_v18  ;;  %v5525_v17 = vld [vmem:[#allocation9 + $0x6e8] ss:$16 sps:$4 sm:$0xff]   ;;  %v5530_v18 = vld [vmem:[#allocation9 + $0x704] ss:$16 sps:$4 sm:$0xff]   ;;  %v798_v28 = vpack.c.bf16 %v710_v11, %v702_v10 }
 0x188   :  { %2731 = vmatprep.subr.bf16.mxu0 %v5506_v19  ;;  %3183 = vmatprep.subr.bf16.mxu1 %v5509_v20  ;;  %v5533_v19 = vld [vmem:[#allocation9 + $0x70c] ss:$16 sps:$4 sm:$0xff]   ;;  %v5528_v20 = vld [vmem:[#allocation9 + $0x700] ss:$16 sps:$4 sm:$0xff]   ;;  %v815_v10 = vpack.c.bf16 %v743_v52, %v735_v56  ;;  %v623_v11 = vadd.f32 %v6347_v23, %v453_v59  ;;  %v6435_v38 = vrot.slane %v6344_v39, %v322_v9 }
 0x189   :  { %v196_v56 = vld [vmem:[#allocation3 + $0xf0] sm:$0xff]  ;;  %v205_v52 = vld [vmem:[#allocation3 + $0x138] sm:$0xff] }
 0x18a   :  { %2663 = vmatmul.mubr.bf16.gmra.mrb[8].mxu0 %v782_v29  ;;  %3115 = vmatmul.mubr.bf16.gmra.mrb[8].mxu1 %v782_v29  ;;  %v590_v29 = vadd.f32 %v6359_v13, %v420_v58  ;;  %v631_v58 = vadd.f32 %v6347_v23, %v461_v60  ;;  %v751_v25 = vmax.f32 %v623_v11, 0.0  ;;  %v213_v59 = vld [vmem:[#allocation3 + $0x178] sm:$0xff]  ;;  %v5570_v11 = vld [vmem:[#allocation9 + $0x7e0] ss:$16 sps:$4 sm:$0xff]  }
 0x18b   :  { %2732 = vmatpush1.bf16.msra.mxu0 %v5504_v21  ;;  %3184 = vmatpush1.bf16.msra.mxu1 %v5507_v22  ;;  %v5531_v21 = vld [vmem:[#allocation9 + $0x708] ss:$16 sps:$4 sm:$0xff]   ;;  %v719_v22 = vmax.f32 %v591_v6, 0.0 }
 0x18c   :  { %2733 = vmatprep.subr.bf16.mxu0 %v5512_v30  ;;  %3185 = vmatprep.subr.bf16.mxu1 %v5515_v36  ;;  %v598_v30 = vadd.f32 %v6359_v13, %v428_v12  ;;  %v5534_v36 = vld [vmem:[#allocation9 + $0x720] ss:$16 sps:$4 sm:$0xff]   ;;  %v718_v41 = vmax.f32 %v590_v29, 0.0  ;;  %v173_v12 = vld [vmem:[#allocation3 + $0x38] sm:$0xff]  ;;  %v759_v44 = vmax.f32 %v631_v58, 0.0 }
 0x18d   :  { %2672 = vmatprep.mubr.bf16.mxu0 %v791_v37  ;;  %3124 = vmatprep.mubr.bf16.mxu1 %v791_v37  ;;  %v807_v37 = vpack.c.bf16 %v727_v24, %v719_v22  ;;  %v5552_v22 = vld [vmem:[#allocation9 + $0x780] ss:$16 sps:$4 sm:$0xff]   ;;  %v5555_v24 = vld [vmem:[#allocation9 + $0x788] ss:$16 sps:$4 sm:$0xff]  }
 0x18e   :  { %v726_v42 = vmax.f32 %v598_v30, 0.0  ;;  %v172_v30 = vld [vmem:[#allocation3 + $0x30] sm:$0xff]  ;;  %v5573_v58 = vld [vmem:[#allocation9 + $0x7e8] ss:$16 sps:$4 sm:$0xff]  }
 0x18f   :  { %2734 = vmatpush1.bf16.msra.mxu0 %v5510_v49  ;;  %3186 = vmatpush1.bf16.msra.mxu1 %v5513_v50  ;;  %v5537_v49 = vld [vmem:[#allocation9 + $0x728] ss:$16 sps:$4 sm:$0xff]   ;;  %v5542_v50 = vld [vmem:[#allocation9 + $0x744] ss:$16 sps:$4 sm:$0xff]  }
 0x190   :  { %2735 = vmatprep.subr.bf16.mxu0 %v5518_v51  ;;  %3187 = vmatprep.subr.bf16.mxu1 %v5521_v55  ;;  %v5545_v51 = vld [vmem:[#allocation9 + $0x74c] ss:$16 sps:$4 sm:$0xff]   ;;  %v326_v55 = vsub.s32 7, %v6157_v43  ;;  %v806_v63 = vpack.c.bf16 %v726_v42, %v718_v41  ;;  %v823_v41 = vpack.c.bf16 %v759_v44, %v751_v25  ;;  %v204_v25 = vld [vmem:[#allocation3 + $0x130] sm:$0xff] }
 0x191   :  { %v212_v44 = vld [vmem:[#allocation3 + $0x170] sm:$0xff] }
 0x192   :  { %2673 = vmatmul.mubr.bf16.gmra.mrb[12].mxu0 %v790_v61  ;;  %3125 = vmatmul.mubr.bf16.gmra.mrb[12].mxu1 %v790_v61  ;;  %v282_v61 = vld [vmem:[#allocation3 + $0x3a0] sm:$0xff]  ;;  %v6422_v14 = vrot.slane %v6334_v7, %v326_v55  ;;  %v6425_v43 = vrot.slane %v6344_v39, %v326_v55  ;;  %v188_v55 = vld [vmem:[#allocation3 + $0xb0] sm:$0xff] }
 0x193   :  { %2736 = vmatpush1.bf16.msra.mxu0 %v5516_v62  ;;  %3188 = vmatpush1.bf16.msra.mxu1 %v5519_v2  ;;  %v290_v62 = vld [vmem:[#allocation3 + $0x3e0] sm:$0xff]  ;;  %v606_v2 = vadd.f32 %v6359_v13, %v436_v45 }
 0x194   :  { %2737 = vmatprep.subr.bf16.mxu0 %v5524_v3  ;;  %3189 = vmatprep.subr.bf16.mxu1 %v5527_v4  ;;  %v5548_v3 = vld [vmem:[#allocation9 + $0x764] ss:$16 sps:$4 sm:$0xff]   ;;  %v5551_v4 = vld [vmem:[#allocation9 + $0x76c] ss:$16 sps:$4 sm:$0xff]   ;;  %v460_v6 = vmul.f32 %v6354_v34, %v290_v62 }
 0x195   :  { %2682 = vmatprep.mubr.bf16.mxu0 %v799_v5  ;;  %3134 = vmatprep.mubr.bf16.mxu1 %v799_v5  ;;  %v452_v5 = vmul.f32 %v6354_v34, %v282_v61  ;;  %v734_v8 = vmax.f32 %v606_v2, 0.0  ;;  %v5549_v34 = vld [vmem:[#allocation9 + $0x768] ss:$16 sps:$4 sm:$0xff]  }
 0x197   :  { %2738 = vmatpush1.bf16.msra.mxu0 %v5522_v15  ;;  %3190 = vmatpush1.bf16.msra.mxu1 %v5525_v17  ;;  %v742_v15 = vmax.f32 %v614_v57, 0.0  ;;  %v181_v17 = vld [vmem:[#allocation3 + $0x78] sm:$0xff]  ;;  %v622_v23 = vadd.f32 %v6359_v13, %v452_v5  ;;  %v5572_v5 = vld [vmem:[#allocation9 + $0x7e4] ss:$16 sps:$4 sm:$0xff]  }
 0x198   :  { %2739 = vmatprep.subr.bf16.mxu0 %v5530_v18  ;;  %3191 = vmatprep.subr.bf16.mxu1 %v5533_v19  ;;  %v5554_v18 = vld [vmem:[#allocation9 + $0x784] ss:$16 sps:$4 sm:$0xff]   ;;  %v5557_v19 = vld [vmem:[#allocation9 + $0x78c] ss:$16 sps:$4 sm:$0xff]   ;;  %v351_v29 = vmul.f32 %v6422_v14, %v181_v17 }
 0x199   :  { %v814_v31 = vpack.c.bf16 %v742_v15, %v734_v8 }
 0x19a   :  { %2683 = vmatmul.mubr.bf16.gmra.mrb[16].mxu0 %v798_v28  ;;  %3135 = vmatmul.mubr.bf16.gmra.mrb[16].mxu1 %v798_v28  ;;  %v343_v28 = vmul.f32 %v6422_v14, %v173_v12  ;;  %v521_v45 = vadd.f32 %v6425_v43, %v351_v29 }
 0x19b   :  { %2740 = vmatpush1.bf16.msra.mxu0 %v5528_v20  ;;  %3192 = vmatpush1.bf16.msra.mxu1 %v5531_v21  ;;  %v630_v20 = vadd.f32 %v6359_v13, %v460_v6  ;;  %v6430_v21 = vrot.slane %v6334_v7, %v322_v9  ;;  %v189_v13 = vld [vmem:[#allocation3 + $0xb8] sm:$0xff] }
 0x19c   :  { %2741 = vmatprep.subr.bf16.mxu0 %v5536_v33  ;;  %3193 = vmatprep.subr.bf16.mxu1 %v5539_v35  ;;  %v180_v33 = vld [vmem:[#allocation3 + $0x70] sm:$0xff]  ;;  %v197_v35 = vld [vmem:[#allocation3 + $0xf8] sm:$0xff]  ;;  %v513_v42 = vadd.f32 %v6425_v43, %v343_v28  ;;  %v649_v62 = vmax.f32 %v521_v45, 0.0  ;;  %v6464_v45 = vld [vmem:[#allocation12 + $0x110] ss:$8 sps:$4 sm:$0xff]  }
 0x19d   :  { %2692 = vmatprep.mubr.bf16.mxu0 %v807_v37  ;;  %3144 = vmatprep.mubr.bf16.mxu1 %v807_v37  ;;  %v5563_v7 = vld [vmem:[#allocation9 + $0x7ac] ss:$16 sps:$4 sm:$0xff]   ;;  %v758_v37 = vmax.f32 %v630_v20, 0.0  ;;  %v342_v46 = vmul.f32 %v6430_v21, %v172_v30  ;;  %v367_v39 = vmul.f32 %v6422_v14, %v197_v35  ;;  %v366_v9 = vmul.f32 %v6430_v21, %v196_v56 }
 0x19e   :  { %v641_v61 = vmax.f32 %v513_v42, 0.0  ;;  %v5575_v6 = vld [vmem:[#allocation9 + $0x7ec] ss:$16 sps:$4 sm:$0xff]  }
 0x19f   :  { %2742 = vmatpush1.bf16.msra.mxu0 %v5534_v36  ;;  %3194 = vmatpush1.bf16.msra.mxu1 %v5537_v49  ;;  %v750_v36 = vmax.f32 %v622_v23, 0.0  ;;  %v5569_v49 = vld [vmem:[#allocation9 + $0x7cc] ss:$16 sps:$4 sm:$0xff]   ;;  %v536_v20 = vadd.f32 %v6435_v38, %v366_v9 }
 0x1a0   :  { %2743 = vmatprep.subr.bf16.mxu0 %v5542_v50  ;;  %3195 = vmatprep.subr.bf16.mxu1 %v5545_v51  ;;  %v350_v50 = vmul.f32 %v6430_v21, %v180_v33  ;;  %v359_v51 = vmul.f32 %v6422_v14, %v189_v13  ;;  %v769_v12 = vpack.c.bf16 %v649_v62, %v641_v61  ;;  %v221_v30 = vld [vmem:[#allocation3 + $0x1b8] sm:$0xff]  ;;  %v5579_v42 = vld [vmem:[#allocation12 + $0x10] ss:$8 sps:$4 sm:$0xff]  }
 0x1a1   :  { %v822_v60 = vpack.c.bf16 %v758_v37, %v750_v36  ;;  %v6457_v33 = vld [vmem:[#allocation12 + $0x100] ss:$8 sps:$4 sm:$0xff]   ;;  %v664_v35 = vmax.f32 %v536_v20, 0.0  ;;  %v5581_v37 = vld [vmem:[#allocation12 + $0x14] ss:$8 sps:$4 sm:$0xff]  }
 0x1a2   :  { %2693 = vmatmul.mubr.bf16.gmra.mrb[20].mxu0 %v806_v63  ;;  %3145 = vmatmul.mubr.bf16.gmra.mrb[20].mxu1 %v806_v63  ;;  %v512_v63 = vadd.f32 %v6435_v38, %v342_v46  ;;  %v520_v2 = vadd.f32 %v6435_v38, %v350_v50  ;;  %v529_v57 = vadd.f32 %v6425_v43, %v359_v51  ;;  %v6468_v50 = vld [vmem:[#allocation12 + $0x124] ss:$8 sps:$4 sm:$0xff]   ;;  %v220_v51 = vld [vmem:[#allocation3 + $0x1b0] sm:$0xff] }
 0x1a3   :  { %2744 = vmatpush1.bf16.msra.mxu0 %v5540_v0  ;;  %3196 = vmatpush1.bf16.msra.mxu1 %v5543_v53  ;;  %v5564_v0 = vld [vmem:[#allocation9 + $0x7c0] ss:$16 sps:$4 sm:$0xff]   ;;  %v537_v53 = vadd.f32 %v6425_v43, %v367_v39  ;;  %v391_v46 = vmul.f32 %v6422_v14, %v221_v30  ;;  %v5582_v61 = vld [vmem:[#allocation12 + $0x20] ss:$8 sps:$4 sm:$0xff]  }
 0x1a4   :  { %2745 = vmatprep.subr.bf16.mxu0 %v5548_v3  ;;  %3197 = vmatprep.subr.bf16.mxu1 %v5551_v4  ;;  %v358_v3 = vmul.f32 %v6430_v21, %v188_v55  ;;  %v5567_v4 = vld [vmem:[#allocation9 + $0x7c8] ss:$16 sps:$4 sm:$0xff]   ;;  %v640_v8 = vmax.f32 %v512_v63, 0.0  ;;  %v648_v15 = vmax.f32 %v520_v2, 0.0  ;;  %v657_v17 = vmax.f32 %v529_v57, 0.0  ;;  %v228_v39 = vld [vmem:[#allocation3 + $0x1f0] sm:$0xff] }
 0x1a5   :  { %2702 = vmatprep.mubr.bf16.mxu0 %v815_v10  ;;  %3154 = vmatprep.mubr.bf16.mxu1 %v815_v10  ;;  %v383_v10 = vmul.f32 %v6422_v14, %v213_v59  ;;  %v665_v23 = vmax.f32 %v537_v53, 0.0  ;;  %v237_v59 = vld [vmem:[#allocation3 + $0x238] sm:$0xff]  ;;  %v5587_v57 = vld [vmem:[#allocation12 + $0x34] ss:$8 sps:$4 sm:$0xff]  }
 0x1a6   :  { %v768_v28 = vpack.c.bf16 %v648_v15, %v640_v8  ;;  %v6474_v62 = vld [vmem:[#allocation12 + $0x120] ss:$8 sps:$4 sm:$0xff]   ;;  %v6478_v53 = vld [vmem:[#allocation12 + $0x134] ss:$8 sps:$4 sm:$0xff]   ;;  %v5590_v8 = vld [vmem:[#allocation12 + $0x44] ss:$8 sps:$4 sm:$0xff]  }
 0x1a7   :  { %2746 = vmatpush1.bf16.msra.mxu0 %v5546_v26  ;;  %3198 = vmatpush1.bf16.msra.mxu1 %v5549_v34  ;;  %v375_v26 = vmul.f32 %v6422_v14, %v205_v52  ;;  %v528_v34 = vadd.f32 %v6435_v38, %v358_v3  ;;  %v777_v13 = vpack.c.bf16 %v665_v23, %v657_v17  ;;  %v6490_v15 = vld [vmem:[#allocation12 + $0x144] ss:$8 sps:$4 sm:$0xff]   ;;  %v6497_v30 = vld [vmem:[#allocation12 + $0x140] ss:$8 sps:$4 sm:$0xff]  }
 0x1a8   :  { %2747 = vmatprep.subr.bf16.mxu0 %v5554_v18  ;;  %3199 = vmatprep.subr.bf16.mxu1 %v5557_v19  ;;  %v5578_v18 = vld [vmem:[#allocation12 + $0x4] ss:$8 sps:$4 sm:$0xff]  }
 0x1a9   :  { %v6452_v19 = vld [vmem:[#allocation12 + $0x104] ss:$8 sps:$4 sm:$0xff]   ;;  %v656_v29 = vmax.f32 %v528_v34, 0.0 }
 0x1aa   :  { %2703 = vmatmul.mubr.bf16.gmra.mrb[24].mxu0 %v814_v31  ;;  %3155 = vmatmul.mubr.bf16.gmra.mrb[24].mxu1 %v814_v31  ;;  %v229_v31 = vld [vmem:[#allocation3 + $0x1f8] sm:$0xff] }
 0x1ab   :  { %2748 = vmatpush1.bf16.msra.mxu0 %v5552_v22  ;;  %3200 = vmatpush1.bf16.msra.mxu1 %v5555_v24  ;;  %v545_v22 = vadd.f32 %v6425_v43, %v375_v26  ;;  %v553_v24 = vadd.f32 %v6425_v43, %v383_v10  ;;  %v776_v55 = vpack.c.bf16 %v664_v35, %v656_v29  ;;  %v5588_v29 = vld [vmem:[#allocation12 + $0x40] ss:$8 sps:$4 sm:$0xff]  }
 0x1ac   :  { %2749 = vmatprep.subr.bf16.mxu0 %v5560_v32  ;;  %3201 = vmatprep.subr.bf16.mxu1 %v5563_v7  ;;  %v5576_v32 = vld [vmem:[#allocation12] ss:$8 sps:$4 sm:$0xff]   ;;  %v407_v10 = vmul.f32 %v6422_v14, %v237_v59 }
 0x1ad   :  { %2712 = vmatprep.mubr.bf16.mxu0 %v823_v41  ;;  %3164 = vmatprep.mubr.bf16.mxu1 %v823_v41  ;;  %v673_v7 = vmax.f32 %v545_v22, 0.0  ;;  %v681_v36 = vmax.f32 %v553_v24, 0.0  ;;  %v382_v41 = vmul.f32 %v6430_v21, %v212_v44  ;;  %v236_v24 = vld [vmem:[#allocation3 + $0x230] sm:$0xff]  ;;  %v253_v44 = vld [vmem:[#allocation3 + $0x2b8] sm:$0xff] }
 0x1ae   :  { %v577_v20 = vadd.f32 %v6425_v43, %v407_v10 }
 0x1af   :  { %2750 = vmatpush1.bf16.msra.mxu0 %v5558_v1  ;;  %3202 = vmatpush1.bf16.msra.mxu1 %v5561_v40  ;;  %v6459_v1 = vld [vmem:[#allocation12 + $0x114] ss:$8 sps:$4 sm:$0xff]   ;;  %v374_v40 = vmul.f32 %v6430_v21, %v204_v25  ;;  %v552_v52 = vadd.f32 %v6435_v38, %v382_v41  ;;  %v785_v63 = vpack.c.bf16 %v681_v36, %v673_v7 }
 0x1b0   :  { %2751 = vmatprep.subr.bf16.mxu0 %v5566_v47  ;;  %3203 = vmatprep.subr.bf16.mxu1 %v5569_v49  ;;  %v399_v47 = vmul.f32 %v6422_v14, %v229_v31  ;;  %v5584_v49 = vld [vmem:[#allocation12 + $0x24] ss:$8 sps:$4 sm:$0xff]   ;;  %v244_v25 = vld [vmem:[#allocation3 + $0x270] sm:$0xff]  ;;  %v406_v7 = vmul.f32 %v6430_v21, %v236_v24  ;;  %v423_v41 = vmul.f32 %v6422_v14, %v253_v44 }
 0x1b1   :  { %v544_v56 = vadd.f32 %v6435_v38, %v374_v40  ;;  %v5593_v31 = vld [vmem:[#allocation12 + $0x54] ss:$8 sps:$4 sm:$0xff]   ;;  %v414_v36 = vmul.f32 %v6430_v21, %v244_v25  ;;  %v285_v44 = vld [vmem:[#allocation3 + $0x3b8] sm:$0xff] }
 0x1b2   :  { %2713 = vmatmul.mubr.bf16.gmra.mrb[28].mxu0 %v822_v60  ;;  %3165 = vmatmul.mubr.bf16.gmra.mrb[28].mxu1 %v822_v60  ;;  %v245_v60 = vld [vmem:[#allocation3 + $0x278] sm:$0xff]  ;;  %v569_v2 = vadd.f32 %v6425_v43, %v399_v47  ;;  %v6507_v47 = vld [vmem:[#allocation12 + $0x150] ss:$8 sps:$4 sm:$0xff]   ;;  %v268_v24 = vld [vmem:[#allocation3 + $0x330] sm:$0xff] }
 0x1b3   :  { %2752 = vmatpush1.bf16.msra.mxu0 %v5564_v0  ;;  %3204 = vmatpush1.bf16.msra.mxu1 %v5567_v4  ;;  %v561_v0 = vadd.f32 %v6425_v43, %v391_v46  ;;  %v672_v3 = vmax.f32 %v544_v56, 0.0  ;;  %v680_v4 = vmax.f32 %v552_v52, 0.0  ;;  %v5591_v46 = vld [vmem:[#allocation12 + $0x50] ss:$8 sps:$4 sm:$0xff]   ;;  %v593_v52 = vadd.f32 %v6425_v43, %v423_v41  ;;  %v276_v25 = vld [vmem:[#allocation3 + $0x370] sm:$0xff] }
 0x1b4   :  { %2753 = vmatprep.subr.bf16.mxu0 %v5572_v5  ;;  %3205 = vmatprep.subr.bf16.mxu1 %v5575_v6  ;;  %v390_v5 = vmul.f32 %v6430_v21, %v220_v51  ;;  %v398_v6 = vmul.f32 %v6430_v21, %v228_v39  ;;  %v697_v26 = vmax.f32 %v569_v2, 0.0  ;;  %v576_v39 = vadd.f32 %v6435_v38, %v406_v7  ;;  %v5594_v2 = vld [vmem:[#allocation12 + $0x60] ss:$8 sps:$4 sm:$0xff]  }
 0x1b5   :  { %2755 = vmatprep.mubr.bf16.mxu0 %v769_v12  ;;  %3207 = vmatprep.mubr.bf16.mxu1 %v769_v12  ;;  %v689_v9 = vmax.f32 %v561_v0, 0.0  ;;  %v6487_v12 = vld [vmem:[#allocation12 + $0x130] ss:$8 sps:$4 sm:$0xff]   ;;  %v784_v17 = vpack.c.bf16 %v680_v4, %v672_v3  ;;  %v277_v0 = vld [vmem:[#allocation3 + $0x378] sm:$0xff]  ;;  %v438_v7 = vmul.f32 %v6430_v21, %v268_v24  ;;  %v455_v41 = vmul.f32 %v6422_v14, %v285_v44  ;;  %v5644_v24 = vld [vmem:[#allocation12 + $0xf4] ss:$8 sps:$4 sm:$0xff]  }
 0x1b6   :  { %v560_v34 = vadd.f32 %v6435_v38, %v390_v5  ;;  %v704_v3 = vmax.f32 %v576_v39, 0.0  ;;  %v5642_v44 = vld [vmem:[#allocation12 + $0xf0] ss:$8 sps:$4 sm:$0xff]  }
 0x1b7   :  { %2754 = vmatpush1.bf16.msra.mxu0 %v5570_v11  ;;  %3206 = vmatpush1.bf16.msra.mxu1 %v5573_v58  ;;  %v415_v11 = vmul.f32 %v6422_v14, %v245_v60  ;;  %v5585_v58 = vld [vmem:[#allocation12 + $0x30] ss:$8 sps:$4 sm:$0xff]   ;;  %v793_v23 = vpack.c.bf16 %v697_v26, %v689_v9  ;;  %v252_v60 = vld [vmem:[#allocation3 + $0x2b0] sm:$0xff]  ;;  %v721_v9 = vmax.f32 %v593_v52, 0.0  ;;  %v608_v39 = vadd.f32 %v6435_v38, %v438_v7  ;;  %v6560_v7 = vld [vmem:[#allocation12 + $0x1a4] ss:$8 sps:$4 sm:$0xff]  }
 0x1b8   :  { %3780 = vmatprep.subr.bf16.mxu0 %v5578_v18  ;;  %4822 = vmatprep.subr.bf16.mxu1 %v6452_v19  ;;  %v568_v18 = vadd.f32 %v6435_v38, %v398_v6  ;;  %v422_v5 = vmul.f32 %v6430_v21, %v252_v60  ;;  %v625_v52 = vadd.f32 %v6425_v43, %v455_v41  ;;  %v284_v60 = vld [vmem:[#allocation3 + $0x3b0] sm:$0xff] }
 0x1b9   :  { %v585_v22 = vadd.f32 %v6425_v43, %v415_v11  ;;  %v447_v11 = vmul.f32 %v6422_v14, %v277_v0  ;;  %v736_v0 = vmax.f32 %v608_v39, 0.0  ;;  %v6574_v41 = vld [vmem:[#allocation12 + $0x1c0] ss:$8 sps:$4 sm:$0xff]   ;;  %v6590_v39 = vld [vmem:[#allocation12 + $0x1f4] ss:$8 sps:$4 sm:$0xff]  }
 0x1ba   :  { %2756 = vmatmul.mubr.bf16.vlgmr.msra.gmra.mrb[0].mxu0 %v768_v28  ;;  %3208 = vmatmul.mubr.bf16.vlgmr.msra.gmra.mrb[0].mxu1 %v768_v28  ;;  %v261_v28 = vld [vmem:[#allocation3 + $0x2f8] sm:$0xff]  ;;  %v696_v35 = vmax.f32 %v568_v18, 0.0 }
 0x1bb   :  { %2765 = vmatprep.mubr.bf16.mxu0 %v777_v13  ;;  %3217 = vmatprep.mubr.bf16.mxu1 %v777_v13  ;;  %v688_v13 = vmax.f32 %v560_v34, 0.0  ;;  %v713_v40 = vmax.f32 %v585_v22, 0.0  ;;  %v592_v34 = vadd.f32 %v6435_v38, %v422_v5  ;;  %v617_v22 = vadd.f32 %v6425_v43, %v447_v11 }
 0x1bc   :  { %3781 = vmatpush1.bf16.msra.mxu0 %v5576_v32  ;;  %4838 = vmatpush1.bf16.msra.mxu1 %v6457_v33  ;;  %v6500_v32 = vld [vmem:[#allocation12 + $0x154] ss:$8 sps:$4 sm:$0xff]  }
 0x1bd   :  { %3782 = vmatprep.subr.bf16.mxu0 %v5581_v37  ;;  %4823 = vmatprep.subr.bf16.mxu1 %v6459_v1  ;;  %v705_v37 = vmax.f32 %v577_v20, 0.0  ;;  %v792_v51 = vpack.c.bf16 %v696_v35, %v688_v13  ;;  %v720_v13 = vmax.f32 %v592_v34, 0.0  ;;  %v5630_v34 = vld [vmem:[#allocation12 + $0xd0] ss:$8 sps:$4 sm:$0xff]  }
 0x1bf   :  { %v801_v56 = vpack.c.bf16 %v713_v40, %v705_v37  ;;  %v745_v40 = vmax.f32 %v617_v22, 0.0  ;;  %v6537_v22 = vld [vmem:[#allocation12 + $0x160] ss:$8 sps:$4 sm:$0xff]  }
 0x1c0   :  { %3783 = vmatpush1.bf16.msra.mxu0 %v5579_v42  ;;  %4839 = vmatpush1.bf16.msra.mxu1 %v6464_v45  ;;  %v431_v42 = vmul.f32 %v6422_v14, %v261_v28  ;;  %v293_v28 = vld [vmem:[#allocation3 + $0x3f8] sm:$0xff] }
 0x1c1   :  { %3784 = vmatprep.subr.bf16.mxu0 %v5584_v49  ;;  %4824 = vmatprep.subr.bf16.mxu1 %v6468_v50  ;;  %v5596_v49 = vld [vmem:[#allocation12 + $0x64] ss:$8 sps:$4 sm:$0xff]  }
 0x1c2   :  { %2766 = vmatmul.mubr.bf16.gmra.mrb[4].mxu0 %v776_v55  ;;  %3218 = vmatmul.mubr.bf16.gmra.mrb[4].mxu1 %v776_v55  ;;  %v584_v55 = vadd.f32 %v6435_v38, %v414_v36  ;;  %v601_v59 = vadd.f32 %v6425_v43, %v431_v42  ;;  %v446_v36 = vmul.f32 %v6430_v21, %v276_v25  ;;  %v6541_v25 = vld [vmem:[#allocation12 + $0x174] ss:$8 sps:$4 sm:$0xff]  }
 0x1c3   :  { %2775 = vmatprep.mubr.bf16.mxu0 %v785_v63  ;;  %3227 = vmatprep.mubr.bf16.mxu1 %v785_v63  ;;  %v269_v63 = vld [vmem:[#allocation3 + $0x338] sm:$0xff]  ;;  %v463_v42 = vmul.f32 %v6422_v14, %v293_v28  ;;  %v6543_v28 = vld [vmem:[#allocation12 + $0x170] ss:$8 sps:$4 sm:$0xff]  }
 0x1c4   :  { %3785 = vmatpush1.bf16.msra.mxu0 %v5582_v61  ;;  %4840 = vmatpush1.bf16.msra.mxu1 %v6474_v62  ;;  %v260_v61 = vld [vmem:[#allocation3 + $0x2f0] sm:$0xff]  ;;  %v712_v4 = vmax.f32 %v584_v55, 0.0  ;;  %v729_v26 = vmax.f32 %v601_v59, 0.0  ;;  %v439_v10 = vmul.f32 %v6422_v14, %v269_v63  ;;  %v616_v55 = vadd.f32 %v6435_v38, %v446_v36 }
 0x1c5   :  { %3786 = vmatprep.subr.bf16.mxu0 %v5587_v57  ;;  %4825 = vmatprep.subr.bf16.mxu1 %v6478_v53  ;;  %v5599_v57 = vld [vmem:[#allocation12 + $0x74] ss:$8 sps:$4 sm:$0xff]   ;;  %v430_v6 = vmul.f32 %v6430_v21, %v260_v61  ;;  %v633_v59 = vadd.f32 %v6425_v43, %v463_v42  ;;  %v5612_v63 = vld [vmem:[#allocation12 + $0xa0] ss:$8 sps:$4 sm:$0xff]  }
 0x1c6   :  { %v609_v20 = vadd.f32 %v6425_v43, %v439_v10  ;;  %v292_v61 = vld [vmem:[#allocation3 + $0x3f0] sm:$0xff]  ;;  %v5618_v43 = vld [vmem:[#allocation12 + $0xb0] ss:$8 sps:$4 sm:$0xff]  }
 0x1c7   :  { %v600_v18 = vadd.f32 %v6435_v38, %v430_v6  ;;  %v5620_v14 = vld [vmem:[#allocation12 + $0xb4] ss:$8 sps:$4 sm:$0xff]   ;;  %v761_v5 = vmax.f32 %v633_v59, 0.0  ;;  %v5626_v6 = vld [vmem:[#allocation12 + $0xc4] ss:$8 sps:$4 sm:$0xff]  }
 0x1c8   :  { %3787 = vmatpush1.bf16.msra.mxu0 %v5585_v58  ;;  %4841 = vmatpush1.bf16.msra.mxu1 %v6487_v12  ;;  %v5597_v58 = vld [vmem:[#allocation12 + $0x70] ss:$8 sps:$4 sm:$0xff]   ;;  %v737_v37 = vmax.f32 %v609_v20, 0.0  ;;  %v5636_v20 = vld [vmem:[#allocation12 + $0xe0] ss:$8 sps:$4 sm:$0xff]  }
 0x1c9   :  { %3788 = vmatprep.subr.bf16.mxu0 %v5590_v8  ;;  %4826 = vmatprep.subr.bf16.mxu1 %v6490_v15  ;;  %v5602_v8 = vld [vmem:[#allocation12 + $0x84] ss:$8 sps:$4 sm:$0xff]   ;;  %v728_v35 = vmax.f32 %v600_v18, 0.0  ;;  %v6562_v36 = vld [vmem:[#allocation12 + $0x1a0] ss:$8 sps:$4 sm:$0xff]  }
 0x1ca   :  { %2776 = vmatmul.mubr.bf16.gmra.mrb[8].mxu0 %v784_v17  ;;  %3228 = vmatmul.mubr.bf16.gmra.mrb[8].mxu1 %v784_v17  ;;  %v800_v17 = vpack.c.bf16 %v712_v4, %v704_v3  ;;  %v462_v3 = vmul.f32 %v6430_v21, %v292_v61  ;;  %v753_v4 = vmax.f32 %v625_v52, 0.0  ;;  %v6578_v42 = vld [vmem:[#allocation12 + $0x1d4] ss:$8 sps:$4 sm:$0xff]  }
 0x1cb   :  { %2785 = vmatprep.mubr.bf16.mxu0 %v793_v23  ;;  %3237 = vmatprep.mubr.bf16.mxu1 %v793_v23  ;;  %v809_v23 = vpack.c.bf16 %v729_v26, %v721_v9 }
 0x1cc   :  { %3789 = vmatpush1.bf16.msra.mxu0 %v5588_v29  ;;  %4842 = vmatpush1.bf16.msra.mxu1 %v6497_v30  ;;  %v5600_v29 = vld [vmem:[#allocation12 + $0x80] ss:$8 sps:$4 sm:$0xff]   ;;  %v632_v10 = vadd.f32 %v6435_v38, %v462_v3  ;;  %v825_v11 = vpack.c.bf16 %v761_v5, %v753_v4 }
 0x1cd   :  { %3790 = vmatprep.subr.bf16.mxu0 %v5593_v31  ;;  %4827 = vmatprep.subr.bf16.mxu1 %v6500_v32  ;;  %v5608_v31 = vld [vmem:[#allocation12 + $0x94] ss:$8 sps:$4 sm:$0xff]  }
 0x1d0   :  { %3791 = vmatpush1.bf16.msra.mxu0 %v5591_v46  ;;  %4843 = vmatpush1.bf16.msra.mxu1 %v6507_v47  ;;  %v5606_v46 = vld [vmem:[#allocation12 + $0x90] ss:$8 sps:$4 sm:$0xff]  }
 0x1d1   :  { %3792 = vmatprep.subr.bf16.mxu0 %v5596_v49  ;;  %v5614_v49 = vld [vmem:[#allocation12 + $0xa4] ss:$8 sps:$4 sm:$0xff]  }
 0x1d2   :  { %2786 = vmatmul.mubr.bf16.gmra.mrb[12].mxu0 %v792_v51  ;;  %3238 = vmatmul.mubr.bf16.gmra.mrb[12].mxu1 %v792_v51  ;;  %v808_v51 = vpack.c.bf16 %v728_v35, %v720_v13  ;;  %v6554_v13 = vld [vmem:[#allocation12 + $0x194] ss:$8 sps:$4 sm:$0xff]   ;;  %v6556_v35 = vld [vmem:[#allocation12 + $0x190] ss:$8 sps:$4 sm:$0xff]  }
 0x1d3   :  { %2795 = vmatprep.mubr.bf16.mxu0 %v801_v56  ;;  %3247 = vmatprep.mubr.bf16.mxu1 %v801_v56  ;;  %v817_v56 = vpack.c.bf16 %v745_v40, %v737_v37  ;;  %v6568_v37 = vld [vmem:[#allocation12 + $0x1b0] ss:$8 sps:$4 sm:$0xff]   ;;  %v6572_v40 = vld [vmem:[#allocation12 + $0x1c4] ss:$8 sps:$4 sm:$0xff]  }
 0x1d4   :  { %3793 = vmatpush1.bf16.msra.mxu0 %v5594_v2  ;;  %v744_v2 = vmax.f32 %v616_v55, 0.0  ;;  %v6592_v55 = vld [vmem:[#allocation12 + $0x1f0] ss:$8 sps:$4 sm:$0xff]  }
 0x1d5   :  { %3794 = vmatprep.subr.bf16.mxu0 %v5599_v57  ;;  %v454_v57 = vmul.f32 %v6430_v21, %v284_v60 }
 0x1d6   :  { %v816_v9 = vpack.c.bf16 %v744_v2, %v736_v0 }
 0x1d7   :  { %v624_v26 = vadd.f32 %v6435_v38, %v454_v57  ;;  %v6535_v38 = vld [vmem:[#allocation12 + $0x164] ss:$8 sps:$4 sm:$0xff]  }
 0x1d8   :  { %3795 = vmatpush1.bf16.msra.mxu0 %v5597_v58  ;;  %v5624_v58 = vld [vmem:[#allocation12 + $0xc0] ss:$8 sps:$4 sm:$0xff]   ;;  %4828 = vmatprep.subr.bf16.mxu1 %v6535_v38 }
 0x1d9   :  { %3796 = vmatprep.subr.bf16.mxu0 %v5602_v8  ;;  %v5632_v8 = vld [vmem:[#allocation12 + $0xd4] ss:$8 sps:$4 sm:$0xff]   ;;  %v752_v21 = vmax.f32 %v624_v26, 0.0  ;;  %4844 = vmatpush1.bf16.msra.mxu1 %v6537_v22 }
 0x1da   :  { %2796 = vmatmul.mubr.bf16.gmra.mrb[16].mxu0 %v800_v17  ;;  %3248 = vmatmul.mubr.bf16.gmra.mrb[16].mxu1 %v800_v17  ;;  %v760_v17 = vmax.f32 %v632_v10, 0.0 }
 0x1db   :  { %2805 = vmatprep.mubr.bf16.mxu0 %v809_v23  ;;  %3257 = vmatprep.mubr.bf16.mxu1 %v809_v23  ;;  %v5638_v23 = vld [vmem:[#allocation12 + $0xe4] ss:$8 sps:$4 sm:$0xff]  }
 0x1dc   :  { %3797 = vmatpush1.bf16.msra.mxu0 %v5600_v29  ;;  %v824_v18 = vpack.c.bf16 %v760_v17, %v752_v21  ;;  %4829 = vmatprep.subr.bf16.mxu1 %v6541_v25  ;;  %v6548_v29 = vld [vmem:[#allocation12 + $0x184] ss:$8 sps:$4 sm:$0xff]  }
 0x1dd   :  { %3798 = vmatprep.subr.bf16.mxu0 %v5608_v31  ;;  %4845 = vmatpush1.bf16.msra.mxu1 %v6543_v28  ;;  %v6550_v31 = vld [vmem:[#allocation12 + $0x180] ss:$8 sps:$4 sm:$0xff]  }
 0x1de   :  { %4830 = vmatprep.subr.bf16.mxu1 %v6548_v29 }
 0x1e0   :  { %3799 = vmatpush1.bf16.msra.mxu0 %v5606_v46  ;;  %v6580_v46 = vld [vmem:[#allocation12 + $0x1d0] ss:$8 sps:$4 sm:$0xff]  }
 0x1e1   :  { %3800 = vmatprep.subr.bf16.mxu0 %v5614_v49  ;;  %4846 = vmatpush1.bf16.msra.mxu1 %v6550_v31  ;;  %v6584_v49 = vld [vmem:[#allocation12 + $0x1e4] ss:$8 sps:$4 sm:$0xff]  }
 0x1e2   :  { %2806 = vmatmul.mubr.bf16.gmra.mrb[20].mxu0 %v808_v51  ;;  %3258 = vmatmul.mubr.bf16.gmra.mrb[20].mxu1 %v808_v51  ;;  %v6586_v51 = vld [vmem:[#allocation12 + $0x1e0] ss:$8 sps:$4 sm:$0xff]  }
 0x1e3   :  { %2815 = vmatprep.mubr.bf16.mxu0 %v817_v56  ;;  %3267 = vmatprep.mubr.bf16.mxu1 %v817_v56  ;;  %v1082_v56 = vld [vmem:[#allocation11] sm:$0xf] }
 0x1e4   :  { %3801 = vmatpush1.bf16.msra.mxu0 %v5612_v63  ;;  %4831 = vmatprep.subr.bf16.mxu1 %v6554_v13  ;;  %v6597_v52 = vrot.slane %v1082_v56, %v6167_v54  ;;  %v6600_v59 = vrot.slane %v1082_v56, %v6255_v27  ;;  %v6603_v60 = vrot.slane %v1082_v56, %v6160_v48 }
 0x1e5   :  { %3802 = vmatprep.subr.bf16.mxu0 %v5620_v14  ;;  %4847 = vmatpush1.bf16.msra.mxu1 %v6556_v35  ;;  %v6606_v61 = vrot.slane %v1082_v56, %v6246_v16 }
 0x1e6   :  { %4832 = vmatprep.subr.bf16.mxu1 %v6560_v7 }
 0x1e8   :  { %3803 = vmatpush1.bf16.msra.mxu0 %v5618_v43 }
 0x1e9   :  { %3804 = vmatprep.subr.bf16.mxu0 %v5626_v6  ;;  %4848 = vmatpush1.bf16.msra.mxu1 %v6562_v36 }
 0x1ea   :  { %2816 = vmatmul.mubr.bf16.gmra.mrb[24].mxu0 %v816_v9  ;;  %3268 = vmatmul.mubr.bf16.gmra.mrb[24].mxu1 %v816_v9 }
 0x1eb   :  { %2825 = vmatprep.mubr.bf16.mxu0 %v825_v11  ;;  %3277 = vmatprep.mubr.bf16.mxu1 %v825_v11 }
 0x1ec   :  { %3805 = vmatpush1.bf16.msra.mxu0 %v5624_v58 }
 0x1ed   :  { %3806 = vmatprep.subr.bf16.mxu0 %v5632_v8 }
 0x1f0   :  { %3807 = vmatpush1.bf16.msra.mxu0 %v5630_v34 }
 0x1f1   :  { %3808 = vmatprep.subr.bf16.mxu0 %v5638_v23 }
 0x1f2   :  { %2826 = vmatmul.mubr.bf16.gmra.mrb[28].mxu0 %v824_v18  ;;  %3278 = vmatmul.mubr.bf16.gmra.mrb[28].mxu1 %v824_v18 }
 0x1f4   :  { %3809 = vmatpush1.bf16.msra.mxu0 %v5636_v20 }
 0x1f5   :  { %3810 = vmatprep.subr.bf16.mxu0 %v5644_v24 }
 0x1f8   :  { %3811 = vmatpush1.bf16.msra.mxu0 %v5642_v44 }
 0x1f9   :  { %3893 = vmatprep.subr.bf16.mxu0 %v6452_v19  ;;  %v6566_v19 = vld [vmem:[#allocation12 + $0x1b4] ss:$8 sps:$4 sm:$0xff]  }
 0x1fa   :  { %4833 = vmatprep.subr.bf16.mxu1 %v6566_v19 }
 0x1fb   :  { %4849 = vmatpush1.bf16.msra.mxu1 %v6568_v37 }
 0x1fc   :  { %4834 = vmatprep.subr.bf16.mxu1 %v6572_v40 }
 0x1ff   :  { %4850 = vmatpush1.bf16.msra.mxu1 %v6574_v41 }
 0x200   :  { %4835 = vmatprep.subr.bf16.mxu1 %v6578_v42 }
 0x203   :  { %4851 = vmatpush1.bf16.msra.mxu1 %v6580_v46 }
 0x204   :  { %4836 = vmatprep.subr.bf16.mxu1 %v6584_v49 }
 0x207   :  { %4852 = vmatpush1.bf16.msra.mxu1 %v6586_v51 }
 0x208   :  { %4837 = vmatprep.subr.bf16.mxu1 %v6590_v39 }
 0x20b   :  { %4853 = vmatpush1.bf16.msra.mxu1 %v6592_v55 }
 0x28d   :  { %v2757_v63 = vpop.f32.mrb[0].mxu0  ;;  %v3209_v14 = vpop.f32.mrb[0].mxu1 }
 0x28e   :  { %v4854_v0 = vadd.f32 %v2757_v63, %v6597_v52  ;;  %v4886_v2 = vadd.f32 %v3209_v14, %v6600_v59  ;;  %v2759_v57 = vpop.f32.mrb[1].mxu0  ;;  %v3211_v3 = vpop.f32.mrb[1].mxu1 }
 0x28f   :  { %v4855_v4 = vadd.f32 %v2759_v57, %v6603_v60  ;;  %v4887_v5 = vadd.f32 %v3211_v3, %v6606_v61  ;;  %v2761_v27 = vpop.f32.mrb[2].mxu0  ;;  %v3213_v43 = vpop.f32.mrb[2].mxu1 }
 0x290   :  { %v4856_v6 = vadd.f32 %v2761_v27, %v6597_v52  ;;  %v4888_v9 = vadd.f32 %v3213_v43, %v6600_v59  ;;  %v2763_v16 = vpop.f32.mrb[3].mxu0  ;;  %v3215_v26 = vpop.f32.mrb[3].mxu1  ;;  %v3288_v58 = vmax.f32 %v4854_v0, 0.0  ;;  %v3290_v8 = vmax.f32 %v4886_v2, 0.0 }
 0x291   :  { %v4857_v10 = vadd.f32 %v2763_v16, %v6603_v60  ;;  %v4889_v11 = vadd.f32 %v3215_v26, %v6606_v61  ;;  %v3289_v34 = vmax.f32 %v4855_v4, 0.0  ;;  %v3291_v18 = vmax.f32 %v4887_v5, 0.0 }
 0x292   :  { %v3292_v21 = vmax.f32 %v4856_v6, 0.0  ;;  %v3294_v17 = vmax.f32 %v4888_v9, 0.0 }
 0x293   :  { %v3293_v23 = vmax.f32 %v4857_v10, 0.0  ;;  %v3295_v20 = vmax.f32 %v4889_v11, 0.0 }
 0x294   :  { %v3352_v24 = vpack.c.bf16 %v3292_v21, %v3288_v58  ;;  %v6616_v44 = vpack.c.bf16 %v3294_v17, %v3290_v8 }
 0x295   :  { %v3353_v56 = vpack.c.bf16 %v3293_v23, %v3289_v34  ;;  %v6618_v63 = vpack.c.bf16 %v3295_v20, %v3291_v18  ;;  %v2767_v14 = vpop.f32.mrb[4].mxu0  ;;  %v3219_v57 = vpop.f32.mrb[4].mxu1 }
 0x296   :  { %v4858_v3 = vadd.f32 %v2767_v14, %v6597_v52  ;;  %v4890_v27 = vadd.f32 %v3219_v57, %v6600_v59  ;;  %v2769_v0 = vpop.f32.mrb[5].mxu0  ;;  %v3221_v2 = vpop.f32.mrb[5].mxu1 }
 0x297   :  { %v4859_v43 = vadd.f32 %v2769_v0, %v6603_v60  ;;  %v4891_v4 = vadd.f32 %v3221_v2, %v6606_v61  ;;  %v2771_v5 = vpop.f32.mrb[6].mxu0  ;;  %v3223_v6 = vpop.f32.mrb[6].mxu1  ;;  %3812 = vmatprep.mubr.bf16.mxu0 %v3353_v56 }
 0x298   :  { %v4860_v9 = vadd.f32 %v2771_v5, %v6597_v52  ;;  %v4892_v16 = vadd.f32 %v3223_v6, %v6600_v59  ;;  %v2773_v26 = vpop.f32.mrb[7].mxu0  ;;  %v3225_v10 = vpop.f32.mrb[7].mxu1  ;;  %3813 = vmatmul.mubr.bf16.vlgmr.msra.gmra.mrb[32].mxu0 %v3352_v24  ;;  %v3296_v8 = vmax.f32 %v4858_v3, 0.0  ;;  %v3298_v21 = vmax.f32 %v4890_v27, 0.0 }
 0x299   :  { %v4861_v11 = vadd.f32 %v2773_v26, %v6603_v60  ;;  %v4893_v58 = vadd.f32 %v3225_v10, %v6606_v61  ;;  %3894 = vmatpush1.bf16.msra.mxu0 %v6457_v33  ;;  %v3297_v18 = vmax.f32 %v4859_v43, 0.0  ;;  %v3299_v23 = vmax.f32 %v4891_v4, 0.0 }
 0x29a   :  { %v3300_v17 = vmax.f32 %v4860_v9, 0.0  ;;  %v3302_v34 = vmax.f32 %v4892_v16, 0.0  ;;  %3895 = vmatprep.subr.bf16.mxu0 %v6459_v1 }
 0x29b   :  { %v3301_v20 = vmax.f32 %v4861_v11, 0.0  ;;  %v3303_v56 = vmax.f32 %v4893_v58, 0.0 }
 0x29c   :  { %v3356_v14 = vpack.c.bf16 %v3300_v17, %v3296_v8  ;;  %v6630_v57 = vpack.c.bf16 %v3302_v34, %v3298_v21 }
 0x29d   :  { %v3357_v24 = vpack.c.bf16 %v3301_v20, %v3297_v18  ;;  %v6632_v0 = vpack.c.bf16 %v3303_v56, %v3299_v23  ;;  %v2777_v2 = vpop.f32.mrb[8].mxu0  ;;  %v3229_v5 = vpop.f32.mrb[8].mxu1  ;;  %3896 = vmatpush1.bf16.msra.mxu0 %v6464_v45 }
 0x29e   :  { %v4862_v33 = vadd.f32 %v2777_v2, %v6597_v52  ;;  %v4894_v3 = vadd.f32 %v3229_v5, %v6600_v59  ;;  %v2779_v27 = vpop.f32.mrb[9].mxu0  ;;  %v3231_v1 = vpop.f32.mrb[9].mxu1  ;;  %3897 = vmatprep.subr.bf16.mxu0 %v6468_v50 }
 0x29f   :  { %v4863_v43 = vadd.f32 %v2779_v27, %v6603_v60  ;;  %v4895_v4 = vadd.f32 %v3231_v1, %v6606_v61  ;;  %v2781_v6 = vpop.f32.mrb[10].mxu0  ;;  %v3233_v9 = vpop.f32.mrb[10].mxu1  ;;  %3822 = vmatprep.mubr.bf16.mxu0 %v3357_v24 }
 0x2a0   :  { %v4864_v16 = vadd.f32 %v2781_v6, %v6597_v52  ;;  %v4896_v26 = vadd.f32 %v3233_v9, %v6600_v59  ;;  %v2783_v45 = vpop.f32.mrb[11].mxu0  ;;  %v3235_v10 = vpop.f32.mrb[11].mxu1  ;;  %3823 = vmatmul.mubr.bf16.gmra.mrb[36].mxu0 %v3356_v14  ;;  %v3304_v50 = vmax.f32 %v4862_v33, 0.0  ;;  %v3306_v8 = vmax.f32 %v4894_v3, 0.0 }
 0x2a1   :  { %v4865_v11 = vadd.f32 %v2783_v45, %v6603_v60  ;;  %v4897_v58 = vadd.f32 %v3235_v10, %v6606_v61  ;;  %3898 = vmatpush1.bf16.msra.mxu0 %v6474_v62  ;;  %v3305_v34 = vmax.f32 %v4863_v43, 0.0  ;;  %v3307_v18 = vmax.f32 %v4895_v4, 0.0 }
 0x2a2   :  { %v3308_v21 = vmax.f32 %v4864_v16, 0.0  ;;  %v3310_v17 = vmax.f32 %v4896_v26, 0.0  ;;  %3899 = vmatprep.subr.bf16.mxu0 %v6478_v53 }
 0x2a3   :  { %v3309_v23 = vmax.f32 %v4865_v11, 0.0  ;;  %v3311_v20 = vmax.f32 %v4897_v58, 0.0 }
 0x2a4   :  { %v3360_v56 = vpack.c.bf16 %v3308_v21, %v3304_v50  ;;  %v6646_v24 = vpack.c.bf16 %v3310_v17, %v3306_v8 }
 0x2a5   :  { %v3361_v14 = vpack.c.bf16 %v3309_v23, %v3305_v34  ;;  %v6648_v2 = vpack.c.bf16 %v3311_v20, %v3307_v18  ;;  %v2787_v5 = vpop.f32.mrb[12].mxu0  ;;  %v3239_v27 = vpop.f32.mrb[12].mxu1  ;;  %3900 = vmatpush1.bf16.msra.mxu0 %v6487_v12 }
 0x2a6   :  { %v4866_v62 = vadd.f32 %v2787_v5, %v6597_v52  ;;  %v4898_v33 = vadd.f32 %v3239_v27, %v6600_v59  ;;  %v2789_v3 = vpop.f32.mrb[13].mxu0  ;;  %v3241_v53 = vpop.f32.mrb[13].mxu1  ;;  %3901 = vmatprep.subr.bf16.mxu0 %v6490_v15 }
 0x2a7   :  { %v4867_v1 = vadd.f32 %v2789_v3, %v6603_v60  ;;  %v4899_v43 = vadd.f32 %v3241_v53, %v6606_v61  ;;  %v2791_v4 = vpop.f32.mrb[14].mxu0  ;;  %v3243_v6 = vpop.f32.mrb[14].mxu1  ;;  %3832 = vmatprep.mubr.bf16.mxu0 %v3361_v14 }
 0x2a8   :  { %v4868_v9 = vadd.f32 %v2791_v4, %v6597_v52  ;;  %v4900_v16 = vadd.f32 %v3243_v6, %v6600_v59  ;;  %v2793_v12 = vpop.f32.mrb[15].mxu0  ;;  %v3245_v26 = vpop.f32.mrb[15].mxu1  ;;  %3833 = vmatmul.mubr.bf16.gmra.mrb[40].mxu0 %v3360_v56  ;;  %v3312_v15 = vmax.f32 %v4866_v62, 0.0  ;;  %v3314_v11 = vmax.f32 %v4898_v33, 0.0 }
 0x2a9   :  { %v4869_v45 = vadd.f32 %v2793_v12, %v6603_v60  ;;  %v4901_v10 = vadd.f32 %v3245_v26, %v6606_v61  ;;  %3902 = vmatpush1.bf16.msra.mxu0 %v6497_v30  ;;  %v3313_v8 = vmax.f32 %v4867_v1, 0.0  ;;  %v3315_v21 = vmax.f32 %v4899_v43, 0.0 }
 0x2aa   :  { %v3316_v58 = vmax.f32 %v4868_v9, 0.0  ;;  %v3318_v50 = vmax.f32 %v4900_v16, 0.0  ;;  %3903 = vmatprep.subr.bf16.mxu0 %v6500_v32 }
 0x2ab   :  { %v3317_v17 = vmax.f32 %v4869_v45, 0.0  ;;  %v3319_v34 = vmax.f32 %v4901_v10, 0.0 }
 0x2ac   :  { %v3364_v18 = vpack.c.bf16 %v3316_v58, %v3312_v15  ;;  %v6662_v23 = vpack.c.bf16 %v3318_v50, %v3314_v11 }
 0x2ad   :  { %v3365_v20 = vpack.c.bf16 %v3317_v17, %v3313_v8  ;;  %v6664_v56 = vpack.c.bf16 %v3319_v34, %v3315_v21  ;;  %v2797_v14 = vpop.f32.mrb[16].mxu0  ;;  %v3249_v5 = vpop.f32.mrb[16].mxu1  ;;  %3904 = vmatpush1.bf16.msra.mxu0 %v6507_v47 }
 0x2ae   :  { %v4870_v30 = vadd.f32 %v2797_v14, %v6597_v52  ;;  %v4902_v27 = vadd.f32 %v3249_v5, %v6600_v59  ;;  %v2799_v62 = vpop.f32.mrb[17].mxu0  ;;  %v3251_v32 = vpop.f32.mrb[17].mxu1  ;;  %3905 = vmatprep.subr.bf16.mxu0 %v6535_v38 }
 0x2af   :  { %v4871_v33 = vadd.f32 %v2799_v62, %v6603_v60  ;;  %v4903_v3 = vadd.f32 %v3251_v32, %v6606_v61  ;;  %v2801_v53 = vpop.f32.mrb[18].mxu0  ;;  %v3253_v1 = vpop.f32.mrb[18].mxu1  ;;  %3842 = vmatprep.mubr.bf16.mxu0 %v3365_v20 }
 0x2b0   :  { %v4872_v43 = vadd.f32 %v2801_v53, %v6597_v52  ;;  %v4904_v4 = vadd.f32 %v3253_v1, %v6600_v59  ;;  %v2803_v47 = vpop.f32.mrb[19].mxu0  ;;  %v3255_v6 = vpop.f32.mrb[19].mxu1  ;;  %3843 = vmatmul.mubr.bf16.gmra.mrb[44].mxu0 %v3364_v18  ;;  %v3320_v38 = vmax.f32 %v4870_v30, 0.0  ;;  %v3322_v12 = vmax.f32 %v4902_v27, 0.0 }
 0x2b1   :  { %v4873_v9 = vadd.f32 %v2803_v47, %v6603_v60  ;;  %v4905_v16 = vadd.f32 %v3255_v6, %v6606_v61  ;;  %3906 = vmatpush1.bf16.msra.mxu0 %v6537_v22  ;;  %v3321_v10 = vmax.f32 %v4871_v33, 0.0  ;;  %v3323_v15 = vmax.f32 %v4903_v3, 0.0 }
 0x2b2   :  { %v3324_v26 = vmax.f32 %v4872_v43, 0.0  ;;  %v3326_v45 = vmax.f32 %v4904_v4, 0.0  ;;  %3907 = vmatprep.subr.bf16.mxu0 %v6541_v25 }
 0x2b3   :  { %v3325_v11 = vmax.f32 %v4873_v9, 0.0  ;;  %v3327_v58 = vmax.f32 %v4905_v16, 0.0 }
 0x2b4   :  { %v3368_v50 = vpack.c.bf16 %v3324_v26, %v3320_v38  ;;  %v3370_v8 = vpack.c.bf16 %v3326_v45, %v3322_v12 }
 0x2b5   :  { %v3369_v21 = vpack.c.bf16 %v3325_v11, %v3321_v10  ;;  %v3371_v17 = vpack.c.bf16 %v3327_v58, %v3323_v15  ;;  %v2807_v34 = vpop.f32.mrb[20].mxu0  ;;  %v3259_v18 = vpop.f32.mrb[20].mxu1  ;;  %3908 = vmatpush1.bf16.msra.mxu0 %v6543_v28 }
 0x2b6   :  { %v4874_v22 = vadd.f32 %v2807_v34, %v6597_v52  ;;  %v4906_v20 = vadd.f32 %v3259_v18, %v6600_v59  ;;  %v2809_v14 = vpop.f32.mrb[21].mxu0  ;;  %v3261_v5 = vpop.f32.mrb[21].mxu1  ;;  %3909 = vmatprep.subr.bf16.mxu0 %v6548_v29 }
 0x2b7   :  { %v4875_v25 = vadd.f32 %v2809_v14, %v6603_v60  ;;  %v4907_v30 = vadd.f32 %v3261_v5, %v6606_v61  ;;  %v2811_v27 = vpop.f32.mrb[22].mxu0  ;;  %v3263_v62 = vpop.f32.mrb[22].mxu1  ;;  %3852 = vmatprep.mubr.bf16.mxu0 %v3369_v21  ;;  %3965 = vmatprep.mubr.bf16.mxu1 %v3371_v17 }
 0x2b8   :  { %v4876_v32 = vadd.f32 %v2811_v27, %v6597_v52  ;;  %v4908_v28 = vadd.f32 %v3263_v62, %v6600_v59  ;;  %v2813_v33 = vpop.f32.mrb[23].mxu0  ;;  %v3265_v3 = vpop.f32.mrb[23].mxu1  ;;  %3853 = vmatmul.mubr.bf16.gmra.mrb[48].mxu0 %v3368_v50  ;;  %3966 = vmatmul.mubr.bf16.vlgmr.msra.gmra.mrb[32].mxu1 %v3370_v8  ;;  %v3328_v1 = vmax.f32 %v4874_v22, 0.0  ;;  %v3330_v43 = vmax.f32 %v4906_v20, 0.0 }
 0x2b9   :  { %v4877_v53 = vadd.f32 %v2813_v33, %v6603_v60  ;;  %v4909_v29 = vadd.f32 %v3265_v3, %v6606_v61  ;;  %3910 = vmatpush1.bf16.msra.mxu0 %v6550_v31  ;;  %v3329_v6 = vmax.f32 %v4875_v25, 0.0  ;;  %v3331_v9 = vmax.f32 %v4907_v30, 0.0 }
 0x2ba   :  { %v3332_v4 = vmax.f32 %v4876_v32, 0.0  ;;  %v3334_v47 = vmax.f32 %v4908_v28, 0.0  ;;  %3911 = vmatprep.subr.bf16.mxu0 %v6554_v13 }
 0x2bb   :  { %v3333_v16 = vmax.f32 %v4877_v53, 0.0  ;;  %v3335_v38 = vmax.f32 %v4909_v29, 0.0 }
 0x2bc   :  { %v3372_v12 = vpack.c.bf16 %v3332_v4, %v3328_v1  ;;  %v3374_v26 = vpack.c.bf16 %v3334_v47, %v3330_v43 }
 0x2bd   :  { %v3373_v45 = vpack.c.bf16 %v3333_v16, %v3329_v6  ;;  %v3375_v10 = vpack.c.bf16 %v3335_v38, %v3331_v9  ;;  %v2817_v15 = vpop.f32.mrb[24].mxu0  ;;  %v3269_v11 = vpop.f32.mrb[24].mxu1  ;;  %3912 = vmatpush1.bf16.msra.mxu0 %v6556_v35 }
 0x2be   :  { %v4878_v31 = vadd.f32 %v2817_v15, %v6597_v52  ;;  %v4910_v58 = vadd.f32 %v3269_v11, %v6600_v59  ;;  %v2819_v50 = vpop.f32.mrb[25].mxu0  ;;  %v3271_v8 = vpop.f32.mrb[25].mxu1  ;;  %3913 = vmatprep.subr.bf16.mxu0 %v6560_v7 }
 0x2bf   :  { %v4879_v13 = vadd.f32 %v2819_v50, %v6603_v60  ;;  %v4911_v21 = vadd.f32 %v3271_v8, %v6606_v61  ;;  %v2821_v17 = vpop.f32.mrb[26].mxu0  ;;  %v3273_v34 = vpop.f32.mrb[26].mxu1  ;;  %3862 = vmatprep.mubr.bf16.mxu0 %v3373_v45  ;;  %3975 = vmatprep.mubr.bf16.mxu1 %v3375_v10 }
 0x2c0   :  { %v4880_v18 = vadd.f32 %v2821_v17, %v6597_v52  ;;  %v4912_v35 = vadd.f32 %v3273_v34, %v6600_v59  ;;  %v2823_v22 = vpop.f32.mrb[27].mxu0  ;;  %v3275_v20 = vpop.f32.mrb[27].mxu1  ;;  %3863 = vmatmul.mubr.bf16.gmra.mrb[52].mxu0 %v3372_v12  ;;  %3976 = vmatmul.mubr.bf16.gmra.mrb[36].mxu1 %v3374_v26  ;;  %v3336_v5 = vmax.f32 %v4878_v31, 0.0  ;;  %v3338_v25 = vmax.f32 %v4910_v58, 0.0 }
 0x2c1   :  { %v4881_v14 = vadd.f32 %v2823_v22, %v6603_v60  ;;  %v4913_v7 = vadd.f32 %v3275_v20, %v6606_v61  ;;  %3914 = vmatpush1.bf16.msra.mxu0 %v6562_v36  ;;  %v3337_v62 = vmax.f32 %v4879_v13, 0.0  ;;  %v3339_v32 = vmax.f32 %v4911_v21, 0.0 }
 0x2c2   :  { %v3340_v30 = vmax.f32 %v4880_v18, 0.0  ;;  %v3342_v27 = vmax.f32 %v4912_v35, 0.0  ;;  %3915 = vmatprep.subr.bf16.mxu0 %v6566_v19 }
 0x2c3   :  { %v3341_v28 = vmax.f32 %v4881_v14, 0.0  ;;  %v3343_v33 = vmax.f32 %v4913_v7, 0.0 }
 0x2c4   :  { %v3376_v3 = vpack.c.bf16 %v3340_v30, %v3336_v5  ;;  %v3378_v53 = vpack.c.bf16 %v3342_v27, %v3338_v25 }
 0x2c5   :  { %v3377_v29 = vpack.c.bf16 %v3341_v28, %v3337_v62  ;;  %v3379_v1 = vpack.c.bf16 %v3343_v33, %v3339_v32  ;;  %v2827_v43 = vpop.f32.mrb[28].mxu0  ;;  %v3279_v4 = vpop.f32.mrb[28].mxu1  ;;  %3916 = vmatpush1.bf16.msra.mxu0 %v6568_v37 }
 0x2c6   :  { %v4882_v36 = vadd.f32 %v2827_v43, %v6597_v52  ;;  %v4914_v47 = vadd.f32 %v3279_v4, %v6600_v59  ;;  %v2829_v6 = vpop.f32.mrb[29].mxu0  ;;  %v3281_v9 = vpop.f32.mrb[29].mxu1  ;;  %3917 = vmatprep.subr.bf16.mxu0 %v6572_v40 }
 0x2c7   :  { %v4883_v19 = vadd.f32 %v2829_v6, %v6603_v60  ;;  %v4915_v16 = vadd.f32 %v3281_v9, %v6606_v61  ;;  %v2831_v38 = vpop.f32.mrb[30].mxu0  ;;  %v3283_v12 = vpop.f32.mrb[30].mxu1  ;;  %3872 = vmatprep.mubr.bf16.mxu0 %v3377_v29  ;;  %3985 = vmatprep.mubr.bf16.mxu1 %v3379_v1 }
 0x2c8   :  { %v4884_v26 = vadd.f32 %v2831_v38, %v6597_v52  ;;  %v4916_v37 = vadd.f32 %v3283_v12, %v6600_v59  ;;  %v2833_v45 = vpop.f32.mrb[31].mxu0  ;;  %v3285_v10 = vpop.f32.mrb[31].mxu1  ;;  %3873 = vmatmul.mubr.bf16.gmra.mrb[56].mxu0 %v3376_v3  ;;  %3986 = vmatmul.mubr.bf16.gmra.mrb[40].mxu1 %v3378_v53  ;;  %v3344_v11 = vmax.f32 %v4882_v36, 0.0  ;;  %v3346_v31 = vmax.f32 %v4914_v47, 0.0 }
 0x2c9   :  { %v4885_v15 = vadd.f32 %v2833_v45, %v6603_v60  ;;  %v4917_v40 = vadd.f32 %v3285_v10, %v6606_v61  ;;  %3918 = vmatpush1.bf16.msra.mxu0 %v6574_v41  ;;  %v3345_v8 = vmax.f32 %v4883_v19, 0.0  ;;  %v3347_v52 = vmax.f32 %v4915_v16, 0.0  ;;  %v5672_v41 = vld [vmem:[#allocation15 + $0x40] sm:$0xff]   ;;  %v5679_v60 = vld [vmem:[#allocation15 + $0x18] sm:$0xff]  }
 0x2ca   :  { %v3348_v58 = vmax.f32 %v4884_v26, 0.0  ;;  %v3350_v50 = vmax.f32 %v4916_v37, 0.0  ;;  %3919 = vmatprep.subr.bf16.mxu0 %v6578_v42  ;;  %v5673_v42 = vld [vmem:[#allocation15] sm:$0xff]   ;;  %4758 = vmatprep.subr.bf16.mxu1 %v5672_v41 }
 0x2cb   :  { %v3349_v13 = vmax.f32 %v4885_v15, 0.0  ;;  %v3351_v59 = vmax.f32 %v4917_v40, 0.0  ;;  %4759 = vmatpush3.bf16.msra.mxu1 %v5673_v42  ;;  %v5680_v61 = vld [vmem:[#allocation15 + $0x60] sm:$0xff]  }
 0x2cc   :  { %v3380_v21 = vpack.c.bf16 %v3348_v58, %v3344_v11  ;;  %v3382_v17 = vpack.c.bf16 %v3350_v50, %v3346_v31 }
 0x2cd   :  { %v3381_v34 = vpack.c.bf16 %v3349_v13, %v3345_v8  ;;  %v3383_v18 = vpack.c.bf16 %v3351_v59, %v3347_v52  ;;  %3920 = vmatpush1.bf16.msra.mxu0 %v6580_v46  ;;  %v5674_v46 = vld [vmem:[#allocation15 + $0x48] sm:$0xff]  }
 0x2ce   :  { %3921 = vmatprep.subr.bf16.mxu0 %v6584_v49  ;;  %v5675_v49 = vld [vmem:[#allocation15 + $0x8] sm:$0xff]   ;;  %4760 = vmatprep.subr.bf16.mxu1 %v5674_v46 }
 0x2cf   :  { %3882 = vmatprep.mubr.bf16.mxu0 %v3381_v34  ;;  %3995 = vmatprep.mubr.bf16.mxu1 %v3383_v18 }
 0x2d0   :  { %3883 = vmatmul.mubr.bf16.gmra.mrb[60].mxu0 %v3380_v21  ;;  %3996 = vmatmul.mubr.bf16.gmra.mrb[44].mxu1 %v3382_v17 }
 0x2d1   :  { %3922 = vmatpush1.bf16.msra.mxu0 %v6586_v51  ;;  %3925 = vmatprep.mubr.bf16.mxu0 %v6618_v63  ;;  %v5676_v51 = vld [vmem:[#allocation15 + $0x50] sm:$0xff]   ;;  %v5682_v63 = vld [vmem:[#allocation15 + $0x68] sm:$0xff]  }
 0x2d2   :  { %3923 = vmatprep.subr.bf16.mxu0 %v6590_v39  ;;  %4761 = vmatpush3.bf16.msra.mxu1 %v5675_v49  ;;  %v5677_v39 = vld [vmem:[#allocation15 + $0x10] sm:$0xff]  }
 0x2d3   :  { %4762 = vmatprep.subr.bf16.mxu1 %v5676_v51 }
 0x2d5   :  { %3924 = vmatpush1.bf16.msra.mxu0 %v6592_v55  ;;  %v5678_v55 = vld [vmem:[#allocation15 + $0x58] sm:$0xff]  }
 0x2d6   :  { %4763 = vmatpush3.bf16.msra.mxu1 %v5677_v39 }
 0x2d7   :  { %4764 = vmatprep.subr.bf16.mxu1 %v5678_v55 }
 0x2d8   :  { %3926 = vmatmul.mubr.bf16.vlgmr.msra.gmra.mrb[32].mxu0 %v6616_v44  ;;  %v5681_v44 = vld [vmem:[#allocation15 + $0x20] sm:$0xff]  }
 0x2d9   :  { %3935 = vmatprep.mubr.bf16.mxu0 %v6632_v0  ;;  %v5684_v0 = vld [vmem:[#allocation15 + $0x70] sm:$0xff]  }
 0x2da   :  { %4765 = vmatpush3.bf16.msra.mxu1 %v5679_v60 }
 0x2db   :  { %4766 = vmatprep.subr.bf16.mxu1 %v5680_v61 }
 0x2de   :  { %4767 = vmatpush3.bf16.msra.mxu1 %v5681_v44 }
 0x2df   :  { %4768 = vmatprep.subr.bf16.mxu1 %v5682_v63 }
 0x2e0   :  { %3936 = vmatmul.mubr.bf16.gmra.mrb[36].mxu0 %v6630_v57  ;;  %v5683_v57 = vld [vmem:[#allocation15 + $0x28] sm:$0xff]  }
 0x2e1   :  { %3945 = vmatprep.mubr.bf16.mxu0 %v6648_v2  ;;  %v5686_v2 = vld [vmem:[#allocation15 + $0x78] sm:$0xff]  }
 0x2e2   :  { %4769 = vmatpush3.bf16.msra.mxu1 %v5683_v57 }
 0x2e3   :  { %4770 = vmatprep.subr.bf16.mxu1 %v5684_v0 }
 0x2e8   :  { %3946 = vmatmul.mubr.bf16.gmra.mrb[40].mxu0 %v6646_v24  ;;  %v5685_v24 = vld [vmem:[#allocation15 + $0x30] sm:$0xff]  }
 0x2e9   :  { %3955 = vmatprep.mubr.bf16.mxu0 %v6664_v56  ;;  %4771 = vmatpush3.bf16.msra.mxu1 %v5685_v24  ;;  %v3448_v56 = vld [vmem:[#allocation14] sm:$0x3] }
 0x2ea   :  { %4772 = vmatprep.subr.bf16.mxu1 %v5686_v2  ;;  %v6728_v35 = vrot.slane %v3448_v56, %v6167_v54  ;;  %v6731_v22 = vrot.slane %v3448_v56, %v6160_v48 }
 0x2f0   :  { %3956 = vmatmul.mubr.bf16.gmra.mrb[44].mxu0 %v6662_v23  ;;  %v5687_v23 = vld [vmem:[#allocation15 + $0x38] sm:$0xff]  }
 0x2f1   :  { %4773 = vmatpush3.bf16.msra.mxu1 %v5687_v23 }
 0x38b   :  { %v3854_v20 = vpop.f32.mrb[48].mxu0  ;;  %v3967_v14 = vpop.f32.mrb[32].mxu1 }
 0x38c   :  { %v3855_v7 = vadd.f32 %v3854_v20, %v6728_v35  ;;  %v3856_v5 = vpop.f32.mrb[49].mxu0  ;;  %v3969_v25 = vpop.f32.mrb[33].mxu1 }
 0x38d   :  { %v3857_v30 = vadd.f32 %v3856_v5, %v6731_v22  ;;  %v3858_v27 = vpop.f32.mrb[50].mxu0  ;;  %v3971_v62 = vpop.f32.mrb[34].mxu1 }
 0x38e   :  { %v3968_v32 = vadd.f32 %v3967_v14, %v3855_v7  ;;  %v3859_v28 = vadd.f32 %v3858_v27, %v6728_v35  ;;  %v3860_v33 = vpop.f32.mrb[51].mxu0  ;;  %v3973_v3 = vpop.f32.mrb[35].mxu1 }
 0x38f   :  { %v3970_v54 = vadd.f32 %v3969_v25, %v3857_v30  ;;  %v3861_v53 = vadd.f32 %v3860_v33, %v6731_v22 }
 0x390   :  { %v3972_v48 = vadd.f32 %v3971_v62, %v3859_v28  ;;  %v4022_v1 = vmax.f32 %v3968_v32, 0.0 }
 0x391   :  { %v3974_v29 = vadd.f32 %v3973_v3, %v3861_v53  ;;  %v4023_v4 = vmax.f32 %v3970_v54, 0.0 }
 0x392   :  { %v4024_v43 = vmax.f32 %v3972_v48, 0.0 }
 0x393   :  { %v4025_v36 = vmax.f32 %v3974_v29, 0.0  ;;  %v3864_v47 = vpop.f32.mrb[52].mxu0  ;;  %v3977_v6 = vpop.f32.mrb[36].mxu1 }
 0x394   :  { %v6737_v9 = vpack.c.bf16 %v4024_v43, %v4022_v1  ;;  %v3865_v19 = vadd.f32 %v3864_v47, %v6728_v35  ;;  %v3866_v16 = vpop.f32.mrb[53].mxu0  ;;  %v3979_v38 = vpop.f32.mrb[37].mxu1 }
 0x395   :  { %v6740_v12 = vpack.c.bf16 %v4025_v36, %v4023_v4  ;;  %v3867_v26 = vadd.f32 %v3866_v16, %v6731_v22  ;;  %v3868_v37 = vpop.f32.mrb[54].mxu0  ;;  %v3981_v45 = vpop.f32.mrb[38].mxu1 }
 0x396   :  { %v3978_v10 = vadd.f32 %v3977_v6, %v3865_v19  ;;  %v3869_v15 = vadd.f32 %v3868_v37, %v6728_v35  ;;  %v3870_v40 = vpop.f32.mrb[55].mxu0  ;;  %v3983_v11 = vpop.f32.mrb[39].mxu1 }
 0x397   :  { %v3980_v31 = vadd.f32 %v3979_v38, %v3867_v26  ;;  %v3871_v58 = vadd.f32 %v3870_v40, %v6731_v22 }
 0x398   :  { %v3982_v50 = vadd.f32 %v3981_v45, %v3869_v15  ;;  %v4026_v52 = vmax.f32 %v3978_v10, 0.0 }
 0x399   :  { %v3984_v8 = vadd.f32 %v3983_v11, %v3871_v58  ;;  %v4027_v59 = vmax.f32 %v3980_v31, 0.0 }
 0x39a   :  { %v4028_v13 = vmax.f32 %v3982_v50, 0.0 }
 0x39b   :  { %v4029_v21 = vmax.f32 %v3984_v8, 0.0  ;;  %v3874_v17 = vpop.f32.mrb[56].mxu0  ;;  %v3987_v34 = vpop.f32.mrb[40].mxu1 }
 0x39c   :  { %v6745_v18 = vpack.c.bf16 %v4028_v13, %v4026_v52  ;;  %v3875_v41 = vadd.f32 %v3874_v17, %v6728_v35  ;;  %v3876_v42 = vpop.f32.mrb[57].mxu0  ;;  %v3989_v46 = vpop.f32.mrb[41].mxu1 }
 0x39d   :  { %v6748_v49 = vpack.c.bf16 %v4029_v21, %v4027_v59  ;;  %v3877_v51 = vadd.f32 %v3876_v42, %v6731_v22  ;;  %v3878_v39 = vpop.f32.mrb[58].mxu0  ;;  %v3991_v55 = vpop.f32.mrb[42].mxu1 }
 0x39e   :  { %v3988_v60 = vadd.f32 %v3987_v34, %v3875_v41  ;;  %v3879_v61 = vadd.f32 %v3878_v39, %v6728_v35  ;;  %v3880_v44 = vpop.f32.mrb[59].mxu0  ;;  %v3993_v63 = vpop.f32.mrb[43].mxu1 }
 0x39f   :  { %v3990_v57 = vadd.f32 %v3989_v46, %v3877_v51  ;;  %v3881_v0 = vadd.f32 %v3880_v44, %v6731_v22 }
 0x3a0   :  { %v3992_v24 = vadd.f32 %v3991_v55, %v3879_v61  ;;  %v4030_v23 = vmax.f32 %v3988_v60, 0.0 }
 0x3a1   :  { %v3994_v2 = vadd.f32 %v3993_v63, %v3881_v0  ;;  %v4031_v20 = vmax.f32 %v3990_v57, 0.0 }
 0x3a2   :  { %v4032_v56 = vmax.f32 %v3992_v24, 0.0 }
 0x3a3   :  { %v4033_v14 = vmax.f32 %v3994_v2, 0.0  ;;  %v3884_v7 = vpop.f32.mrb[60].mxu0  ;;  %v3997_v5 = vpop.f32.mrb[44].mxu1 }
 0x3a4   :  { %v6753_v25 = vpack.c.bf16 %v4032_v56, %v4030_v23  ;;  %v3885_v30 = vadd.f32 %v3884_v7, %v6728_v35  ;;  %v3886_v27 = vpop.f32.mrb[61].mxu0  ;;  %v3999_v62 = vpop.f32.mrb[45].mxu1 }
 0x3a5   :  { %v6756_v32 = vpack.c.bf16 %v4033_v14, %v4031_v20  ;;  %v3887_v28 = vadd.f32 %v3886_v27, %v6731_v22  ;;  %v3888_v33 = vpop.f32.mrb[62].mxu0  ;;  %v4001_v3 = vpop.f32.mrb[46].mxu1 }
 0x3a6   :  { %v3998_v54 = vadd.f32 %v3997_v5, %v3885_v30  ;;  %v3889_v53 = vadd.f32 %v3888_v33, %v6728_v35  ;;  %v3890_v48 = vpop.f32.mrb[63].mxu0  ;;  %v4003_v29 = vpop.f32.mrb[47].mxu1 }
 0x3a7   :  { %v4000_v1 = vadd.f32 %v3999_v62, %v3887_v28  ;;  %v3891_v43 = vadd.f32 %v3890_v48, %v6731_v22 }
 0x3a8   :  { %v4002_v4 = vadd.f32 %v4001_v3, %v3889_v53  ;;  %v4034_v47 = vmax.f32 %v3998_v54, 0.0 }
 0x3a9   :  { %v4004_v36 = vadd.f32 %v4003_v29, %v3891_v43  ;;  %v4035_v19 = vmax.f32 %v4000_v1, 0.0 }
 0x3aa   :  { %v4036_v6 = vmax.f32 %v4002_v4, 0.0 }
 0x3ab   :  { %v4037_v16 = vmax.f32 %v4004_v36, 0.0  ;;  %v3927_v38 = vpop.f32.mrb[32].mxu0 }
 0x3ac   :  { %v6761_v26 = vpack.c.bf16 %v4036_v6, %v4034_v47  ;;  %v4918_v37 = vadd.f32 %v3927_v38, %v6728_v35  ;;  %v3929_v45 = vpop.f32.mrb[33].mxu0 }
 0x3ad   :  { %v6764_v10 = vpack.c.bf16 %v4037_v16, %v4035_v19  ;;  %v4919_v15 = vadd.f32 %v3929_v45, %v6731_v22  ;;  %v3931_v40 = vpop.f32.mrb[34].mxu0  ;;  %v6789_v45 = vld [vmem:[#allocation17] ss:$0 sm:$0xff] }
 0x3ae   :  { %v4920_v11 = vadd.f32 %v3931_v40, %v6728_v35  ;;  %v3933_v31 = vpop.f32.mrb[35].mxu0  ;;  %v4006_v50 = vmax.f32 %v4918_v37, 0.0 }
 0x3af   :  { %v4921_v58 = vadd.f32 %v3933_v31, %v6731_v22  ;;  %v4007_v52 = vmax.f32 %v4919_v15, 0.0 }
 0x3b0   :  { %v4008_v8 = vmax.f32 %v4920_v11, 0.0  ;;  %v6792_v11 = vld [vmem:[#allocation18] ss:$0 sm:$0xff] }
 0x3b1   :  { %v4009_v13 = vmax.f32 %v4921_v58, 0.0 }
 0x3b2   :  { %v4038_v59 = vpack.c.bf16 %v4008_v8, %v4006_v50 }
 0x3b3   :  { %v4039_v21 = vpack.c.bf16 %v4009_v13, %v4007_v52  ;;  %v3937_v17 = vpop.f32.mrb[36].mxu0 }
 0x3b4   :  { %v4922_v34 = vadd.f32 %v3937_v17, %v6728_v35  ;;  %v3939_v41 = vpop.f32.mrb[37].mxu0 }
 0x3b5   :  { %v4923_v42 = vadd.f32 %v3939_v41, %v6731_v22  ;;  %v3941_v46 = vpop.f32.mrb[38].mxu0  ;;  %4221 = vmatprep.mubr.bf16.mxu1 %v4039_v21 }
 0x3b6   :  { %v4924_v51 = vadd.f32 %v3941_v46, %v6728_v35  ;;  %v3943_v39 = vpop.f32.mrb[39].mxu0  ;;  %4222 = vmatmul.mubr.bf16.vlgmr.msra.gmra.mrb[48].mxu1 %v4038_v59  ;;  %v4010_v60 = vmax.f32 %v4922_v34, 0.0 }
 0x3b7   :  { %v4925_v55 = vadd.f32 %v3943_v39, %v6731_v22  ;;  %v4011_v44 = vmax.f32 %v4923_v42, 0.0 }
 0x3b8   :  { %v4012_v61 = vmax.f32 %v4924_v51, 0.0 }
 0x3b9   :  { %v4013_v63 = vmax.f32 %v4925_v55, 0.0 }
 0x3ba   :  { %v4040_v57 = vpack.c.bf16 %v4012_v61, %v4010_v60 }
 0x3bb   :  { %v4041_v0 = vpack.c.bf16 %v4013_v63, %v4011_v44  ;;  %v3947_v24 = vpop.f32.mrb[40].mxu0 }
 0x3bc   :  { %v4926_v2 = vadd.f32 %v3947_v24, %v6728_v35  ;;  %v3949_v23 = vpop.f32.mrb[41].mxu0 }
 0x3bd   :  { %v4927_v56 = vadd.f32 %v3949_v23, %v6731_v22  ;;  %v3951_v20 = vpop.f32.mrb[42].mxu0  ;;  %4229 = vmatprep.mubr.bf16.mxu1 %v4041_v0 }
 0x3be   :  { %v4928_v14 = vadd.f32 %v3951_v20, %v6728_v35  ;;  %v3953_v7 = vpop.f32.mrb[43].mxu0  ;;  %4230 = vmatmul.mubr.bf16.gmra.mrb[52].mxu1 %v4040_v57  ;;  %v4014_v30 = vmax.f32 %v4926_v2, 0.0 }
 0x3bf   :  { %v4929_v5 = vadd.f32 %v3953_v7, %v6731_v22  ;;  %v4015_v62 = vmax.f32 %v4927_v56, 0.0 }
 0x3c0   :  { %v4016_v27 = vmax.f32 %v4928_v14, 0.0 }
 0x3c1   :  { %v4017_v28 = vmax.f32 %v4929_v5, 0.0 }
 0x3c2   :  { %v4042_v33 = vpack.c.bf16 %v4016_v27, %v4014_v30 }
 0x3c3   :  { %v4043_v3 = vpack.c.bf16 %v4017_v28, %v4015_v62  ;;  %v3957_v54 = vpop.f32.mrb[44].mxu0 }
 0x3c4   :  { %v4930_v53 = vadd.f32 %v3957_v54, %v6728_v35  ;;  %v3959_v48 = vpop.f32.mrb[45].mxu0 }
 0x3c5   :  { %v4931_v29 = vadd.f32 %v3959_v48, %v6731_v22  ;;  %v3961_v1 = vpop.f32.mrb[46].mxu0  ;;  %4237 = vmatprep.mubr.bf16.mxu1 %v4043_v3 }
 0x3c6   :  { %v4932_v43 = vadd.f32 %v3961_v1, %v6728_v35  ;;  %v3963_v4 = vpop.f32.mrb[47].mxu0  ;;  %4238 = vmatmul.mubr.bf16.gmra.mrb[56].mxu1 %v4042_v33  ;;  %v4018_v47 = vmax.f32 %v4930_v53, 0.0 }
 0x3c7   :  { %v4933_v36 = vadd.f32 %v3963_v4, %v6731_v22  ;;  %v4019_v19 = vmax.f32 %v4931_v29, 0.0 }
 0x3c8   :  { %v4020_v6 = vmax.f32 %v4932_v43, 0.0 }
 0x3c9   :  { %v4021_v16 = vmax.f32 %v4933_v36, 0.0 }
 0x3ca   :  { %v4044_v38 = vpack.c.bf16 %v4020_v6, %v4018_v47 }
 0x3cb   :  { %v4045_v37 = vpack.c.bf16 %v4021_v16, %v4019_v19 }
 0x3cd   :  { %4245 = vmatprep.mubr.bf16.mxu1 %v4045_v37 }
 0x3ce   :  { %4246 = vmatmul.mubr.bf16.gmra.mrb[60].mxu1 %v4044_v38 }
 0x3cf   :  { %4253 = vmatprep.mubr.bf16.mxu1 %v6740_v12 }
 0x3d6   :  { %4254 = vmatmul.mubr.bf16.gmra.mrb[64].mxu1 %v6737_v9 }
 0x3d7   :  { %4261 = vmatprep.mubr.bf16.mxu1 %v6748_v49 }
 0x3de   :  { %4262 = vmatmul.mubr.bf16.gmra.mrb[68].mxu1 %v6745_v18 }
 0x3df   :  { %4269 = vmatprep.mubr.bf16.mxu1 %v6756_v32 }
 0x3e6   :  { %4270 = vmatmul.mubr.bf16.gmra.mrb[72].mxu1 %v6753_v25 }
 0x3e7   :  { %4277 = vmatprep.mubr.bf16.mxu1 %v6764_v10 }
 0x3ee   :  { %4278 = vmatmul.mubr.bf16.gmra.mrb[76].mxu1 %v6761_v26 }
 0x489   :  { %v4774_v35 = vpop.f32.mrb[48].mxu1 }
 0x48a   :  { %v4775_v22 = vpop.f32.mrb[49].mxu1 }
 0x48b   :  { %v4776_v15 = vadd.f32 %v4775_v22, %v4774_v35  ;;  %v4777_v12 = vpop.f32.mrb[50].mxu1 }
 0x48c   :  { %v4778_v40 = vpop.f32.mrb[51].mxu1 }
 0x48d   :  { %v4779_v9 = vadd.f32 %v4778_v40, %v4777_v12  ;;  %v4224_v49 = vadd.f32 %v4776_v15, %v6789_v45 }
 0x48f   :  { %v4227_v18 = vadd.f32 %v4779_v9, %v6789_v45  ;;  %v4286_v32 = vmax.f32 %v4224_v49, 0.0 }
 0x491   :  { %v4287_v25 = vmax.f32 %v4227_v18, 0.0  ;;  %v4780_v31 = vpop.f32.mrb[52].mxu1  ;;  %v4309_v10 = vmul.f32 %v6792_v11, %v4286_v32 }
 0x492   :  { %v4781_v26 = vpop.f32.mrb[53].mxu1 }
 0x493   :  { %v4782_v58 = vadd.f32 %v4781_v26, %v4780_v31  ;;  %v4783_v50 = vpop.f32.mrb[54].mxu1  ;;  %4325 = vadd.xlane.f32.xlu0 %v4309_v10  ;;  %v4310_v13 = vmul.f32 %v6792_v11, %v4287_v25 }
 0x494   :  { %v4784_v8 = vpop.f32.mrb[55].mxu1 }
 0x495   :  { %v4785_v52 = vadd.f32 %v4784_v8, %v4783_v50  ;;  %v4232_v59 = vadd.f32 %v4782_v58, %v6789_v45 }
 0x497   :  { %v4235_v21 = vadd.f32 %v4785_v52, %v6789_v45  ;;  %4327 = vadd.xlane.f32.xlu0 %v4310_v13  ;;  %v4288_v17 = vmax.f32 %v4232_v59, 0.0 }
 0x499   :  { %v4289_v34 = vmax.f32 %v4235_v21, 0.0  ;;  %v4786_v41 = vpop.f32.mrb[56].mxu1  ;;  %v4311_v42 = vmul.f32 %v6792_v11, %v4288_v17 }
 0x49a   :  { %v4787_v46 = vpop.f32.mrb[57].mxu1 }
 0x49b   :  { %v4788_v51 = vadd.f32 %v4787_v46, %v4786_v41  ;;  %v4789_v39 = vpop.f32.mrb[58].mxu1  ;;  %4329 = vadd.xlane.f32.xlu1 %v4311_v42  ;;  %v4312_v44 = vmul.f32 %v6792_v11, %v4289_v34 }
 0x49c   :  { %v4790_v55 = vpop.f32.mrb[59].mxu1 }
 0x49d   :  { %v4240_v60 = vadd.f32 %v4788_v51, %v6789_v45  ;;  %v4791_v61 = vadd.f32 %v4790_v55, %v4789_v39 }
 0x49f   :  { %v4290_v63 = vmax.f32 %v4240_v60, 0.0  ;;  %v4243_v57 = vadd.f32 %v4791_v61, %v6789_v45  ;;  %4331 = vadd.xlane.f32.xlu1 %v4312_v44 }
 0x4a1   :  { %v4291_v0 = vmax.f32 %v4243_v57, 0.0  ;;  %v4792_v24 = vpop.f32.mrb[60].mxu1  ;;  %v4313_v2 = vmul.f32 %v6792_v11, %v4290_v63 }
 0x4a2   :  { %v4793_v23 = vpop.f32.mrb[61].mxu1 }
 0x4a3   :  { %v4794_v56 = vadd.f32 %v4793_v23, %v4792_v24  ;;  %v4795_v20 = vpop.f32.mrb[62].mxu1  ;;  %4333 = vadd.xlane.f32.xlu0 %v4313_v2  ;;  %v4314_v14 = vmul.f32 %v6792_v11, %v4291_v0  ;;  %v4757_v24 = vld [vmem:[#allocation2] ss:$0 sm:$0xff] }
 0x4a4   :  { %v4796_v7 = vpop.f32.mrb[63].mxu1 }
 0x4a5   :  { %v4248_v5 = vadd.f32 %v4794_v56, %v6789_v45  ;;  %v4797_v30 = vadd.f32 %v4796_v7, %v4795_v20  ;;  %4335 = vadd.xlane.f32.xlu1 %v4314_v14 }
 0x4a7   :  { %v4292_v27 = vmax.f32 %v4248_v5, 0.0  ;;  %v4251_v62 = vadd.f32 %v4797_v30, %v6789_v45 }
 0x4a9   :  { %v4293_v28 = vmax.f32 %v4251_v62, 0.0  ;;  %v4798_v33 = vpop.f32.mrb[64].mxu1  ;;  %v4315_v3 = vmul.f32 %v6792_v11, %v4292_v27 }
 0x4aa   :  { %v4799_v54 = vpop.f32.mrb[65].mxu1 }
 0x4ab   :  { %v4800_v53 = vadd.f32 %v4799_v54, %v4798_v33  ;;  %4337 = vadd.xlane.f32.xlu0 %v4315_v3  ;;  %v4801_v48 = vpop.f32.mrb[66].mxu1  ;;  %v4316_v29 = vmul.f32 %v6792_v11, %v4293_v28 }
 0x4ac   :  { %v4802_v1 = vpop.f32.mrb[67].mxu1 }
 0x4ad   :  { %v4256_v43 = vadd.f32 %v4800_v53, %v6789_v45  ;;  %v4803_v4 = vadd.f32 %v4802_v1, %v4801_v48  ;;  %4339 = vadd.xlane.f32.xlu1 %v4316_v29 }
 0x4af   :  { %v4294_v36 = vmax.f32 %v4256_v43, 0.0  ;;  %v4259_v47 = vadd.f32 %v4803_v4, %v6789_v45 }
 0x4b1   :  { %v4295_v6 = vmax.f32 %v4259_v47, 0.0  ;;  %v4804_v19 = vpop.f32.mrb[68].mxu1  ;;  %v4317_v16 = vmul.f32 %v6792_v11, %v4294_v36 }
 0x4b2   :  { %v4805_v38 = vpop.f32.mrb[69].mxu1 }
 0x4b3   :  { %v4806_v37 = vadd.f32 %v4805_v38, %v4804_v19  ;;  %v4807_v35 = vpop.f32.mrb[70].mxu1  ;;  %4341 = vadd.xlane.f32.xlu0 %v4317_v16  ;;  %v4318_v22 = vmul.f32 %v6792_v11, %v4295_v6 }
 0x4b4   :  { %v4808_v15 = vpop.f32.mrb[71].mxu1 }
 0x4b5   :  { %v4264_v12 = vadd.f32 %v4806_v37, %v6789_v45  ;;  %v4809_v40 = vadd.f32 %v4808_v15, %v4807_v35  ;;  %4343 = vadd.xlane.f32.xlu1 %v4318_v22 }
 0x4b7   :  { %v4296_v9 = vmax.f32 %v4264_v12, 0.0  ;;  %v4267_v49 = vadd.f32 %v4809_v40, %v6789_v45 }
 0x4b9   :  { %v4297_v18 = vmax.f32 %v4267_v49, 0.0  ;;  %v4810_v32 = vpop.f32.mrb[72].mxu1  ;;  %v4319_v25 = vmul.f32 %v6792_v11, %v4296_v9 }
 0x4ba   :  { %v4811_v31 = vpop.f32.mrb[73].mxu1 }
 0x4bb   :  { %v4812_v10 = vadd.f32 %v4811_v31, %v4810_v32  ;;  %v4813_v26 = vpop.f32.mrb[74].mxu1  ;;  %4345 = vadd.xlane.f32.xlu0 %v4319_v25  ;;  %v4320_v58 = vmul.f32 %v6792_v11, %v4297_v18 }
 0x4bc   :  { %v4814_v50 = vpop.f32.mrb[75].mxu1 }
 0x4bd   :  { %v4272_v8 = vadd.f32 %v4812_v10, %v6789_v45  ;;  %v4815_v52 = vadd.f32 %v4814_v50, %v4813_v26  ;;  %4347 = vadd.xlane.f32.xlu1 %v4320_v58 }
 0x4bf   :  { %v4298_v13 = vmax.f32 %v4272_v8, 0.0  ;;  %v4275_v59 = vadd.f32 %v4815_v52, %v6789_v45 }
 0x4c1   :  { %v4299_v21 = vmax.f32 %v4275_v59, 0.0  ;;  %v4816_v17 = vpop.f32.mrb[76].mxu1  ;;  %v4321_v34 = vmul.f32 %v6792_v11, %v4298_v13 }
 0x4c2   :  { %v4817_v41 = vpop.f32.mrb[77].mxu1 }
 0x4c3   :  { %v4818_v42 = vadd.f32 %v4817_v41, %v4816_v17  ;;  %v4819_v46 = vpop.f32.mrb[78].mxu1  ;;  %4349 = vadd.xlane.f32.xlu0 %v4321_v34  ;;  %v4322_v51 = vmul.f32 %v6792_v11, %v4299_v21 }
 0x4c4   :  { %v4820_v39 = vpop.f32.mrb[79].mxu1 }
 0x4c5   :  { %v4280_v55 = vadd.f32 %v4818_v42, %v6789_v45  ;;  %v4821_v60 = vadd.f32 %v4820_v39, %v4819_v46  ;;  %4351 = vadd.xlane.f32.xlu1 %v4322_v51 }
 0x4c7   :  { %v4300_v61 = vmax.f32 %v4280_v55, 0.0  ;;  %v4283_v44 = vadd.f32 %v4821_v60, %v6789_v45 }
 0x4c9   :  { %v4301_v63 = vmax.f32 %v4283_v44, 0.0  ;;  %v4323_v57 = vmul.f32 %v6792_v11, %v4300_v61 }
 0x4cb   :  { %4353 = vadd.xlane.f32.xlu0 %v4323_v57  ;;  %v4324_v0 = vmul.f32 %v6792_v11, %v4301_v63 }
 0x4cd   :  { %4355 = vadd.xlane.f32.xlu1 %v4324_v0 }
 0x520   :  { %v4326_v2 = vpop.xlane.xlu0 %4325 }
 0x521   :  { %v4364_v23 = vadd.f32 %v4757_v24, %v4326_v2 }
 0x523   :  { %4381 = vst.msk [vmem:[#allocation20] sm:$0xff] %vm4380_vm0, %v4364_v23 }
 0x524   :  { %v4328_v56 = vpop.xlane.xlu0 %4327 }
 0x525   :  { %v4365_v20 = vadd.f32 %v4757_v24, %v4328_v56 }
 0x527   :  { %4382 = vst.msk [vmem:[#allocation20 + $0x8] sm:$0xff] %vm4380_vm0, %v4365_v20 }
 0x528   :  { %v4330_v14 = vpop.xlane.xlu1 %4329 }
 0x529   :  { %v4366_v7 = vadd.f32 %v4757_v24, %v4330_v14 }
 0x52b   :  { %4383 = vst.msk [vmem:[#allocation20 + $0x10] sm:$0xff] %vm4380_vm0, %v4366_v7 }
 0x52c   :  { %v4332_v45 = vpop.xlane.xlu1 %4331 }
 0x52d   :  { %v4367_v5 = vadd.f32 %v4757_v24, %v4332_v45 }
 0x52f   :  { %4384 = vst.msk [vmem:[#allocation20 + $0x18] sm:$0xff] %vm4380_vm0, %v4367_v5 }
 0x530   :  { %v4334_v11 = vpop.xlane.xlu0 %4333 }
 0x531   :  { %v4368_v30 = vadd.f32 %v4757_v24, %v4334_v11 }
 0x532   :  { %v4336_v27 = vpop.xlane.xlu1 %4335 }
 0x533   :  { %4385 = vst.msk [vmem:[#allocation20 + $0x20] sm:$0xff] %vm4380_vm0, %v4368_v30  ;;  %v4369_v62 = vadd.f32 %v4757_v24, %v4336_v27 }
 0x535   :  { %4386 = vst.msk [vmem:[#allocation20 + $0x28] sm:$0xff] %vm4380_vm0, %v4369_v62 }
 0x538   :  { %v4338_v28 = vpop.xlane.xlu0 %4337 }
 0x539   :  { %v4370_v33 = vadd.f32 %v4757_v24, %v4338_v28 }
 0x53a   :  { %v4340_v3 = vpop.xlane.xlu1 %4339 }
 0x53b   :  { %4387 = vst.msk [vmem:[#allocation20 + $0x30] sm:$0xff] %vm4380_vm0, %v4370_v33  ;;  %v4371_v54 = vadd.f32 %v4757_v24, %v4340_v3 }
 0x53d   :  { %4388 = vst.msk [vmem:[#allocation20 + $0x38] sm:$0xff] %vm4380_vm0, %v4371_v54 }
 0x540   :  { %v4342_v53 = vpop.xlane.xlu0 %4341 }
 0x541   :  { %v4372_v48 = vadd.f32 %v4757_v24, %v4342_v53 }
 0x542   :  { %v4344_v29 = vpop.xlane.xlu1 %4343 }
 0x543   :  { %4389 = vst.msk [vmem:[#allocation20 + $0x40] sm:$0xff] %vm4380_vm0, %v4372_v48  ;;  %v4373_v1 = vadd.f32 %v4757_v24, %v4344_v29 }
 0x545   :  { %4390 = vst.msk [vmem:[#allocation20 + $0x48] sm:$0xff] %vm4380_vm0, %v4373_v1 }
 0x548   :  { %v4346_v43 = vpop.xlane.xlu0 %4345 }
 0x549   :  { %v4374_v4 = vadd.f32 %v4757_v24, %v4346_v43 }
 0x54a   :  { %v4348_v36 = vpop.xlane.xlu1 %4347 }
 0x54b   :  { %4391 = vst.msk [vmem:[#allocation20 + $0x50] sm:$0xff] %vm4380_vm0, %v4374_v4  ;;  %v4375_v47 = vadd.f32 %v4757_v24, %v4348_v36 }
 0x54d   :  { %4392 = vst.msk [vmem:[#allocation20 + $0x58] sm:$0xff] %vm4380_vm0, %v4375_v47 }
 0x550   :  { %v4350_v6 = vpop.xlane.xlu0 %4349 }
 0x551   :  { %v4376_v19 = vadd.f32 %v4757_v24, %v4350_v6 }
 0x552   :  { %v4352_v16 = vpop.xlane.xlu1 %4351 }
 0x553   :  { %4393 = vst.msk [vmem:[#allocation20 + $0x60] sm:$0xff] %vm4380_vm0, %v4376_v19  ;;  %v4377_v38 = vadd.f32 %v4757_v24, %v4352_v16 }
 0x555   :  { %4394 = vst.msk [vmem:[#allocation20 + $0x68] sm:$0xff] %vm4380_vm0, %v4377_v38 }
 0x558   :  { %v4354_v37 = vpop.xlane.xlu0 %4353 }
 0x559   :  { %v4378_v35 = vadd.f32 %v4757_v24, %v4354_v37 }
 0x55a   :  { %v4356_v22 = vpop.xlane.xlu1 %4355 }
 0x55b   :  { %4395 = vst.msk [vmem:[#allocation20 + $0x70] sm:$0xff] %vm4380_vm0, %v4378_v35  ;;  %v4379_v15 = vadd.f32 %v4757_v24, %v4356_v22 }
 0x55d   :  { %4396 = vst.msk [vmem:[#allocation20 + $0x78] sm:$0xff] %vm4380_vm0, %v4379_v15 }
 0x55e   :  { %5921 = shalt.err (!%p5918_p0)
}
 0x55f   :  { %s5922_s14 = scalar_lea.hbm %s6867_s11, 2048 }
 0x560   :  { %p5923_p1 = scmp.ne.s32.totalorder %s6867_s11, %s5922_s14  ;;  %p5926_p2 = scmp.lt.u32.totalorder %s5922_s14, %s6867_s11 }
 0x562   :  { %p5928_p3 = pnand %p5926_p2, %p5923_p1 }
 0x564   :  { %5931 = shalt.err (!%p5928_p3)
}
 0x565   :  { %4408 = dma.vmem_to_hbm [thread:$0]  %s4403_s4, 2048, %s6867_s11, [#allocation5], %s5951_s3, %s5951_s3, %s5952_s22  }
 0x566   :  { %5944 = dma.done.wait [#allocation5], 2048  }
 0x567   :  { %5945 = vsyncadd [#allocation5], 4294965248 }
 0x568   :  { %4412 = vsyncpa [#allocation4], 1 }
 0x569   :  { %4413 = vsyncpa [#allocation7], 1 }
 0x56a   :  { %4414 = vsyncpa [#allocation10], 1 }
 0x56b   :  { %4415 = vsyncpa [#allocation13], 1 }
 0x56c   :  { %4416 = vsyncpa [#allocation16], 1 }
 0x56d   :  { %4417 = vsyncpa [#allocation19], 1 }
 0x56e   :  { %4418 = vsyncpa [#allocation5], 1 }

</bundles_post_ra>
